<compile_context>
chip_gen: v6e
topology: v6e:2x2x1
jax: 0.10.0
libtpu: 0.0.40
codegen_flags: <defaults>
</compile_context>

<pallas_src>
import jax
import jax.numpy as jnp
from jax.experimental import pallas as pl
from jax.experimental.pallas import tpu as pltpu

H1, H2 = 800, 600                        # hidden sizes from the PyTorch module
LANE = 128                               # TPU lane width
H1P = ((H1 + LANE - 1) // LANE) * LANE   # 896 (lane-dense padded hidden 1)
H2P = ((H2 + LANE - 1) // LANE) * LANE   # 640 (lane-dense padded hidden 2)


def _round_up(x, m):
    return ((x + m - 1) // m) * m


def actor_kernel(s_ref, w1_ref, b1_ref, w2_ref, b2_ref, w3_ref, b3_ref, out_ref):
    # layer_1: Linear(state_dim, 800) + ReLU -- bf16 MXU matmul, f32 accumulate,
    # f32 elementwise (v5e-safe: no bf16 VPU/EUP there).
    x = s_ref[...].astype(jnp.bfloat16)
    h1 = jnp.dot(x, w1_ref[...], preferred_element_type=jnp.float32)
    h1 = jnp.maximum(h1 + b1_ref[...], 0.0)
    # layer_2: Linear(800, 600) + ReLU
    h2 = jnp.dot(h1.astype(jnp.bfloat16), w2_ref[...],
                 preferred_element_type=jnp.float32)
    h2 = jnp.maximum(h2 + b2_ref[...], 0.0)
    # layer_3: Linear(600, action_dim) + Tanh -- tiny, kept f32 for accuracy
    h3 = jnp.dot(h2, w3_ref[...], preferred_element_type=jnp.float32)
    out_ref[...] = jnp.tanh(h3 + b3_ref[...])


def prepare_actor_params(params):
    """One-time (offline) weight prep: pad hidden dims to lane multiples and cast
    the big matmul weights to bf16.  Call ONCE and reuse across forward calls."""
    w1, b1, w2, b2, w3, b3 = params
    w1p = jnp.pad(w1, ((0, 0), (0, H1P - H1))).astype(jnp.bfloat16)        # (S, 896)
    b1p = jnp.pad(b1, ((0, 0), (0, H1P - H1)))                             # (1, 896) f32
    w2p = jnp.pad(w2, ((0, H1P - H1), (0, H2P - H2))).astype(jnp.bfloat16)  # (896, 640)
    b2p = jnp.pad(b2, ((0, 0), (0, H2P - H2)))                             # (1, 640) f32
    w3p = jnp.pad(w3, ((0, H2P - H2), (0, 0)))                             # (640, A) f32
    return (w1p, b1p, w2p, b2p, w3p, b3)


def actor_forward(s, prepared_params, *, max_tile=512):
    """Forward pass of Actor. s: [B, state_dim] f32. Returns [B, action_dim] f32.
    `prepared_params` must come from prepare_actor_params()."""
    w1, b1, w2, b2, w3, b3 = prepared_params
    B, S = s.shape
    A = w3.shape[1]

    # Batch tile: multiple of 8, capped at max_tile.  Once there is >= 2 sublanes'
    # worth of rows, prefer >= 2 grid steps so both v7x TensorCores get tiles.
    if B >= 16:
        tb = min(max_tile, _round_up((B + 1) // 2, 8))
    else:
        tb = min(max_tile, _round_up(max(B, 1), 8))
    B_pad = _round_up(B, tb)
    grid = (B_pad // tb,)
    s_pad = jnp.pad(s, ((0, B_pad - B), (0, 0))) if B_pad != B else s

    flops = 2 * B_pad * (S * H1P + H1P * H2P + H2P * A)
    bytes_accessed = (
        s_pad.size * 4 + B_pad * A * 4
        + (w1.size + w2.size) * 2
        + (b1.size + b2.size + w3.size + b3.size) * 4
    )
    cost = pl.CostEstimate(flops=flops, transcendentals=B_pad * A,
                           bytes_accessed=bytes_accessed)

    def run(resident_mode):
        def resident(shape):
            if resident_mode is None:
                return pl.BlockSpec(shape, lambda i: (0, 0))
            return pl.BlockSpec(shape, lambda i: (0, 0),
                                pipeline_mode=resident_mode)

        return pl.pallas_call(
            actor_kernel,
            out_shape=jax.ShapeDtypeStruct((B_pad, A), jnp.float32),
            grid=grid,
            in_specs=[
                pl.BlockSpec((tb, S), lambda i: (i, 0)),   # activation tile (pipelined)
                resident((S, H1P)),                        # resident weights/biases
                resident((1, H1P)),
                resident((H1P, H2P)),
                resident((1, H2P)),
                resident((H2P, A)),
                resident((1, A)),
            ],
            out_specs=pl.BlockSpec((tb, A), lambda i: (i, 0)),
            compiler_params=pltpu.CompilerParams(
                dimension_semantics=("parallel",)),        # shard batch tiles across TCs
            cost_estimate=cost,
        )(s_pad, w1, b1, w2, b2, w3, b3)

    try:
        # Grid-invariant operands: single-buffer them (saves ~1.5 MB VMEM + DMAs).
        out = run(pl.Buffered(buffer_count=1))
    except Exception:
        # Fallback for jax builds without BlockSpec pipeline_mode support.
        out = run(None)

    return out[:B] if B_pad != B else out


def init_actor_params(key, state_dim, action_dim):
    """Deterministic init mirroring PyTorch nn.Linear default:
    W, b ~ U(-1/sqrt(fan_in), 1/sqrt(fan_in)). Weights stored as [in, out], f32."""
    dims = [(state_dim, H1), (H1, H2), (H2, action_dim)]
    params = []
    for i, (fan_in, fan_out) in enumerate(dims):
        kw, kb = jax.random.split(jax.random.fold_in(key, i))
        bound = 1.0 / (fan_in ** 0.5)
        w = jax.random.uniform(kw, (fan_in, fan_out), jnp.float32, -bound, bound)
        b = jax.random.uniform(kb, (1, fan_out), jnp.float32, -bound, bound)
        params += [w, b]
    return tuple(params)


def actor_reference(s, params):
    """Plain-JAX f32 reference of the PyTorch forward pass."""
    w1, b1, w2, b2, w3, b3 = params
    h = jax.nn.relu(s @ w1 + b1)
    h = jax.nn.relu(h @ w2 + b2)
    return jnp.tanh(h @ w3 + b3)


if __name__ == "__main__":
    state_dim, action_dim = 24, 2
    key = jax.random.PRNGKey(0)
    k_s, k_p = jax.random.split(key)

    params = init_actor_params(k_p, state_dim, action_dim)
    prepared = prepare_actor_params(params)        # one-time weight prep (hoisted)

    for batch in (2, 40):                          # exercises grid=(1,) and grid=(2,)
        s = jax.random.normal(jax.random.fold_in(k_s, batch),
                              (batch, state_dim), jnp.float32)
        a = jax.block_until_ready(actor_forward(s, prepared))
        a_ref = actor_reference(s, params)
        assert a.shape == (batch, action_dim)
        # bf16 weights/activations in layers 1-2 -> loosened tolerance vs f32 ref
        assert jnp.allclose(a, a_ref, atol=2e-2, rtol=2e-2), "mismatch vs reference"

    print("KERNEL_OK")
</pallas_src>

<mosaic_0001>
module attributes {stable_mosaic.version = 11 : i64} {
  func.func @actor_kernel(%arg0: i32, %arg1: memref<8x24xf32, #tpu.memory_space<vmem>>, %arg2: memref<24x896xbf16, #tpu.memory_space<vmem>>, %arg3: memref<1x896xf32, #tpu.memory_space<vmem>>, %arg4: memref<896x640xbf16, #tpu.memory_space<vmem>>, %arg5: memref<1x640xf32, #tpu.memory_space<vmem>>, %arg6: memref<640x2xf32, #tpu.memory_space<vmem>>, %arg7: memref<1x2xf32, #tpu.memory_space<vmem>>, %arg8: memref<8x2xf32, #tpu.memory_space<vmem>>) attributes {dimension_semantics = [#tpu.dimension_semantics<parallel>], iteration_bounds = array<i64: 1>, scalar_prefetch = 0 : i64, scratch_operands = 0 : i64, tpu.core_type = #tpu.core_type<tc>, window_params = [{transform_indices = @transform_0, window_bounds = array<i64: 8, 24>}, {pipeline_mode = #tpu.pipeline_mode<synchronous>, transform_indices = @transform_1, window_bounds = array<i64: 24, 896>}, {pipeline_mode = #tpu.pipeline_mode<synchronous>, transform_indices = @transform_2, window_bounds = array<i64: 1, 896>}, {pipeline_mode = #tpu.pipeline_mode<synchronous>, transform_indices = @transform_3, window_bounds = array<i64: 896, 640>}, {pipeline_mode = #tpu.pipeline_mode<synchronous>, transform_indices = @transform_4, window_bounds = array<i64: 1, 640>}, {pipeline_mode = #tpu.pipeline_mode<synchronous>, transform_indices = @transform_5, window_bounds = array<i64: 640, 2>}, {pipeline_mode = #tpu.pipeline_mode<synchronous>, transform_indices = @transform_6, window_bounds = array<i64: 1, 2>}, {transform_indices = @transform_7, window_bounds = array<i64: 8, 2>}]} {
    %c0 = arith.constant 0 : index
    %c0_0 = arith.constant 0 : index
    %0 = vector.load %arg1[%c0, %c0_0] : memref<8x24xf32, #tpu.memory_space<vmem>>, vector<8x24xf32>
    %1 = arith.truncf %0 : vector<8x24xf32> to vector<8x24xbf16>
    %c0_1 = arith.constant 0 : index
    %c0_2 = arith.constant 0 : index
    %2 = vector.load %arg2[%c0_1, %c0_2] : memref<24x896xbf16, #tpu.memory_space<vmem>>, vector<24x896xbf16>
    %cst = arith.constant dense<0.000000e+00> : vector<8x896xf32>
    %3 = tpu.matmul %1, %2, %cst {dimension_numbers = #tpu.dot_dimension_numbers<[1], [0], [0], [1], [0, 0, 1, 1], [], []>} : vector<8x24xbf16>, vector<24x896xbf16>, vector<8x896xf32> -> vector<8x896xf32>
    %c0_3 = arith.constant 0 : index
    %c0_4 = arith.constant 0 : index
    %4 = vector.load %arg3[%c0_3, %c0_4] : memref<1x896xf32, #tpu.memory_space<vmem>>, vector<1x896xf32>
    %5 = vector.broadcast %4 : vector<1x896xf32> to vector<8x896xf32>
    %6 = arith.addf %3, %5 : vector<8x896xf32>
    %cst_5 = arith.constant 0.000000e+00 : f32
    %7 = vector.broadcast %cst_5 : f32 to vector<8x896xf32>
    %8 = arith.maximumf %6, %7 : vector<8x896xf32>
    %9 = arith.truncf %8 : vector<8x896xf32> to vector<8x896xbf16>
    %c0_6 = arith.constant 0 : index
    %c0_7 = arith.constant 0 : index
    %10 = vector.load %arg4[%c0_6, %c0_7] : memref<896x640xbf16, #tpu.memory_space<vmem>>, vector<896x640xbf16>
    %cst_8 = arith.constant dense<0.000000e+00> : vector<8x640xf32>
    %11 = tpu.matmul %9, %10, %cst_8 {dimension_numbers = #tpu.dot_dimension_numbers<[1], [0], [0], [1], [0, 0, 1, 1], [], []>} : vector<8x896xbf16>, vector<896x640xbf16>, vector<8x640xf32> -> vector<8x640xf32>
    %c0_9 = arith.constant 0 : index
    %c0_10 = arith.constant 0 : index
    %12 = vector.load %arg5[%c0_9, %c0_10] : memref<1x640xf32, #tpu.memory_space<vmem>>, vector<1x640xf32>
    %13 = vector.broadcast %12 : vector<1x640xf32> to vector<8x640xf32>
    %14 = arith.addf %11, %13 : vector<8x640xf32>
    %cst_11 = arith.constant 0.000000e+00 : f32
    %15 = vector.broadcast %cst_11 : f32 to vector<8x640xf32>
    %16 = arith.maximumf %14, %15 : vector<8x640xf32>
    %c0_12 = arith.constant 0 : index
    %c0_13 = arith.constant 0 : index
    %17 = vector.load %arg6[%c0_12, %c0_13] : memref<640x2xf32, #tpu.memory_space<vmem>>, vector<640x2xf32>
    %cst_14 = arith.constant dense<0.000000e+00> : vector<8x2xf32>
    %18 = tpu.matmul %16, %17, %cst_14 {dimension_numbers = #tpu.dot_dimension_numbers<[1], [0], [0], [1], [0, 0, 1, 1], [], []>} : vector<8x640xf32>, vector<640x2xf32>, vector<8x2xf32> -> vector<8x2xf32>
    %c0_15 = arith.constant 0 : index
    %c0_16 = arith.constant 0 : index
    %19 = vector.load %arg7[%c0_15, %c0_16] : memref<1x2xf32, #tpu.memory_space<vmem>>, vector<1x2xf32>
    %20 = vector.broadcast %19 : vector<1x2xf32> to vector<8x2xf32>
    %21 = arith.addf %18, %20 : vector<8x2xf32>
    %22 = math.tanh %21 : vector<8x2xf32>
    %c0_17 = arith.constant 0 : index
    %c0_18 = arith.constant 0 : index
    %23 = vector.load %arg8[%c0_17, %c0_18] : memref<8x2xf32, #tpu.memory_space<vmem>>, vector<8x2xf32>
    tpu.vector_store %arg8[%c0_17, %c0_18], %22 {strides = array<i32>} : memref<8x2xf32, #tpu.memory_space<vmem>>, vector<8x2xf32>,
    return
  }
  func.func @transform_0(%arg0: i32) -> (i32, i32) {
    %c0_i32 = arith.constant 0 : i32
    %c0_i32_0 = arith.constant 0 : i32
    return %arg0, %c0_i32 : i32, i32
  }
  func.func @transform_1(%arg0: i32) -> (i32, i32) {
    %c0_i32 = arith.constant 0 : i32
    %c0_i32_0 = arith.constant 0 : i32
    %c0_i32_1 = arith.constant 0 : i32
    return %c0_i32, %c0_i32_0 : i32, i32
  }
  func.func @transform_2(%arg0: i32) -> (i32, i32) {
    %c0_i32 = arith.constant 0 : i32
    %c0_i32_0 = arith.constant 0 : i32
    %c0_i32_1 = arith.constant 0 : i32
    return %c0_i32, %c0_i32_0 : i32, i32
  }
  func.func @transform_3(%arg0: i32) -> (i32, i32) {
    %c0_i32 = arith.constant 0 : i32
    %c0_i32_0 = arith.constant 0 : i32
    %c0_i32_1 = arith.constant 0 : i32
    return %c0_i32, %c0_i32_0 : i32, i32
  }
  func.func @transform_4(%arg0: i32) -> (i32, i32) {
    %c0_i32 = arith.constant 0 : i32
    %c0_i32_0 = arith.constant 0 : i32
    %c0_i32_1 = arith.constant 0 : i32
    return %c0_i32, %c0_i32_0 : i32, i32
  }
  func.func @transform_5(%arg0: i32) -> (i32, i32) {
    %c0_i32 = arith.constant 0 : i32
    %c0_i32_0 = arith.constant 0 : i32
    %c0_i32_1 = arith.constant 0 : i32
    return %c0_i32, %c0_i32_0 : i32, i32
  }
  func.func @transform_6(%arg0: i32) -> (i32, i32) {
    %c0_i32 = arith.constant 0 : i32
    %c0_i32_0 = arith.constant 0 : i32
    %c0_i32_1 = arith.constant 0 : i32
    return %c0_i32, %c0_i32_0 : i32, i32
  }
  func.func @transform_7(%arg0: i32) -> (i32, i32) {
    %c0_i32 = arith.constant 0 : i32
    %c0_i32_0 = arith.constant 0 : i32
    return %arg0, %c0_i32 : i32, i32
  }
}

module attributes {stable_mosaic.version = 11 : i64} {
  func.func @actor_kernel(%arg0: i32, %arg1: memref<8x24xf32, #tpu.memory_space<vmem>>, %arg2: memref<24x896xbf16, #tpu.memory_space<vmem>>, %arg3: memref<1x896xf32, #tpu.memory_space<vmem>>, %arg4: memref<896x640xbf16, #tpu.memory_space<vmem>>, %arg5: memref<1x640xf32, #tpu.memory_space<vmem>>, %arg6: memref<640x2xf32, #tpu.memory_space<vmem>>, %arg7: memref<1x2xf32, #tpu.memory_space<vmem>>, %arg8: memref<8x2xf32, #tpu.memory_space<vmem>>) attributes {dimension_semantics = [#tpu.dimension_semantics<parallel>], iteration_bounds = array<i64: 1>, scalar_prefetch = 0 : i64, scratch_operands = 0 : i64, tpu.core_type = #tpu.core_type<tc>, window_params = [{transform_indices = @transform_0, window_bounds = array<i64: 8, 24>}, {pipeline_mode = #tpu.pipeline_mode<synchronous>, transform_indices = @transform_1, window_bounds = array<i64: 24, 896>}, {pipeline_mode = #tpu.pipeline_mode<synchronous>, transform_indices = @transform_2, window_bounds = array<i64: 1, 896>}, {pipeline_mode = #tpu.pipeline_mode<synchronous>, transform_indices = @transform_3, window_bounds = array<i64: 896, 640>}, {pipeline_mode = #tpu.pipeline_mode<synchronous>, transform_indices = @transform_4, window_bounds = array<i64: 1, 640>}, {pipeline_mode = #tpu.pipeline_mode<synchronous>, transform_indices = @transform_5, window_bounds = array<i64: 640, 2>}, {pipeline_mode = #tpu.pipeline_mode<synchronous>, transform_indices = @transform_6, window_bounds = array<i64: 1, 2>}, {transform_indices = @transform_7, window_bounds = array<i64: 8, 2>}]} {
    %c0 = arith.constant 0 : index
    %c0_0 = arith.constant 0 : index
    %0 = vector.load %arg1[%c0, %c0_0] : memref<8x24xf32, #tpu.memory_space<vmem>>, vector<8x24xf32>
    %1 = arith.truncf %0 : vector<8x24xf32> to vector<8x24xbf16>
    %c0_1 = arith.constant 0 : index
    %c0_2 = arith.constant 0 : index
    %2 = vector.load %arg2[%c0_1, %c0_2] : memref<24x896xbf16, #tpu.memory_space<vmem>>, vector<24x896xbf16>
    %cst = arith.constant dense<0.000000e+00> : vector<8x896xf32>
    %3 = tpu.matmul %1, %2, %cst {dimension_numbers = #tpu.dot_dimension_numbers<[1], [0], [0], [1], [0, 0, 1, 1], [], []>} : vector<8x24xbf16>, vector<24x896xbf16>, vector<8x896xf32> -> vector<8x896xf32>
    %c0_3 = arith.constant 0 : index
    %c0_4 = arith.constant 0 : index
    %4 = vector.load %arg3[%c0_3, %c0_4] : memref<1x896xf32, #tpu.memory_space<vmem>>, vector<1x896xf32>
    %5 = vector.broadcast %4 : vector<1x896xf32> to vector<8x896xf32>
    %6 = arith.addf %3, %5 : vector<8x896xf32>
    %cst_5 = arith.constant 0.000000e+00 : f32
    %7 = vector.broadcast %cst_5 : f32 to vector<8x896xf32>
    %8 = arith.maximumf %6, %7 : vector<8x896xf32>
    %9 = arith.truncf %8 : vector<8x896xf32> to vector<8x896xbf16>
    %c0_6 = arith.constant 0 : index
    %c0_7 = arith.constant 0 : index
    %10 = vector.load %arg4[%c0_6, %c0_7] : memref<896x640xbf16, #tpu.memory_space<vmem>>, vector<896x640xbf16>
    %cst_8 = arith.constant dense<0.000000e+00> : vector<8x640xf32>
    %11 = tpu.matmul %9, %10, %cst_8 {dimension_numbers = #tpu.dot_dimension_numbers<[1], [0], [0], [1], [0, 0, 1, 1], [], []>} : vector<8x896xbf16>, vector<896x640xbf16>, vector<8x640xf32> -> vector<8x640xf32>
    %c0_9 = arith.constant 0 : index
    %c0_10 = arith.constant 0 : index
    %12 = vector.load %arg5[%c0_9, %c0_10] : memref<1x640xf32, #tpu.memory_space<vmem>>, vector<1x640xf32>
    %13 = vector.broadcast %12 : vector<1x640xf32> to vector<8x640xf32>
    %14 = arith.addf %11, %13 : vector<8x640xf32>
    %cst_11 = arith.constant 0.000000e+00 : f32
    %15 = vector.broadcast %cst_11 : f32 to vector<8x640xf32>
    %16 = arith.maximumf %14, %15 : vector<8x640xf32>
    %c0_12 = arith.constant 0 : index
    %c0_13 = arith.constant 0 : index
    %17 = vector.load %arg6[%c0_12, %c0_13] : memref<640x2xf32, #tpu.memory_space<vmem>>, vector<640x2xf32>
    %cst_14 = arith.constant dense<0.000000e+00> : vector<8x2xf32>
    %18 = tpu.matmul %16, %17, %cst_14 {dimension_numbers = #tpu.dot_dimension_numbers<[1], [0], [0], [1], [0, 0, 1, 1], [], []>} : vector<8x640xf32>, vector<640x2xf32>, vector<8x2xf32> -> vector<8x2xf32>
    %c0_15 = arith.constant 0 : index
    %c0_16 = arith.constant 0 : index
    %19 = vector.load %arg7[%c0_15, %c0_16] : memref<1x2xf32, #tpu.memory_space<vmem>>, vector<1x2xf32>
    %20 = vector.broadcast %19 : vector<1x2xf32> to vector<8x2xf32>
    %21 = arith.addf %18, %20 : vector<8x2xf32>
    %22 = math.tanh %21 : vector<8x2xf32>
    %c0_17 = arith.constant 0 : index
    %c0_18 = arith.constant 0 : index
    %23 = vector.load %arg8[%c0_17, %c0_18] : memref<8x2xf32, #tpu.memory_space<vmem>>, vector<8x2xf32>
    tpu.vector_store %arg8[%c0_17, %c0_18], %22 {strides = array<i32>} : memref<8x2xf32, #tpu.memory_space<vmem>>, vector<8x2xf32>,
    return
  }
  func.func @transform_0(%arg0: i32) -> (i32, i32) {
    %c0_i32 = arith.constant 0 : i32
    %c0_i32_0 = arith.constant 0 : i32
    return %arg0, %c0_i32 : i32, i32
  }
  func.func @transform_1(%arg0: i32) -> (i32, i32) {
    %c0_i32 = arith.constant 0 : i32
    %c0_i32_0 = arith.constant 0 : i32
    %c0_i32_1 = arith.constant 0 : i32
    return %c0_i32, %c0_i32_0 : i32, i32
  }
  func.func @transform_2(%arg0: i32) -> (i32, i32) {
    %c0_i32 = arith.constant 0 : i32
    %c0_i32_0 = arith.constant 0 : i32
    %c0_i32_1 = arith.constant 0 : i32
    return %c0_i32, %c0_i32_0 : i32, i32
  }
  func.func @transform_3(%arg0: i32) -> (i32, i32) {
    %c0_i32 = arith.constant 0 : i32
    %c0_i32_0 = arith.constant 0 : i32
    %c0_i32_1 = arith.constant 0 : i32
    return %c0_i32, %c0_i32_0 : i32, i32
  }
  func.func @transform_4(%arg0: i32) -> (i32, i32) {
    %c0_i32 = arith.constant 0 : i32
    %c0_i32_0 = arith.constant 0 : i32
    %c0_i32_1 = arith.constant 0 : i32
    return %c0_i32, %c0_i32_0 : i32, i32
  }
  func.func @transform_5(%arg0: i32) -> (i32, i32) {
    %c0_i32 = arith.constant 0 : i32
    %c0_i32_0 = arith.constant 0 : i32
    %c0_i32_1 = arith.constant 0 : i32
    return %c0_i32, %c0_i32_0 : i32, i32
  }
  func.func @transform_6(%arg0: i32) -> (i32, i32) {
    %c0_i32 = arith.constant 0 : i32
    %c0_i32_0 = arith.constant 0 : i32
    %c0_i32_1 = arith.constant 0 : i32
    return %c0_i32, %c0_i32_0 : i32, i32
  }
  func.func @transform_7(%arg0: i32) -> (i32, i32) {
    %c0_i32 = arith.constant 0 : i32
    %c0_i32_0 = arith.constant 0 : i32
    return %arg0, %c0_i32 : i32, i32
  }
}

</mosaic_0001>

<bundles_post_ra>
// kernel: tpu_custom_call.1
= control target key start
LH: loop header
LB: loop body
LE: loop exit
PB: predicated region body
PF: predicated region fallthrough
CT: control target
= control target key end

     0   :  { %12 = vsyncpa [#allocation3], 0  ;;  %s4580_s0 = inlined_call_operand.hbm [shape: f32[8,24], index: 0, kind: input, shape index: {}]   ;;  %s4581_s1 = inlined_call_operand.hbm [shape: bf16[24,896], index: 1, kind: input, shape index: {}]   ;;  %s4582_s2 = inlined_call_operand.hbm [shape: f32[1,896], index: 2, kind: input, shape index: {}]   ;;  %s4583_s3 = inlined_call_operand.hbm [shape: bf16[896,640], index: 3, kind: input, shape index: {}]   ;;  %s4584_s4 = inlined_call_operand.hbm [shape: f32[1,640], index: 4, kind: input, shape index: {}]   ;;  %s4585_s5 = inlined_call_operand.vmem [shape: f32[640,2], index: 5, kind: input, shape index: {}]   ;;  %s4586_s6 = inlined_call_operand.hbm [shape: f32[1,2], index: 6, kind: input, shape index: {}]   ;;  %s4587_s7 = inlined_call_operand.vmem [shape: f32[8,2], index: 7, kind: output, shape index: {}]  }
   0x1   :  { %13 = vsyncpa [#allocation5], 0 }
   0x2   :  { %14 = vsyncpa [#allocation8], 0 }
   0x3   :  { %15 = vsyncpa [#allocation11], 0  ;;  %s4111_s24 = smov [#allocation4]  }
   0x4   :  { %s31_s25 = sshll.u32 %s4111_s24, 4  ;;  %s32_s25 = int_to_ptr.vmem [resolvable:$true] %s31_s25 }
   0x5   :  { %s3991_s26 = scalar_lea.vmem %s32_s25, 1344  ;;  %p3996_p1 = scmp.lt.s32.totalorder %s32_s25, %s32_s25 }
   0x6   :  { %p3992_p0 = scmp.ne.s32.totalorder %s32_s25, %s3991_s26  ;;  %p3997_p2 = scmp.lt.s32.totalorder %s3991_s26, %s3991_s26 }
   0x8   :  { %p3998_p3 = por %p3997_p2, %p3996_p1 }
   0xa   :  { %p3999_p4 = pnand %p3998_p3, %p3992_p0 }
   0xc   :  { %4002 = shalt.err (!%p3999_p4)
}
   0xd   :  { %s4112_s27 = smov 448   ;;  %s4113_s28 = smov 28  }
   0xe   :  { %37 = dma.hbm_to_vmem [thread:$0]  %s4581_s1, 1344, %s32_s25, [#allocation5], %s4112_s27, %s4112_s27, %s4113_s28  }
   0xf   :  { %s4114_s8 = smov [#allocation7]  }
  0x10   :  { %s53_s9 = sshll.u32 %s4114_s8, 4  ;;  %s54_s9 = int_to_ptr.vmem [resolvable:$true] %s53_s9 }
  0x11   :  { %s4011_s10 = scalar_lea.vmem %s54_s9, 35840  ;;  %p4016_p6 = scmp.lt.s32.totalorder %s54_s9, %s54_s9 }
  0x12   :  { %p4012_p5 = scmp.ne.s32.totalorder %s54_s9, %s4011_s10  ;;  %p4017_p7 = scmp.lt.s32.totalorder %s4011_s10, %s4011_s10 }
  0x14   :  { %p4018_p8 = por %p4017_p7, %p4016_p6 }
  0x16   :  { %p4019_p9 = pnand %p4018_p8, %p4012_p5 }
  0x18   :  { %4022 = shalt.err (!%p4019_p9)
}
  0x19   :  { %s4115_s11 = smov 320   ;;  %s4116_s12 = smov 20  }
  0x1a   :  { %59 = dma.hbm_to_vmem [thread:$0]  %s4583_s3, 35840, %s54_s9, [#allocation8], %s4115_s11, %s4115_s11, %s4116_s12  }
  0x1b   :  { %s4117_s15 = smov [#allocation2]   ;;  %s4118_s17 = smov [#allocation6]  }
  0x1c   :  { %s22_s16 = sshll.u32 %s4117_s15, 4  ;;  %s44_s1 = sshll.u32 %s4118_s17, 4  ;;  %s23_s16 = int_to_ptr.vmem [resolvable:$true] %s22_s16  ;;  %s45_s1 = int_to_ptr.vmem [resolvable:$true] %s44_s1 }
  0x1d   :  { %s4031_s18 = scalar_lea.vmem %s23_s16, 128  ;;  %p4036_p11 = scmp.lt.s32.totalorder %s23_s16, %s23_s16 }
  0x1e   :  { %p4032_p10 = scmp.ne.s32.totalorder %s23_s16, %s4031_s18  ;;  %p4037_p12 = scmp.lt.s32.totalorder %s4031_s18, %s4031_s18 }
  0x20   :  { %p4038_p13 = por %p4037_p12, %p4036_p11 }
  0x22   :  { %p4039_p0 = pnand %p4038_p13, %p4032_p10 }
  0x24   :  { %4042 = shalt.err (!%p4039_p0)
}
  0x25   :  { %25 = dma.hbm_to_vmem [thread:$0]  %s4580_s0, 128, %s23_s16, [#allocation3]  }
  0x26   :  { %s4051_s21 = scalar_lea.vmem %s45_s1, 112  ;;  %s4055_s3 = scalar_lea.vmem %s45_s1, 128 }
  0x27   :  { %p4052_p1 = scmp.ne.s32.totalorder %s45_s1, %s4051_s21  ;;  %p4056_p2 = scmp.lt.s32.totalorder %s45_s1, %s45_s1 }
  0x28   :  { %p4057_p3 = scmp.lt.s32.totalorder %s4055_s3, %s4051_s21 }
  0x2a   :  { %p4058_p4 = por %p4057_p3, %p4056_p2 }
  0x2c   :  { %p4059_p5 = pnand %p4058_p4, %p4052_p1 }
  0x2e   :  { %4062 = shalt.err (!%p4059_p5)
}
  0x2f   :  { %47 = dma.hbm_to_vmem [thread:$0]  %s4582_s2, 112, %s45_s1, [#allocation5]  }
  0x30   :  { %s4119_s24 = smov [#allocation9]   ;;  %s4120_s26 = smov [#allocation10]  }
  0x31   :  { %s66_s25 = sshll.u32 %s4119_s24, 4  ;;  %s78_s27 = sshll.u32 %s4120_s26, 4  ;;  %s67_s25 = int_to_ptr.vmem [resolvable:$true] %s66_s25  ;;  %s79_s27 = int_to_ptr.vmem [resolvable:$true] %s78_s27 }
  0x32   :  { %s4071_s28 = scalar_lea.vmem %s67_s25, 80  ;;  %s4075_s0 = scalar_lea.vmem %s67_s25, 96 }
  0x33   :  { %p4072_p6 = scmp.ne.s32.totalorder %s67_s25, %s4071_s28  ;;  %p4076_p7 = scmp.lt.s32.totalorder %s67_s25, %s67_s25 }
  0x34   :  { %p4077_p8 = scmp.lt.s32.totalorder %s4075_s0, %s4071_s28 }
  0x36   :  { %p4078_p9 = por %p4077_p8, %p4076_p7 }
  0x38   :  { %p4079_p10 = pnand %p4078_p9, %p4072_p6 }
  0x3a   :  { %4082 = shalt.err (!%p4079_p10)
}
  0x3b   :  { %69 = dma.hbm_to_vmem [thread:$0]  %s4584_s4, 80, %s67_s25, [#allocation8]  }
  0x3c   :  { %s4091_s8 = scalar_lea.vmem %s79_s27, 16  ;;  %s4095_s2 = scalar_lea.vmem %s79_s27, 32 }
  0x3d   :  { %p4092_p11 = scmp.ne.s32.totalorder %s79_s27, %s4091_s8  ;;  %p4096_p12 = scmp.lt.s32.totalorder %s79_s27, %s79_s27 }
  0x3e   :  { %p4097_p13 = scmp.lt.s32.totalorder %s4095_s2, %s4091_s8 }
  0x40   :  { %p4098_p0 = por %p4097_p13, %p4096_p12 }
  0x42   :  { %p4099_p1 = pnand %p4098_p0, %p4092_p11 }
  0x44   :  { %4102 = shalt.err (!%p4099_p1)
}
  0x45   :  { %81 = dma.hbm_to_vmem [thread:$0]  %s4586_s6, 16, %s79_s27, [#allocation11]  }
  0x46   :  { %4103 = dma.done.wait [#allocation3], 128  }
  0x47   :  { %4104 = vsyncadd [#allocation3], 4294967168 }
  0x48   :  { %4105 = dma.done.wait [#allocation5], 1456  }
  0x49   :  { %4106 = vsyncadd [#allocation5], 4294965840 }
  0x4a   :  { %4107 = dma.done.wait [#allocation8], 35920  }
  0x4b   :  { %4108 = vsyncadd [#allocation8], 4294931376 }
  0x4c   :  { %4109 = dma.done.wait [#allocation11], 16  }
  0x4d   :  { %4110 = vsyncadd [#allocation11], 4294967280  ;;  %v4121_v0 = vmov 0   ;;  %v111_v1 = vld [vmem:[#allocation4 + $0x38] sm:$0xff]  ;;  %vm210_vm0 = vcmask 1043456   ;;  %v112_v5 = vld [vmem:[#allocation4 + $0x40] sm:$0xff] }
  0x4e   :  { %264 = vmatprep.mubr.bf16.mxu1 %v4121_v0  ;;  %v3037_v2 = vcombine.high %v111_v1, %v111_v1  ;;  %v3036_v3 = vcombine.low %v111_v1, %v111_v1  ;;  %v3574_v4 = vld [vmem:[#allocation4 + $0x4] ss:$28 sps:$4 sm:$0xff]   ;;  %v101_v8 = vld [vmem:[#allocation2] sm:$0xff]  ;;  %v3039_v9 = vcombine.high %v112_v5, %v112_v5  ;;  %v3038_v10 = vcombine.low %v112_v5, %v112_v5  ;;  %v3581_v12 = vld [vmem:[#allocation4 + $0xc] ss:$28 sps:$4 sm:$0xff]  }
  0x4f   :  { %v3576_v7 = vld [vmem:[#allocation4] ss:$28 sps:$4 sm:$0xff]   ;;  %v4185_v11 = vpack.c.bf16 %v101_v8, %v101_v8  ;;  %v3589_v13 = vld [vmem:[#allocation7 + $0x11c] ss:$20 sps:$4 sm:$0xff]   ;;  %vm206_vm1 = vcmask 195584   ;;  %v4122_v33 = vmov 0.0  }
  0x50   :  { %3043 = vmatprep.subr.msk.bf16.mxu1 %vm210_vm0, %v3037_v2  ;;  %v212_v6 = vsel %vm210_vm0, %v3036_v3, 0  ;;  %v3591_v14 = vld [vmem:[#allocation7 + $0x118] ss:$20 sps:$4 sm:$0xff]   ;;  %v218_v15 = vsel %vm210_vm0, %v3038_v10, 0  ;;  %2228 = vmatprep.subr.bf16.mxu0 %v3589_v13  ;;  %v3592_v17 = vld [vmem:[#allocation7 + $0xf4] ss:$20 sps:$4 sm:$0xff]  }
  0x51   :  { %245 = vmatpush1.bf16.msra.mxu1 %v212_v6  ;;  %v113_v16 = vld [vmem:[#allocation4 + $0x48] sm:$0xff]  ;;  %2229 = vmatpush1.bf16.msra.mxu0 %v3591_v14  ;;  %v3600_v23 = vld [vmem:[#allocation7 + $0xc8] ss:$20 sps:$4 sm:$0xff]   ;;  %v3601_v24 = vld [vmem:[#allocation7 + $0xa4] ss:$20 sps:$4 sm:$0xff]   ;;  %vm4123_vm2 = vmmov 0  }
  0x52   :  { %246 = vmatprep.subr.bf16.mxu1 %v3574_v4  ;;  %v3594_v18 = vld [vmem:[#allocation7 + $0xf0] ss:$20 sps:$4 sm:$0xff]   ;;  %2230 = vmatprep.subr.bf16.mxu0 %v3592_v17  ;;  %v3595_v19 = vld [vmem:[#allocation7 + $0xcc] ss:$20 sps:$4 sm:$0xff]   ;;  %v3041_v21 = vcombine.high %v113_v16, %v113_v16  ;;  %v3040_v22 = vcombine.low %v113_v16, %v113_v16  ;;  %v3586_v26 = vld [vmem:[#allocation4 + $0x14] ss:$28 sps:$4 sm:$0xff]  }
  0x53   :  { %v3579_v20 = vld [vmem:[#allocation4 + $0x8] ss:$28 sps:$4 sm:$0xff]   ;;  %v3606_v27 = vld [vmem:[#allocation7 + $0xa0] ss:$20 sps:$4 sm:$0xff]   ;;  %v3607_v28 = vld [vmem:[#allocation7 + $0x7c] ss:$20 sps:$4 sm:$0xff]  }
  0x54   :  { %v224_v25 = vsel %vm210_vm0, %v3040_v22, 0  ;;  %v3584_v29 = vld [vmem:[#allocation4 + $0x10] ss:$28 sps:$4 sm:$0xff]   ;;  %v3612_v31 = vld [vmem:[#allocation7 + $0x78] ss:$20 sps:$4 sm:$0xff]   ;;  %vm3019_vm3 = vcmask 15360  }
  0x55   :  { %247 = vmatpush1.bf16.msra.mxu1 %v3576_v7  ;;  %2231 = vmatpush1.bf16.msra.mxu0 %v3594_v18  ;;  %v3587_v30 = vld [vmem:[#allocation4 + $0x50] ss:$0 sps:$4 sm:$0xff]   ;;  %v3618_v35 = vld [vmem:[#allocation7 + $0x50] ss:$20 sps:$4 sm:$0xff]   ;;  %v3619_v36 = vld [vmem:[#allocation7 + $0x2c] ss:$20 sps:$4 sm:$0xff]  }
  0x56   :  { %3045 = vmatprep.subr.msk.bf16.mxu1 %vm210_vm0, %v3039_v9  ;;  %2232 = vmatprep.subr.bf16.mxu0 %v3595_v19  ;;  %v3613_v32 = vld [vmem:[#allocation7 + $0x54] ss:$20 sps:$4 sm:$0xff]   ;;  %v230_v34 = vsel %vm210_vm0, %v3587_v30, 0  ;;  %v3588_v37 = vld [vmem:[#allocation4 + $0x18] ss:$28 sps:$4 sm:$0xff]  }
  0x57   :  { %v3599_v38 = vld [vmem:[#allocation7 + $0x39c] ss:$20 sps:$4 sm:$0xff]   ;;  %v3625_v40 = vld [vmem:[#allocation7 + $0x4] ss:$20 sps:$4 sm:$0xff]   ;;  %v3605_v42 = vld [vmem:[#allocation7 + $0x374] ss:$20 sps:$4 sm:$0xff]  }
  0x58   :  { %3044 = vmatmul.mubr.msk.bf16.vlgmr.msra.gmra.mxu1 %vm206_vm1, %v4185_v11  ;;  %v3624_v39 = vld [vmem:[#allocation7 + $0x28] ss:$20 sps:$4 sm:$0xff]   ;;  %v3597_v41 = vld [vmem:[#allocation7 + $0x398] ss:$20 sps:$4 sm:$0xff]   ;;  %v3630_v43 = vld [vmem:[#allocation7] ss:$20 sps:$4 sm:$0xff]  }
  0x59   :  { %286 = vmatpush1.bf16.msra.mxu1 %v218_v15  ;;  %305 = vmatprep.mubr.bf16.mxu1 %v4121_v0  ;;  %v3631_v44 = vld [vmem:[#allocation7 + $0x25c] ss:$20 sps:$4 sm:$0xff]   ;;  %v3611_v46 = vld [vmem:[#allocation7 + $0x34c] ss:$20 sps:$4 sm:$0xff]   ;;  %v3637_v48 = vld [vmem:[#allocation7 + $0x234] ss:$20 sps:$4 sm:$0xff]  }
  0x5a   :  { %287 = vmatprep.subr.bf16.mxu1 %v3581_v12  ;;  %2233 = vmatpush1.bf16.msra.mxu0 %v3600_v23  ;;  %v3603_v45 = vld [vmem:[#allocation7 + $0x370] ss:$20 sps:$4 sm:$0xff]   ;;  %v3636_v47 = vld [vmem:[#allocation7 + $0x258] ss:$20 sps:$4 sm:$0xff]   ;;  %v3609_v49 = vld [vmem:[#allocation7 + $0x348] ss:$20 sps:$4 sm:$0xff]  }
  0x5b   :  { %2234 = vmatprep.subr.bf16.mxu0 %v3601_v24  ;;  %v3617_v50 = vld [vmem:[#allocation7 + $0x324] ss:$20 sps:$4 sm:$0xff]   ;;  %v3643_v52 = vld [vmem:[#allocation7 + $0x20c] ss:$20 sps:$4 sm:$0xff]   ;;  %v3623_v54 = vld [vmem:[#allocation7 + $0x2fc] ss:$20 sps:$4 sm:$0xff]  }
  0x5c   :  { %v3642_v51 = vld [vmem:[#allocation7 + $0x230] ss:$20 sps:$4 sm:$0xff]   ;;  %v3615_v53 = vld [vmem:[#allocation7 + $0x320] ss:$20 sps:$4 sm:$0xff]   ;;  %v3648_v55 = vld [vmem:[#allocation7 + $0x208] ss:$20 sps:$4 sm:$0xff]  }
  0x5d   :  { %288 = vmatpush1.bf16.msra.mxu1 %v3579_v20  ;;  %v3649_v56 = vld [vmem:[#allocation7 + $0x1e4] ss:$20 sps:$4 sm:$0xff]   ;;  %v3629_v58 = vld [vmem:[#allocation7 + $0x2d4] ss:$20 sps:$4 sm:$0xff]   ;;  %v3655_v60 = vld [vmem:[#allocation7 + $0x1bc] ss:$20 sps:$4 sm:$0xff]  }
  0x5e   :  { %3047 = vmatprep.subr.msk.bf16.mxu1 %vm210_vm0, %v3041_v21  ;;  %2235 = vmatpush1.bf16.msra.mxu0 %v3606_v27  ;;  %v3621_v57 = vld [vmem:[#allocation7 + $0x2f8] ss:$20 sps:$4 sm:$0xff]   ;;  %v3654_v59 = vld [vmem:[#allocation7 + $0x1e0] ss:$20 sps:$4 sm:$0xff]   ;;  %v3627_v61 = vld [vmem:[#allocation7 + $0x2d0] ss:$20 sps:$4 sm:$0xff]  }
  0x5f   :  { %2236 = vmatprep.subr.bf16.mxu0 %v3607_v28  ;;  %v3635_v62 = vld [vmem:[#allocation7 + $0x2ac] ss:$20 sps:$4 sm:$0xff]   ;;  %v3661_v1 = vld [vmem:[#allocation7 + $0x194] ss:$20 sps:$4 sm:$0xff]   ;;  %v3641_v3 = vld [vmem:[#allocation7 + $0x284] ss:$20 sps:$4 sm:$0xff]   ;;  %v117_v28 = vlaneseq }
  0x60   :  { %3046 = vmatmul.mubr.msk.bf16.vlgmr.msra.gmra.mxu1 %vm206_vm1, %v4185_v11  ;;  %v3660_v63 = vld [vmem:[#allocation7 + $0x1b8] ss:$20 sps:$4 sm:$0xff]   ;;  %v3633_v2 = vld [vmem:[#allocation7 + $0x2a8] ss:$20 sps:$4 sm:$0xff]   ;;  %v3666_v4 = vld [vmem:[#allocation7 + $0x190] ss:$20 sps:$4 sm:$0xff]  }
  0x61   :  { %327 = vmatpush1.bf16.msra.mxu1 %v224_v25  ;;  %346 = vmatprep.mubr.bf16.mxu1 %v4121_v0  ;;  %v3639_v5 = vld [vmem:[#allocation7 + $0x280] ss:$20 sps:$4 sm:$0xff]   ;;  %v3647_v6 = vld [vmem:[#allocation7 + $0x4dc] ss:$20 sps:$4 sm:$0xff]   ;;  %v3645_v7 = vld [vmem:[#allocation7 + $0x4d8] ss:$20 sps:$4 sm:$0xff]  }
  0x62   :  { %328 = vmatprep.subr.bf16.mxu1 %v3586_v26  ;;  %2237 = vmatpush1.bf16.msra.mxu0 %v3612_v31  ;;  %v3653_v8 = vld [vmem:[#allocation7 + $0x4b4] ss:$20 sps:$4 sm:$0xff]   ;;  %v3651_v9 = vld [vmem:[#allocation7 + $0x4b0] ss:$20 sps:$4 sm:$0xff]   ;;  %v3659_v10 = vld [vmem:[#allocation7 + $0x48c] ss:$20 sps:$4 sm:$0xff]  }
  0x63   :  { %2238 = vmatprep.subr.bf16.mxu0 %v3613_v32  ;;  %v3665_v12 = vld [vmem:[#allocation7 + $0x464] ss:$20 sps:$4 sm:$0xff]   ;;  %v3663_v13 = vld [vmem:[#allocation7 + $0x460] ss:$20 sps:$4 sm:$0xff]   ;;  %v3671_v15 = vld [vmem:[#allocation7 + $0x43c] ss:$20 sps:$4 sm:$0xff]  }
  0x64   :  { %v3667_v14 = vld [vmem:[#allocation7 + $0x16c] ss:$20 sps:$4 sm:$0xff]   ;;  %v3672_v16 = vld [vmem:[#allocation7 + $0x168] ss:$20 sps:$4 sm:$0xff]   ;;  %v3673_v18 = vld [vmem:[#allocation7 + $0x144] ss:$20 sps:$4 sm:$0xff]  }
  0x65   :  { %329 = vmatpush1.bf16.msra.mxu1 %v3584_v29  ;;  %v3669_v17 = vld [vmem:[#allocation7 + $0x438] ss:$20 sps:$4 sm:$0xff]   ;;  %v3677_v19 = vld [vmem:[#allocation7 + $0x414] ss:$20 sps:$4 sm:$0xff]   ;;  %v3684_v21 = vld [vmem:[#allocation7 + $0x61c] ss:$20 sps:$4 sm:$0xff]  }
  0x66   :  { %3496 = vmatprep.subr.bf16.mxu1 %v4122_v33  ;;  %2239 = vmatpush1.bf16.msra.mxu0 %v3618_v35  ;;  %v3678_v20 = vld [vmem:[#allocation7 + $0x140] ss:$20 sps:$4 sm:$0xff]   ;;  %v3675_v22 = vld [vmem:[#allocation7 + $0x410] ss:$20 sps:$4 sm:$0xff]   ;;  %v3679_v24 = vld [vmem:[#allocation7 + $0x3e8] ss:$20 sps:$4 sm:$0xff]  }
  0x67   :  { %2240 = vmatprep.subr.bf16.mxu0 %v3619_v36  ;;  %v3681_v23 = vld [vmem:[#allocation7 + $0x3ec] ss:$20 sps:$4 sm:$0xff]   ;;  %v3687_v25 = vld [vmem:[#allocation7 + $0x3c4] ss:$20 sps:$4 sm:$0xff]   ;;  %v3696_v27 = vld [vmem:[#allocation7 + $0x89c] ss:$20 sps:$4 sm:$0xff]  }
  0x68   :  { %3048 = vmatmul.mubr.msk.bf16.vlgmr.msra.gmra.mxu1 %vm206_vm1, %v4185_v11  ;;  %v3685_v26 = vld [vmem:[#allocation7 + $0x3c0] ss:$20 sps:$4 sm:$0xff]   ;;  %v4206_v29 = vshrl.u32 %v117_v28, 7  ;;  %v4209_v31 = vld [vmem:[#allocation6] sm:$0xff] }
  0x69   :  { %3497 = vmatpush3.bf16.msra.mxu1 %v230_v34  ;;  %3500 = vmatprep.mubr.msk.bf16.mxu1 %vm4123_vm2, %v4122_v33 }
  0x6a   :  { %3498 = vmatprep.subr.bf16.mxu1 %v4122_v33  ;;  %2241 = vmatpush1.bf16.msra.mxu0 %v3624_v39  ;;  %v119_v30 = vsub.s32 0, %v4206_v29  ;;  %v123_v32 = vsub.s32 1, %v4206_v29 }
  0x6b   :  { %2242 = vmatprep.subr.bf16.mxu0 %v3625_v40 }
  0x6c   :  { %v120_v34 = vrot.slane %v4209_v31, %v119_v30  ;;  %v124_v35 = vrot.slane %v4209_v31, %v123_v32 }
  0x6d   :  { %3499 = vmatpush3.bf16.msra.mxu1 %v3588_v37 }
  0x6e   :  { %2269 = vmatprep.subr.bf16.mxu1 %v3599_v38  ;;  %2243 = vmatpush1.bf16.msra.mxu0 %v3630_v43  ;;  %v127_v38 = vsub.s32 2, %v4206_v29 }
  0x6f   :  { %2244 = vmatprep.subr.bf16.mxu0 %v3631_v44 }
  0x70   :  { %3501 = vmatmul.mubr.msk.bf16.vlgmr.msra.gmra.mxu1 %vm206_vm1, %v4185_v11  ;;  %v3657_v11 = vld [vmem:[#allocation7 + $0x488] ss:$20 sps:$4 sm:$0xff]  }
  0x71   :  { %2270 = vmatpush1.bf16.msra.mxu1 %v3597_v41  ;;  %v131_v41 = vsub.s32 3, %v4206_v29 }
  0x72   :  { %2271 = vmatprep.subr.bf16.mxu1 %v3605_v42  ;;  %2245 = vmatpush2.bf16.msra.mxu0 %v3636_v47 }
  0x73   :  { %2246 = vmatprep.subr.bf16.mxu0 %v3637_v48  ;;  %v3682_v48 = vld [vmem:[#allocation7 + $0x618] ss:$20 sps:$4 sm:$0xff]  }
  0x75   :  { %2272 = vmatpush1.bf16.msra.mxu1 %v3603_v45  ;;  %v128_v45 = vrot.slane %v4209_v31, %v127_v38 }
  0x76   :  { %2273 = vmatprep.subr.bf16.mxu1 %v3611_v46  ;;  %2247 = vmatpush2.bf16.msra.mxu0 %v3642_v51 }
  0x77   :  { %2248 = vmatprep.subr.bf16.mxu0 %v3643_v52  ;;  %v3690_v52 = vld [vmem:[#allocation7 + $0x5f4] ss:$20 sps:$4 sm:$0xff]  }
  0x79   :  { %2274 = vmatpush1.bf16.msra.mxu1 %v3609_v49  ;;  %v132_v49 = vrot.slane %v4209_v31, %v131_v41 }
  0x7a   :  { %2275 = vmatprep.subr.bf16.mxu1 %v3617_v50  ;;  %2249 = vmatpush2.bf16.msra.mxu0 %v3648_v55 }
  0x7b   :  { %2250 = vmatprep.subr.bf16.mxu0 %v3649_v56  ;;  %v3688_v56 = vld [vmem:[#allocation7 + $0x5f0] ss:$20 sps:$4 sm:$0xff]  }
  0x7d   :  { %2276 = vmatpush1.bf16.msra.mxu1 %v3615_v53 }
  0x7e   :  { %2277 = vmatprep.subr.bf16.mxu1 %v3623_v54  ;;  %2251 = vmatpush2.bf16.msra.mxu0 %v3654_v59 }
  0x7f   :  { %2252 = vmatprep.subr.bf16.mxu0 %v3655_v60  ;;  %v3693_v60 = vld [vmem:[#allocation7 + $0x5cc] ss:$20 sps:$4 sm:$0xff]  }
  0x81   :  { %2278 = vmatpush1.bf16.msra.mxu1 %v3621_v57  ;;  %v139_v57 = vsub.s32 5, %v4206_v29 }
  0x82   :  { %2279 = vmatprep.subr.bf16.mxu1 %v3629_v58  ;;  %2253 = vmatpush2.bf16.msra.mxu0 %v3660_v63 }
  0x83   :  { %2254 = vmatprep.subr.bf16.mxu0 %v3661_v1  ;;  %v3691_v1 = vld [vmem:[#allocation7 + $0x5c8] ss:$20 sps:$4 sm:$0xff]  }
  0x85   :  { %2280 = vmatpush1.bf16.msra.mxu1 %v3627_v61 }
  0x86   :  { %2281 = vmatprep.subr.bf16.mxu1 %v3635_v62  ;;  %2255 = vmatpush2.bf16.msra.mxu0 %v3666_v4 }
  0x87   :  { %2256 = vmatprep.subr.bf16.mxu0 %v3667_v14 }
  0x89   :  { %2282 = vmatpush1.bf16.msra.mxu1 %v3633_v2  ;;  %v3694_v2 = vld [vmem:[#allocation7 + $0x898] ss:$20 sps:$4 sm:$0xff]  }
  0x8a   :  { %2283 = vmatprep.subr.bf16.mxu1 %v3641_v3  ;;  %2257 = vmatpush2.bf16.msra.mxu0 %v3672_v16  ;;  %v140_v3 = vrot.slane %v4209_v31, %v139_v57  ;;  %v3741_v57 = vld [vmem:[#allocation7 + $0x70c] ss:$20 sps:$4 sm:$0xff]  }
  0x8b   :  { %2258 = vmatprep.subr.bf16.mxu0 %v3673_v18  ;;  %v3706_v18 = vld [vmem:[#allocation7 + $0x848] ss:$20 sps:$4 sm:$0xff]  }
  0x8d   :  { %2284 = vmatpush1.bf16.msra.mxu1 %v3639_v5  ;;  %v3699_v5 = vld [vmem:[#allocation7 + $0x5a4] ss:$20 sps:$4 sm:$0xff]  }
  0x8e   :  { %2285 = vmatprep.subr.bf16.mxu1 %v3647_v6  ;;  %2259 = vmatpush2.bf16.msra.mxu0 %v3678_v20  ;;  %v3702_v6 = vld [vmem:[#allocation7 + $0x874] ss:$20 sps:$4 sm:$0xff]  }
  0x8f   :  { %2310 = vmatprep.subr.bf16.mxu0 %v3684_v21  ;;  %v3711_v20 = vld [vmem:[#allocation7 + $0x554] ss:$20 sps:$4 sm:$0xff]   ;;  %v3714_v21 = vld [vmem:[#allocation7 + $0x824] ss:$20 sps:$4 sm:$0xff]  }
  0x91   :  { %2286 = vmatpush2.bf16.msra.mxu1 %v3645_v7 }
  0x92   :  { %2287 = vmatprep.subr.bf16.mxu1 %v3653_v8 }
  0x95   :  { %2288 = vmatpush2.bf16.msra.mxu1 %v3651_v9  ;;  %v3697_v9 = vld [vmem:[#allocation7 + $0x5a0] ss:$20 sps:$4 sm:$0xff]  }
  0x96   :  { %2289 = vmatprep.subr.bf16.mxu1 %v3659_v10  ;;  %v3700_v10 = vld [vmem:[#allocation7 + $0x870] ss:$20 sps:$4 sm:$0xff]  }
  0x99   :  { %2290 = vmatpush2.bf16.msra.mxu1 %v3657_v11 }
  0x9a   :  { %2291 = vmatprep.subr.bf16.mxu1 %v3665_v12  ;;  %v3705_v12 = vld [vmem:[#allocation7 + $0x57c] ss:$20 sps:$4 sm:$0xff]  }
  0x9d   :  { %2292 = vmatpush2.bf16.msra.mxu1 %v3663_v13  ;;  %v3708_v13 = vld [vmem:[#allocation7 + $0x84c] ss:$20 sps:$4 sm:$0xff]  }
  0x9e   :  { %2293 = vmatprep.subr.bf16.mxu1 %v3671_v15 }
  0xa1   :  { %2294 = vmatpush2.bf16.msra.mxu1 %v3669_v17  ;;  %v3703_v17 = vld [vmem:[#allocation7 + $0x578] ss:$20 sps:$4 sm:$0xff]  }
  0xa2   :  { %2295 = vmatprep.subr.bf16.mxu1 %v3677_v19 }
  0xa5   :  { %2296 = vmatpush2.bf16.msra.mxu1 %v3675_v22 }
  0xa6   :  { %2297 = vmatprep.subr.bf16.mxu1 %v3681_v23 }
  0xa9   :  { %2298 = vmatpush2.bf16.msra.mxu1 %v3679_v24  ;;  %v3709_v24 = vld [vmem:[#allocation7 + $0x550] ss:$20 sps:$4 sm:$0xff]  }
  0xaa   :  { %2299 = vmatprep.subr.bf16.mxu1 %v3687_v25  ;;  %v3712_v25 = vld [vmem:[#allocation7 + $0x820] ss:$20 sps:$4 sm:$0xff]  }
  0xad   :  { %2300 = vmatpush2.bf16.msra.mxu1 %v3685_v26  ;;  %v3717_v26 = vld [vmem:[#allocation7 + $0x52c] ss:$20 sps:$4 sm:$0xff]  }
  0xae   :  { %2351 = vmatprep.subr.bf16.mxu1 %v3696_v27  ;;  %v3720_v27 = vld [vmem:[#allocation7 + $0x7fc] ss:$20 sps:$4 sm:$0xff]  }
 0x118   :  { %v266_v36 = vpop.f32.mrf.mxu1 }
 0x119   :  { %v267_v37 = vadd.f32 %v266_v36, %v120_v34  ;;  %v143_v34 = vsub.s32 6, %v4206_v29  ;;  %v3715_v36 = vld [vmem:[#allocation7 + $0x528] ss:$20 sps:$4 sm:$0xff]  }
 0x11a   :  { %v268_v39 = vpop.f32.mrf.mxu1 }
 0x11b   :  { %v269_v40 = vadd.f32 %v268_v39, %v124_v35  ;;  %v395_v42 = vmax.f32 %v267_v37, 0.0  ;;  %v3718_v37 = vld [vmem:[#allocation7 + $0x7f8] ss:$20 sps:$4 sm:$0xff]  }
 0x11c   :  { %v270_v43 = vpop.f32.mrf.mxu1  ;;  %v3723_v39 = vld [vmem:[#allocation7 + $0x504] ss:$20 sps:$4 sm:$0xff]  }
 0x11d   :  { %v396_v44 = vmax.f32 %v269_v40, 0.0  ;;  %v4228_v50 = vpack.c.bf16 %v395_v42, %v395_v42  ;;  %v3726_v40 = vld [vmem:[#allocation7 + $0x7d4] ss:$20 sps:$4 sm:$0xff]   ;;  %v144_v42 = vrot.slane %v4209_v31, %v143_v34 }
 0x11e   :  { %v271_v46 = vpop.f32.mrf.mxu1  ;;  %v3721_v43 = vld [vmem:[#allocation7 + $0x500] ss:$20 sps:$4 sm:$0xff]  }
 0x11f   :  { %v4223_v47 = vpack.c.bf16 %v396_v44, %v396_v44  ;;  %v3724_v44 = vld [vmem:[#allocation7 + $0x7d0] ss:$20 sps:$4 sm:$0xff]   ;;  %v3732_v46 = vld [vmem:[#allocation7 + $0x7ac] ss:$20 sps:$4 sm:$0xff]  }
 0x120   :  { %v307_v51 = vpop.f32.mrf.mxu1  ;;  %v3778_v34 = vld [vmem:[#allocation7 + $0x3a0] ss:$20 sps:$4 sm:$0xff]  }
 0x121   :  { %v308_v53 = vadd.f32 %v307_v51, %v128_v45  ;;  %2260 = vmatprep.mubr.bf16.mxu0 %v4223_v47  ;;  %v3729_v45 = vld [vmem:[#allocation7 + $0x75c] ss:$20 sps:$4 sm:$0xff]  }
 0x122   :  { %v309_v54 = vpop.f32.mrf.mxu1  ;;  %2261 = vmatmul.mubr.bf16.vlgmr.msra.gmra.mxu0 %v4228_v50  ;;  %v3730_v51 = vld [vmem:[#allocation7 + $0x7a8] ss:$20 sps:$4 sm:$0xff]  }
 0x123   :  { %v310_v55 = vadd.f32 %v309_v54, %v132_v49  ;;  %2311 = vmatpush1.bf16.msra.mxu0 %v3682_v48  ;;  %v397_v58 = vmax.f32 %v308_v53, 0.0  ;;  %v3727_v49 = vld [vmem:[#allocation7 + $0x758] ss:$20 sps:$4 sm:$0xff]  }
 0x124   :  { %v311_v59 = vpop.f32.mrf.mxu1  ;;  %2312 = vmatprep.subr.bf16.mxu0 %v3690_v52  ;;  %v3735_v52 = vld [vmem:[#allocation7 + $0x734] ss:$20 sps:$4 sm:$0xff]   ;;  %v3738_v53 = vld [vmem:[#allocation7 + $0x784] ss:$20 sps:$4 sm:$0xff]  }
 0x125   :  { %v398_v61 = vmax.f32 %v310_v55, 0.0  ;;  %v4236_v4 = vpack.c.bf16 %v397_v58, %v397_v58  ;;  %v3733_v55 = vld [vmem:[#allocation7 + $0x730] ss:$20 sps:$4 sm:$0xff]  }
 0x126   :  { %v312_v62 = vpop.f32.mrf.mxu1  ;;  %v3744_v58 = vld [vmem:[#allocation7 + $0x124] ss:$20 sps:$4 sm:$0xff]  }
 0x127   :  { %v4233_v63 = vpack.c.bf16 %v398_v61, %v398_v61  ;;  %2313 = vmatpush1.bf16.msra.mxu0 %v3688_v56  ;;  %v3736_v56 = vld [vmem:[#allocation7 + $0x780] ss:$20 sps:$4 sm:$0xff]   ;;  %v3747_v62 = vld [vmem:[#allocation7 + $0x6e4] ss:$20 sps:$4 sm:$0xff]  }
 0x128   :  { %2314 = vmatprep.subr.bf16.mxu0 %v3693_v60  ;;  %v4238_v7 = vpop.f32.mrf.mxu1  ;;  %v3739_v60 = vld [vmem:[#allocation7 + $0x708] ss:$20 sps:$4 sm:$0xff]   ;;  %v3742_v61 = vld [vmem:[#allocation7 + $0x120] ss:$20 sps:$4 sm:$0xff]  }
 0x129   :  { %2301 = vmatprep.mubr.bf16.mxu1 %v4233_v63 }
 0x12a   :  { %2302 = vmatmul.mubr.bf16.vlgmr.msra.gmra.mxu1 %v4236_v4  ;;  %v350_v8 = vpop.f32.mrf.mxu1 }
 0x12b   :  { %2315 = vmatpush1.bf16.msra.mxu0 %v3691_v1  ;;  %2352 = vmatpush1.bf16.msra.mxu1 %v3694_v2  ;;  %v351_v11 = vadd.f32 %v350_v8, %v140_v3  ;;  %v3750_v1 = vld [vmem:[#allocation7 + $0xfc] ss:$20 sps:$4 sm:$0xff]   ;;  %v3745_v2 = vld [vmem:[#allocation7 + $0x6e0] ss:$20 sps:$4 sm:$0xff]   ;;  %v3748_v3 = vld [vmem:[#allocation7 + $0xf8] ss:$20 sps:$4 sm:$0xff]  }
 0x12c   :  { %2316 = vmatprep.subr.bf16.mxu0 %v3699_v5  ;;  %2353 = vmatprep.subr.bf16.mxu1 %v3702_v6  ;;  %v352_v14 = vpop.f32.mrf.mxu1  ;;  %v3753_v5 = vld [vmem:[#allocation7 + $0x6bc] ss:$20 sps:$4 sm:$0xff]   ;;  %v3756_v6 = vld [vmem:[#allocation7 + $0xd4] ss:$20 sps:$4 sm:$0xff]   ;;  %v3751_v8 = vld [vmem:[#allocation7 + $0x6b8] ss:$20 sps:$4 sm:$0xff]  }
 0x12d   :  { %v400_v15 = vmax.f32 %v351_v11, 0.0  ;;  %2383 = vmatprep.mubr.bf16.mxu1 %v4121_v0  ;;  %v3759_v11 = vld [vmem:[#allocation7 + $0x694] ss:$20 sps:$4 sm:$0xff]  }
 0x12e   :  { %v353_v16 = vpop.f32.mrf.mxu1  ;;  %v3760_v14 = vld [vmem:[#allocation7 + $0xa8] ss:$20 sps:$4 sm:$0xff]  }
 0x12f   :  { %2317 = vmatpush1.bf16.msra.mxu0 %v3697_v9  ;;  %2354 = vmatpush1.bf16.msra.mxu1 %v3700_v10  ;;  %v4243_v19 = vpack.c.bf16 %v400_v15, %v400_v15  ;;  %v3754_v9 = vld [vmem:[#allocation7 + $0xd0] ss:$20 sps:$4 sm:$0xff]   ;;  %v135_v10 = vsub.s32 4, %v4206_v29  ;;  %v3765_v16 = vld [vmem:[#allocation7 + $0x66c] ss:$20 sps:$4 sm:$0xff]  }
 0x130   :  { %2318 = vmatprep.subr.bf16.mxu0 %v3705_v12  ;;  %2355 = vmatprep.subr.bf16.mxu1 %v3708_v13  ;;  %v389_v22 = vpop.f32.mrf.mxu1  ;;  %v3762_v12 = vld [vmem:[#allocation7 + $0xac] ss:$20 sps:$4 sm:$0xff]   ;;  %v3757_v13 = vld [vmem:[#allocation7 + $0x690] ss:$20 sps:$4 sm:$0xff]  }
 0x131   :  { %2342 = vmatprep.mubr.bf16.mxu0 %v4243_v19  ;;  %v390_v48 = vadd.f32 %v389_v22, %v144_v42  ;;  %v136_v15 = vrot.slane %v4209_v31, %v135_v10  ;;  %v3771_v22 = vld [vmem:[#allocation7 + $0x644] ss:$20 sps:$4 sm:$0xff]   ;;  %v3777_v31 = vld [vmem:[#allocation7 + $0x34] ss:$20 sps:$4 sm:$0xff]  }
 0x132   :  { %v3502_v23 = vpop.f32.mrf.mxu1  ;;  %v3792_v42 = vld [vmem:[#allocation7 + $0x354] ss:$20 sps:$4 sm:$0xff]  }
 0x133   :  { %2319 = vmatpush1.bf16.msra.mxu0 %v3703_v17  ;;  %2356 = vmatpush1.bf16.msra.mxu1 %v3706_v18  ;;  %v401_v54 = vmax.f32 %v390_v48, 0.0  ;;  %v3768_v17 = vld [vmem:[#allocation7 + $0x84] ss:$20 sps:$4 sm:$0xff]   ;;  %v3763_v18 = vld [vmem:[#allocation7 + $0x668] ss:$20 sps:$4 sm:$0xff]  }
 0x134   :  { %2320 = vmatprep.subr.bf16.mxu0 %v3711_v20  ;;  %2357 = vmatprep.subr.bf16.mxu1 %v3714_v21  ;;  %v392_v28 = vpop.f32.mrf.mxu1  ;;  %v3766_v20 = vld [vmem:[#allocation7 + $0x80] ss:$20 sps:$4 sm:$0xff]   ;;  %v349_v21 = vadd.f32 %v4238_v7, %v136_v15  ;;  %v3774_v23 = vld [vmem:[#allocation7 + $0x5c] ss:$20 sps:$4 sm:$0xff]   ;;  %v3793_v48 = vld [vmem:[#allocation7 + $0x238] ss:$20 sps:$4 sm:$0xff]  }
 0x135   :  { %v4248_v59 = vpack.c.bf16 %v401_v54, %v401_v54  ;;  %v3775_v28 = vld [vmem:[#allocation7 + $0x30] ss:$20 sps:$4 sm:$0xff]   ;;  %v3783_v7 = vld [vmem:[#allocation7 + $0xc] ss:$20 sps:$4 sm:$0xff]   ;;  %v3829_v15 = vld [vmem:[#allocation7 + $0x148] ss:$20 sps:$4 sm:$0xff]  }
 0x136   :  { %v3503_v35 = vpop.f32.mrf.mxu1  ;;  %v3802_v54 = vld [vmem:[#allocation7 + $0x300] ss:$20 sps:$4 sm:$0xff]  }
 0x137   :  { %2321 = vmatpush1.bf16.msra.mxu0 %v3709_v24  ;;  %2358 = vmatpush1.bf16.msra.mxu1 %v3712_v25  ;;  %v3769_v24 = vld [vmem:[#allocation7 + $0x640] ss:$20 sps:$4 sm:$0xff]   ;;  %v3772_v25 = vld [vmem:[#allocation7 + $0x58] ss:$20 sps:$4 sm:$0xff]  }
 0x138   :  { %2322 = vmatprep.subr.bf16.mxu0 %v3717_v26  ;;  %2359 = vmatprep.subr.bf16.mxu1 %v3720_v27  ;;  %v399_v26 = vmax.f32 %v349_v21, 0.0  ;;  %v3780_v27 = vld [vmem:[#allocation7 + $0x3a4] ss:$20 sps:$4 sm:$0xff]   ;;  %v3838_v21 = vld [vmem:[#allocation7 + $0x620] ss:$20 sps:$4 sm:$0xff]  }
 0x13a   :  { %v4257_v35 = vpack.c.bf16 %v399_v26, %v399_v26  ;;  %v3849_v26 = vld [vmem:[#allocation7 + $0x444] ss:$20 sps:$4 sm:$0xff]  }
 0x13b   :  { %2323 = vmatpush1.bf16.msra.mxu0 %v3715_v36  ;;  %2360 = vmatpush1.bf16.msra.mxu1 %v3718_v37  ;;  %v3786_v36 = vld [vmem:[#allocation7 + $0x37c] ss:$20 sps:$4 sm:$0xff]  }
 0x13c   :  { %2324 = vmatprep.subr.bf16.mxu0 %v3723_v39  ;;  %2361 = vmatprep.subr.bf16.mxu1 %v3726_v40  ;;  %v3781_v37 = vld [vmem:[#allocation7 + $0x8] ss:$20 sps:$4 sm:$0xff]   ;;  %v3784_v39 = vld [vmem:[#allocation7 + $0x378] ss:$20 sps:$4 sm:$0xff]  }
 0x13d   :  { %v3789_v40 = vld [vmem:[#allocation7 + $0x264] ss:$20 sps:$4 sm:$0xff]  }
 0x13f   :  { %2325 = vmatpush1.bf16.msra.mxu0 %v3721_v43  ;;  %2362 = vmatpush1.bf16.msra.mxu1 %v3724_v44  ;;  %v3787_v43 = vld [vmem:[#allocation7 + $0x260] ss:$20 sps:$4 sm:$0xff]   ;;  %v3790_v44 = vld [vmem:[#allocation7 + $0x350] ss:$20 sps:$4 sm:$0xff]  }
 0x140   :  { %2326 = vmatprep.subr.bf16.mxu0 %v3729_v45  ;;  %2363 = vmatprep.subr.bf16.mxu1 %v3732_v46  ;;  %v3795_v45 = vld [vmem:[#allocation7 + $0x23c] ss:$20 sps:$4 sm:$0xff]   ;;  %v3798_v46 = vld [vmem:[#allocation7 + $0x32c] ss:$20 sps:$4 sm:$0xff]  }
 0x143   :  { %2327 = vmatpush2.bf16.msra.mxu0 %v3727_v49  ;;  %2364 = vmatpush1.bf16.msra.mxu1 %v3730_v51  ;;  %v3796_v49 = vld [vmem:[#allocation7 + $0x328] ss:$20 sps:$4 sm:$0xff]  }
 0x144   :  { %2328 = vmatprep.subr.bf16.mxu0 %v3735_v52  ;;  %2365 = vmatprep.subr.bf16.mxu1 %v3738_v53  ;;  %v3801_v51 = vld [vmem:[#allocation7 + $0x214] ss:$20 sps:$4 sm:$0xff]   ;;  %v3804_v52 = vld [vmem:[#allocation7 + $0x304] ss:$20 sps:$4 sm:$0xff]  }
 0x145   :  { %v3799_v53 = vld [vmem:[#allocation7 + $0x210] ss:$20 sps:$4 sm:$0xff]  }
 0x147   :  { %2329 = vmatpush2.bf16.msra.mxu0 %v3733_v55  ;;  %2366 = vmatpush1.bf16.msra.mxu1 %v3736_v56  ;;  %v3807_v55 = vld [vmem:[#allocation7 + $0x1ec] ss:$20 sps:$4 sm:$0xff]   ;;  %v3810_v56 = vld [vmem:[#allocation7 + $0x2dc] ss:$20 sps:$4 sm:$0xff]  }
 0x148   :  { %2330 = vmatprep.subr.bf16.mxu0 %v3741_v57  ;;  %2392 = vmatprep.subr.bf16.mxu1 %v3744_v58  ;;  %v3805_v57 = vld [vmem:[#allocation7 + $0x1e8] ss:$20 sps:$4 sm:$0xff]   ;;  %v3808_v58 = vld [vmem:[#allocation7 + $0x2d8] ss:$20 sps:$4 sm:$0xff]  }
 0x14a   :  { %2384 = vmatmul.mubr.bf16.vlgmr.msra.gmra.mxu1 %v4248_v59 }
 0x14b   :  { %2331 = vmatpush2.bf16.msra.mxu0 %v3739_v60  ;;  %2393 = vmatpush1.bf16.msra.mxu1 %v3742_v61  ;;  %v3813_v60 = vld [vmem:[#allocation7 + $0x1c4] ss:$20 sps:$4 sm:$0xff]   ;;  %v3816_v61 = vld [vmem:[#allocation7 + $0x2b4] ss:$20 sps:$4 sm:$0xff]  }
 0x14c   :  { %2424 = vmatprep.mubr.bf16.mxu1 %v4223_v47  ;;  %2332 = vmatprep.subr.bf16.mxu0 %v3747_v62  ;;  %v3811_v62 = vld [vmem:[#allocation7 + $0x1c0] ss:$20 sps:$4 sm:$0xff]  }
 0x14d   :  { %2394 = vmatprep.subr.bf16.mxu1 %v3750_v1  ;;  %v3814_v1 = vld [vmem:[#allocation7 + $0x2b0] ss:$20 sps:$4 sm:$0xff]  }
 0x14f   :  { %2333 = vmatpush2.bf16.msra.mxu0 %v3745_v2  ;;  %2395 = vmatpush1.bf16.msra.mxu1 %v3748_v3  ;;  %v3819_v2 = vld [vmem:[#allocation7 + $0x19c] ss:$20 sps:$4 sm:$0xff]   ;;  %v3822_v3 = vld [vmem:[#allocation7 + $0x28c] ss:$20 sps:$4 sm:$0xff]  }
 0x150   :  { %2334 = vmatprep.subr.bf16.mxu0 %v3753_v5  ;;  %2396 = vmatprep.subr.bf16.mxu1 %v3756_v6  ;;  %v3817_v5 = vld [vmem:[#allocation7 + $0x198] ss:$20 sps:$4 sm:$0xff]   ;;  %v3820_v6 = vld [vmem:[#allocation7 + $0x288] ss:$20 sps:$4 sm:$0xff]  }
 0x153   :  { %2335 = vmatpush2.bf16.msra.mxu0 %v3751_v8  ;;  %2397 = vmatpush1.bf16.msra.mxu1 %v3754_v9  ;;  %v3825_v8 = vld [vmem:[#allocation7 + $0x174] ss:$20 sps:$4 sm:$0xff]   ;;  %v3828_v9 = vld [vmem:[#allocation7 + $0x4e4] ss:$20 sps:$4 sm:$0xff]  }
 0x154   :  { %2336 = vmatprep.subr.bf16.mxu0 %v3759_v11  ;;  %2398 = vmatprep.subr.bf16.mxu1 %v3762_v12  ;;  %v3823_v11 = vld [vmem:[#allocation7 + $0x170] ss:$20 sps:$4 sm:$0xff]   ;;  %v3826_v12 = vld [vmem:[#allocation7 + $0x4e0] ss:$20 sps:$4 sm:$0xff]  }
 0x157   :  { %2337 = vmatpush2.bf16.msra.mxu0 %v3757_v13  ;;  %2399 = vmatpush1.bf16.msra.mxu1 %v3760_v14  ;;  %v3831_v13 = vld [vmem:[#allocation7 + $0x14c] ss:$20 sps:$4 sm:$0xff]   ;;  %v3834_v14 = vld [vmem:[#allocation7 + $0x4bc] ss:$20 sps:$4 sm:$0xff]  }
 0x158   :  { %2338 = vmatprep.subr.bf16.mxu0 %v3765_v16  ;;  %2400 = vmatprep.subr.bf16.mxu1 %v3768_v17  ;;  %v3832_v16 = vld [vmem:[#allocation7 + $0x4b8] ss:$20 sps:$4 sm:$0xff]   ;;  %v3837_v17 = vld [vmem:[#allocation7 + $0x494] ss:$20 sps:$4 sm:$0xff]  }
 0x15b   :  { %2339 = vmatpush2.bf16.msra.mxu0 %v3763_v18  ;;  %2401 = vmatpush1.bf16.msra.mxu1 %v3766_v20  ;;  %v3840_v18 = vld [vmem:[#allocation7 + $0x624] ss:$20 sps:$4 sm:$0xff]  }
 0x15c   :  { %2340 = vmatprep.subr.bf16.mxu0 %v3771_v22  ;;  %2402 = vmatprep.subr.bf16.mxu1 %v3774_v23  ;;  %v3835_v20 = vld [vmem:[#allocation7 + $0x490] ss:$20 sps:$4 sm:$0xff]   ;;  %v3843_v22 = vld [vmem:[#allocation7 + $0x46c] ss:$20 sps:$4 sm:$0xff]  }
 0x15d   :  { %v3846_v23 = vld [vmem:[#allocation7 + $0x5fc] ss:$20 sps:$4 sm:$0xff]  }
 0x15f   :  { %2341 = vmatpush2.bf16.msra.mxu0 %v3769_v24  ;;  %2403 = vmatpush1.bf16.msra.mxu1 %v3772_v25  ;;  %v3841_v24 = vld [vmem:[#allocation7 + $0x468] ss:$20 sps:$4 sm:$0xff]   ;;  %v3844_v25 = vld [vmem:[#allocation7 + $0x5f8] ss:$20 sps:$4 sm:$0xff]  }
 0x160   :  { %2404 = vmatprep.subr.bf16.mxu1 %v3777_v31  ;;  %2433 = vmatprep.subr.bf16.mxu0 %v3780_v27  ;;  %v3852_v31 = vld [vmem:[#allocation7 + $0x5d4] ss:$20 sps:$4 sm:$0xff]  }
 0x161   :  { %v3847_v27 = vld [vmem:[#allocation7 + $0x440] ss:$20 sps:$4 sm:$0xff]  }
 0x162   :  { %2343 = vmatmul.mubr.bf16.vlgmr.msra.gmra.mxu0 %v4257_v35 }
 0x163   :  { %2405 = vmatpush1.bf16.msra.mxu1 %v3775_v28  ;;  %2434 = vmatpush1.bf16.msra.mxu0 %v3778_v34  ;;  %v3850_v28 = vld [vmem:[#allocation7 + $0x5d0] ss:$20 sps:$4 sm:$0xff]  }
 0x164   :  { %2465 = vmatprep.mubr.bf16.mxu0 %v4233_v63  ;;  %2406 = vmatprep.subr.bf16.mxu1 %v3783_v7  ;;  %v3855_v34 = vld [vmem:[#allocation7 + $0x41c] ss:$20 sps:$4 sm:$0xff]   ;;  %v3858_v7 = vld [vmem:[#allocation7 + $0x5ac] ss:$20 sps:$4 sm:$0xff]  }
 0x165   :  { %2435 = vmatprep.subr.bf16.mxu0 %v3786_v36  ;;  %v3853_v36 = vld [vmem:[#allocation7 + $0x418] ss:$20 sps:$4 sm:$0xff]  }
 0x167   :  { %2407 = vmatpush1.bf16.msra.mxu1 %v3781_v37  ;;  %2436 = vmatpush1.bf16.msra.mxu0 %v3784_v39  ;;  %v3856_v37 = vld [vmem:[#allocation7 + $0x5a8] ss:$20 sps:$4 sm:$0xff]  }
 0x168   :  { %2408 = vmatprep.subr.bf16.mxu1 %v3789_v40  ;;  %2437 = vmatprep.subr.bf16.mxu0 %v3792_v42  ;;  %v3861_v39 = vld [vmem:[#allocation7 + $0x3f4] ss:$20 sps:$4 sm:$0xff]   ;;  %v3864_v40 = vld [vmem:[#allocation7 + $0x584] ss:$20 sps:$4 sm:$0xff]  }
 0x169   :  { %v3859_v42 = vld [vmem:[#allocation7 + $0x3f0] ss:$20 sps:$4 sm:$0xff]  }
 0x16b   :  { %2409 = vmatpush2.bf16.msra.mxu1 %v3787_v43  ;;  %2438 = vmatpush1.bf16.msra.mxu0 %v3790_v44  ;;  %v3862_v43 = vld [vmem:[#allocation7 + $0x580] ss:$20 sps:$4 sm:$0xff]  }
 0x16c   :  { %2410 = vmatprep.subr.bf16.mxu1 %v3795_v45  ;;  %2439 = vmatprep.subr.bf16.mxu0 %v3798_v46  ;;  %v3867_v44 = vld [vmem:[#allocation7 + $0x3cc] ss:$20 sps:$4 sm:$0xff]   ;;  %v3870_v45 = vld [vmem:[#allocation7 + $0x55c] ss:$20 sps:$4 sm:$0xff]  }
 0x16d   :  { %v3865_v46 = vld [vmem:[#allocation7 + $0x3c8] ss:$20 sps:$4 sm:$0xff]  }
 0x16f   :  { %2411 = vmatpush2.bf16.msra.mxu1 %v3793_v48  ;;  %2440 = vmatpush1.bf16.msra.mxu0 %v3796_v49  ;;  %v3868_v48 = vld [vmem:[#allocation7 + $0x558] ss:$20 sps:$4 sm:$0xff]   ;;  %v3873_v49 = vld [vmem:[#allocation7 + $0x534] ss:$20 sps:$4 sm:$0xff]  }
 0x170   :  { %2412 = vmatprep.subr.bf16.mxu1 %v3801_v51  ;;  %2441 = vmatprep.subr.bf16.mxu0 %v3804_v52  ;;  %v3876_v51 = vld [vmem:[#allocation7 + $0x8a4] ss:$20 sps:$4 sm:$0xff]  }
 0x171   :  { %v3871_v52 = vld [vmem:[#allocation7 + $0x530] ss:$20 sps:$4 sm:$0xff]  }
 0x173   :  { %2413 = vmatpush2.bf16.msra.mxu1 %v3799_v53  ;;  %2442 = vmatpush1.bf16.msra.mxu0 %v3802_v54  ;;  %v3874_v53 = vld [vmem:[#allocation7 + $0x8a0] ss:$20 sps:$4 sm:$0xff]  }
 0x174   :  { %2414 = vmatprep.subr.bf16.mxu1 %v3807_v55  ;;  %2443 = vmatprep.subr.bf16.mxu0 %v3810_v56  ;;  %v3879_v54 = vld [vmem:[#allocation7 + $0x50c] ss:$20 sps:$4 sm:$0xff]   ;;  %v3882_v55 = vld [vmem:[#allocation7 + $0x87c] ss:$20 sps:$4 sm:$0xff]  }
 0x175   :  { %v3877_v56 = vld [vmem:[#allocation7 + $0x508] ss:$20 sps:$4 sm:$0xff]  }
 0x177   :  { %2415 = vmatpush2.bf16.msra.mxu1 %v3805_v57  ;;  %2444 = vmatpush1.bf16.msra.mxu0 %v3808_v58  ;;  %v3880_v57 = vld [vmem:[#allocation7 + $0x878] ss:$20 sps:$4 sm:$0xff]  }
 0x178   :  { %2416 = vmatprep.subr.bf16.mxu1 %v3813_v60  ;;  %2445 = vmatprep.subr.bf16.mxu0 %v3816_v61  ;;  %v3885_v58 = vld [vmem:[#allocation7 + $0x764] ss:$20 sps:$4 sm:$0xff]   ;;  %v3888_v60 = vld [vmem:[#allocation7 + $0x854] ss:$20 sps:$4 sm:$0xff]  }
 0x179   :  { %v3883_v61 = vld [vmem:[#allocation7 + $0x760] ss:$20 sps:$4 sm:$0xff]  }
 0x17b   :  { %2417 = vmatpush2.bf16.msra.mxu1 %v3811_v62  ;;  %2446 = vmatpush1.bf16.msra.mxu0 %v3814_v1  ;;  %v3886_v62 = vld [vmem:[#allocation7 + $0x850] ss:$20 sps:$4 sm:$0xff]  }
 0x17c   :  { %2418 = vmatprep.subr.bf16.mxu1 %v3819_v2  ;;  %2447 = vmatprep.subr.bf16.mxu0 %v3822_v3  ;;  %v3891_v1 = vld [vmem:[#allocation7 + $0x73c] ss:$20 sps:$4 sm:$0xff]   ;;  %v3894_v2 = vld [vmem:[#allocation7 + $0x82c] ss:$20 sps:$4 sm:$0xff]  }
 0x17d   :  { %v3889_v3 = vld [vmem:[#allocation7 + $0x738] ss:$20 sps:$4 sm:$0xff]  }
 0x17f   :  { %2419 = vmatpush2.bf16.msra.mxu1 %v3817_v5  ;;  %2448 = vmatpush1.bf16.msra.mxu0 %v3820_v6  ;;  %v3892_v5 = vld [vmem:[#allocation7 + $0x828] ss:$20 sps:$4 sm:$0xff]  }
 0x180   :  { %2420 = vmatprep.subr.bf16.mxu1 %v3825_v8  ;;  %2449 = vmatprep.subr.bf16.mxu0 %v3828_v9  ;;  %v3897_v6 = vld [vmem:[#allocation7 + $0x714] ss:$20 sps:$4 sm:$0xff]   ;;  %v3900_v8 = vld [vmem:[#allocation7 + $0x804] ss:$20 sps:$4 sm:$0xff]  }
 0x181   :  { %v3895_v9 = vld [vmem:[#allocation7 + $0x710] ss:$20 sps:$4 sm:$0xff]  }
 0x183   :  { %2421 = vmatpush2.bf16.msra.mxu1 %v3823_v11  ;;  %2450 = vmatpush2.bf16.msra.mxu0 %v3826_v12  ;;  %v3903_v11 = vld [vmem:[#allocation7 + $0x6ec] ss:$20 sps:$4 sm:$0xff]   ;;  %v3906_v12 = vld [vmem:[#allocation7 + $0x7dc] ss:$20 sps:$4 sm:$0xff]  }
 0x184   :  { %2422 = vmatprep.subr.bf16.mxu1 %v3831_v13  ;;  %2451 = vmatprep.subr.bf16.mxu0 %v3834_v14  ;;  %v3901_v13 = vld [vmem:[#allocation7 + $0x6e8] ss:$20 sps:$4 sm:$0xff]   ;;  %v3904_v14 = vld [vmem:[#allocation7 + $0x7d8] ss:$20 sps:$4 sm:$0xff]  }
 0x187   :  { %2423 = vmatpush2.bf16.msra.mxu1 %v3829_v15  ;;  %2452 = vmatpush2.bf16.msra.mxu0 %v3832_v16  ;;  %v3909_v15 = vld [vmem:[#allocation7 + $0x6c4] ss:$20 sps:$4 sm:$0xff]   ;;  %v3912_v16 = vld [vmem:[#allocation7 + $0x7b4] ss:$20 sps:$4 sm:$0xff]  }
 0x188   :  { %2453 = vmatprep.subr.bf16.mxu0 %v3837_v17  ;;  %2474 = vmatprep.subr.bf16.mxu1 %v3840_v18  ;;  %v3907_v17 = vld [vmem:[#allocation7 + $0x6c0] ss:$20 sps:$4 sm:$0xff]   ;;  %v3910_v18 = vld [vmem:[#allocation7 + $0x7b0] ss:$20 sps:$4 sm:$0xff]  }
 0x18a   :  { %2425 = vmatmul.mubr.bf16.vlgmr.msra.gmra.mxu1 %v4228_v50 }
 0x18b   :  { %2454 = vmatpush2.bf16.msra.mxu0 %v3835_v20  ;;  %2475 = vmatpush1.bf16.msra.mxu1 %v3838_v21  ;;  %v3915_v20 = vld [vmem:[#allocation7 + $0x69c] ss:$20 sps:$4 sm:$0xff]   ;;  %v3918_v21 = vld [vmem:[#allocation7 + $0x78c] ss:$20 sps:$4 sm:$0xff]  }
 0x18c   :  { %2506 = vmatprep.mubr.bf16.mxu1 %v4243_v19  ;;  %2455 = vmatprep.subr.bf16.mxu0 %v3843_v22  ;;  %v3913_v22 = vld [vmem:[#allocation7 + $0x698] ss:$20 sps:$4 sm:$0xff]  }
 0x18d   :  { %2476 = vmatprep.subr.bf16.mxu1 %v3846_v23  ;;  %v3916_v23 = vld [vmem:[#allocation7 + $0x788] ss:$20 sps:$4 sm:$0xff]  }
 0x18f   :  { %2456 = vmatpush2.bf16.msra.mxu0 %v3841_v24  ;;  %2477 = vmatpush1.bf16.msra.mxu1 %v3844_v25  ;;  %v3921_v24 = vld [vmem:[#allocation7 + $0x674] ss:$20 sps:$4 sm:$0xff]  }
 0x190   :  { %2457 = vmatprep.subr.bf16.mxu0 %v3849_v26  ;;  %2478 = vmatprep.subr.bf16.mxu1 %v3852_v31  ;;  %v3922_v25 = vld [vmem:[#allocation7 + $0x268] ss:$20 sps:$4 sm:$0xff]   ;;  %v3919_v26 = vld [vmem:[#allocation7 + $0x670] ss:$20 sps:$4 sm:$0xff]  }
 0x191   :  { %v3923_v31 = vld [vmem:[#allocation7 + $0x128] ss:$20 sps:$4 sm:$0xff]  }
 0x193   :  { %2458 = vmatpush2.bf16.msra.mxu0 %v3847_v27  ;;  %2479 = vmatpush1.bf16.msra.mxu1 %v3850_v28  ;;  %v3926_v27 = vld [vmem:[#allocation7 + $0x64c] ss:$20 sps:$4 sm:$0xff]  }
 0x194   :  { %2459 = vmatprep.subr.bf16.mxu0 %v3855_v34  ;;  %2480 = vmatprep.subr.bf16.mxu1 %v3858_v7  ;;  %v3927_v28 = vld [vmem:[#allocation7 + $0x240] ss:$20 sps:$4 sm:$0xff]   ;;  %v3924_v34 = vld [vmem:[#allocation7 + $0x648] ss:$20 sps:$4 sm:$0xff]  }
 0x195   :  { %v3928_v7 = vld [vmem:[#allocation7 + $0x100] ss:$20 sps:$4 sm:$0xff]  }
 0x197   :  { %2460 = vmatpush2.bf16.msra.mxu0 %v3853_v36  ;;  %2481 = vmatpush1.bf16.msra.mxu1 %v3856_v37  ;;  %v3929_v36 = vld [vmem:[#allocation7 + $0x218] ss:$20 sps:$4 sm:$0xff]   ;;  %v3930_v37 = vld [vmem:[#allocation7 + $0x4e8] ss:$20 sps:$4 sm:$0xff]  }
 0x198   :  { %2461 = vmatprep.subr.bf16.mxu0 %v3861_v39  ;;  %2482 = vmatprep.subr.bf16.mxu1 %v3864_v40  ;;  %v3931_v39 = vld [vmem:[#allocation7 + $0xd8] ss:$20 sps:$4 sm:$0xff]   ;;  %v3932_v40 = vld [vmem:[#allocation7 + $0x3a8] ss:$20 sps:$4 sm:$0xff]  }
 0x19b   :  { %2462 = vmatpush2.bf16.msra.mxu0 %v3859_v42  ;;  %2483 = vmatpush1.bf16.msra.mxu1 %v3862_v43  ;;  %v3933_v42 = vld [vmem:[#allocation7 + $0x1f0] ss:$20 sps:$4 sm:$0xff]   ;;  %v3934_v43 = vld [vmem:[#allocation7 + $0x4c0] ss:$20 sps:$4 sm:$0xff]  }
 0x19c   :  { %2463 = vmatprep.subr.bf16.mxu0 %v3867_v44  ;;  %2484 = vmatprep.subr.bf16.mxu1 %v3870_v45  ;;  %v3935_v44 = vld [vmem:[#allocation7 + $0xb0] ss:$20 sps:$4 sm:$0xff]   ;;  %v3936_v45 = vld [vmem:[#allocation7 + $0x380] ss:$20 sps:$4 sm:$0xff]  }
 0x19f   :  { %2464 = vmatpush2.bf16.msra.mxu0 %v3865_v46  ;;  %2485 = vmatpush1.bf16.msra.mxu1 %v3868_v48  ;;  %v3938_v46 = vld [vmem:[#allocation7 + $0x498] ss:$20 sps:$4 sm:$0xff]   ;;  %v3939_v48 = vld [vmem:[#allocation7 + $0x88] ss:$20 sps:$4 sm:$0xff]  }
 0x1a0   :  { %2486 = vmatprep.subr.bf16.mxu1 %v3873_v49  ;;  %2515 = vmatprep.subr.bf16.mxu0 %v3876_v51  ;;  %v3940_v49 = vld [vmem:[#allocation7 + $0x358] ss:$20 sps:$4 sm:$0xff]   ;;  %v3941_v51 = vld [vmem:[#allocation7 + $0x1a0] ss:$20 sps:$4 sm:$0xff]  }
 0x1a2   :  { %2466 = vmatmul.mubr.bf16.vlgmr.msra.gmra.mxu0 %v4236_v4 }
 0x1a3   :  { %2487 = vmatpush1.bf16.msra.mxu1 %v3871_v52  ;;  %2516 = vmatpush1.bf16.msra.mxu0 %v3874_v53  ;;  %v3942_v52 = vld [vmem:[#allocation7 + $0x470] ss:$20 sps:$4 sm:$0xff]   ;;  %v3943_v53 = vld [vmem:[#allocation7 + $0x60] ss:$20 sps:$4 sm:$0xff]  }
 0x1a4   :  { %2488 = vmatprep.subr.bf16.mxu1 %v3879_v54  ;;  %2517 = vmatprep.subr.bf16.mxu0 %v3882_v55  ;;  %v3944_v54 = vld [vmem:[#allocation7 + $0x330] ss:$20 sps:$4 sm:$0xff]   ;;  %v3945_v55 = vld [vmem:[#allocation7 + $0x178] ss:$20 sps:$4 sm:$0xff]  }
 0x1a5   :  { %2547 = vmatprep.mubr.bf16.mxu0 %v4121_v0  ;;  %v3898_v0 = vld [vmem:[#allocation7 + $0x800] ss:$20 sps:$4 sm:$0xff]  }
 0x1a7   :  { %2489 = vmatpush1.bf16.msra.mxu1 %v3877_v56  ;;  %2518 = vmatpush1.bf16.msra.mxu0 %v3880_v57  ;;  %v3947_v56 = vld [vmem:[#allocation7 + $0x38] ss:$20 sps:$4 sm:$0xff]   ;;  %v3948_v57 = vld [vmem:[#allocation7 + $0x308] ss:$20 sps:$4 sm:$0xff]  }
 0x1a8   :  { %2490 = vmatprep.subr.bf16.mxu1 %v3885_v58  ;;  %2519 = vmatprep.subr.bf16.mxu0 %v3888_v60  ;;  %v3949_v58 = vld [vmem:[#allocation7 + $0x150] ss:$20 sps:$4 sm:$0xff]   ;;  %v3950_v60 = vld [vmem:[#allocation7 + $0x420] ss:$20 sps:$4 sm:$0xff]  }
 0x1ab   :  { %2491 = vmatpush2.bf16.msra.mxu1 %v3883_v61  ;;  %2520 = vmatpush1.bf16.msra.mxu0 %v3886_v62  ;;  %v3951_v61 = vld [vmem:[#allocation7 + $0x10] ss:$20 sps:$4 sm:$0xff]   ;;  %v3952_v62 = vld [vmem:[#allocation7 + $0x2e0] ss:$20 sps:$4 sm:$0xff]  }
 0x1ac   :  { %2492 = vmatprep.subr.bf16.mxu1 %v3891_v1  ;;  %2521 = vmatprep.subr.bf16.mxu0 %v3894_v2  ;;  %v3953_v1 = vld [vmem:[#allocation7 + $0x3f8] ss:$20 sps:$4 sm:$0xff]   ;;  %v3954_v2 = vld [vmem:[#allocation7 + $0x768] ss:$20 sps:$4 sm:$0xff]  }
 0x1af   :  { %2493 = vmatpush2.bf16.msra.mxu1 %v3889_v3  ;;  %2522 = vmatpush1.bf16.msra.mxu0 %v3892_v5  ;;  %v3955_v3 = vld [vmem:[#allocation7 + $0x2b8] ss:$20 sps:$4 sm:$0xff]   ;;  %v3956_v5 = vld [vmem:[#allocation7 + $0x628] ss:$20 sps:$4 sm:$0xff]  }
 0x1b0   :  { %2494 = vmatprep.subr.bf16.mxu1 %v3897_v6  ;;  %2523 = vmatprep.subr.bf16.mxu0 %v3900_v8  ;;  %v3957_v6 = vld [vmem:[#allocation7 + $0x3d0] ss:$20 sps:$4 sm:$0xff]   ;;  %v3958_v8 = vld [vmem:[#allocation7 + $0x740] ss:$20 sps:$4 sm:$0xff]  }
 0x1b3   :  { %2495 = vmatpush2.bf16.msra.mxu1 %v3895_v9  ;;  %2524 = vmatpush1.bf16.msra.mxu0 %v3898_v0  ;;  %v3959_v0 = vld [vmem:[#allocation7 + $0x290] ss:$20 sps:$4 sm:$0xff]  }
 0x1b4   :  { %2496 = vmatprep.subr.bf16.mxu1 %v3903_v11  ;;  %2525 = vmatprep.subr.bf16.mxu0 %v3906_v12  ;;  %v3960_v11 = vld [vmem:[#allocation7 + $0x600] ss:$20 sps:$4 sm:$0xff]  }
 0x1b7   :  { %2497 = vmatpush2.bf16.msra.mxu1 %v3901_v13  ;;  %2526 = vmatpush1.bf16.msra.mxu0 %v3904_v14  ;;  %v3961_v13 = vld [vmem:[#allocation7 + $0x718] ss:$20 sps:$4 sm:$0xff]  }
 0x1b8   :  { %2498 = vmatprep.subr.bf16.mxu1 %v3909_v15  ;;  %2527 = vmatprep.subr.bf16.mxu0 %v3912_v16  ;;  %v3962_v15 = vld [vmem:[#allocation7 + $0x5d8] ss:$20 sps:$4 sm:$0xff]   ;;  %v3963_v16 = vld [vmem:[#allocation7 + $0x8a8] ss:$20 sps:$4 sm:$0xff]  }
 0x1bb   :  { %2499 = vmatpush2.bf16.msra.mxu1 %v3907_v17  ;;  %2528 = vmatpush1.bf16.msra.mxu0 %v3910_v18 }
 0x1bc   :  { %2500 = vmatprep.subr.bf16.mxu1 %v3915_v20  ;;  %2529 = vmatprep.subr.bf16.mxu0 %v3918_v21  ;;  %v3966_v20 = vld [vmem:[#allocation7 + $0x880] ss:$20 sps:$4 sm:$0xff]  }
 0x1bf   :  { %2501 = vmatpush2.bf16.msra.mxu1 %v3913_v22  ;;  %2530 = vmatpush1.bf16.msra.mxu0 %v3916_v23  ;;  %v3967_v22 = vld [vmem:[#allocation7 + $0x6c8] ss:$20 sps:$4 sm:$0xff]  }
 0x1c0   :  { %2502 = vmatprep.subr.bf16.mxu1 %v3921_v24  ;;  %3334 = vmatprep.subr.bf16.mxu0 %v3922_v25  ;;  %v3968_v24 = vld [vmem:[#allocation7 + $0x588] ss:$20 sps:$4 sm:$0xff]  }
 0x1c2   :  { %2548 = vmatmul.mubr.bf16.vlgmr.msra.gmra.mxu0 %v4248_v59 }
 0x1c3   :  { %2503 = vmatpush2.bf16.msra.mxu1 %v3919_v26  ;;  %3335 = vmatpush3.bf16.msra.mxu0 %v3923_v31  ;;  %v3970_v26 = vld [vmem:[#allocation7 + $0x6a0] ss:$20 sps:$4 sm:$0xff]  }
 0x1c4   :  { %2588 = vmatprep.mubr.bf16.mxu0 %v4223_v47  ;;  %2504 = vmatprep.subr.bf16.mxu1 %v3926_v27  ;;  %v3937_v47 = vld [vmem:[#allocation7 + $0x1c8] ss:$20 sps:$4 sm:$0xff]   ;;  %v3971_v31 = vld [vmem:[#allocation7 + $0x560] ss:$20 sps:$4 sm:$0xff]   ;;  %v3972_v27 = vld [vmem:[#allocation7 + $0x830] ss:$20 sps:$4 sm:$0xff]  }
 0x1c5   :  { %3336 = vmatprep.subr.bf16.mxu0 %v3927_v28  ;;  %v3973_v28 = vld [vmem:[#allocation7 + $0x678] ss:$20 sps:$4 sm:$0xff]  }
 0x1c7   :  { %2505 = vmatpush2.bf16.msra.mxu1 %v3924_v34  ;;  %3337 = vmatpush3.bf16.msra.mxu0 %v3928_v7  ;;  %v3974_v34 = vld [vmem:[#allocation7 + $0x538] ss:$20 sps:$4 sm:$0xff]   ;;  %v3975_v7 = vld [vmem:[#allocation7 + $0x808] ss:$20 sps:$4 sm:$0xff]  }
 0x1c8   :  { %3338 = vmatprep.subr.bf16.mxu0 %v3929_v36  ;;  %3356 = vmatprep.subr.bf16.mxu1 %v3930_v37  ;;  %v3976_v36 = vld [vmem:[#allocation7 + $0x650] ss:$20 sps:$4 sm:$0xff]  }
 0x1c9   :  { %v3977_v37 = vld [vmem:[#allocation7 + $0x510] ss:$20 sps:$4 sm:$0xff]  }
 0x1ca   :  { %2507 = vmatmul.mubr.bf16.vlgmr.msra.gmra.mxu1 %v4257_v35 }
 0x1cb   :  { %3339 = vmatpush3.bf16.msra.mxu0 %v3931_v39  ;;  %3357 = vmatpush3.bf16.msra.mxu1 %v3932_v40  ;;  %v3978_v39 = vld [vmem:[#allocation7 + $0x7e0] ss:$20 sps:$4 sm:$0xff]  }
 0x1cc   :  { %2628 = vmatprep.mubr.bf16.mxu1 %v4233_v63  ;;  %3340 = vmatprep.subr.bf16.mxu0 %v3933_v42  ;;  %v3946_v63 = vld [vmem:[#allocation7 + $0x448] ss:$20 sps:$4 sm:$0xff]   ;;  %v2752_v40 = vld [vmem:[%s4585_s5 + $0xf8] sm:$0xff] }
 0x1cd   :  { %3358 = vmatprep.subr.bf16.mxu1 %v3934_v43  ;;  %v3979_v42 = vld [vmem:[#allocation7 + $0x7b8] ss:$20 sps:$4 sm:$0xff]  }
 0x1ce   :  { %v2736_v43 = vld [vmem:[%s4585_s5 + $0x78] sm:$0xff] }
 0x1cf   :  { %3341 = vmatpush3.bf16.msra.mxu0 %v3935_v44  ;;  %3359 = vmatpush3.bf16.msra.mxu1 %v3936_v45  ;;  %v2751_v44 = vld [vmem:[%s4585_s5 + $0xf0] sm:$0xff] }
 0x1d0   :  { %3342 = vmatprep.subr.bf16.mxu0 %v3937_v47  ;;  %3360 = vmatprep.subr.bf16.mxu1 %v3938_v46  ;;  %v2735_v45 = vld [vmem:[%s4585_s5 + $0x70] sm:$0xff]  ;;  %v2750_v46 = vld [vmem:[%s4585_s5 + $0xe8] sm:$0xff] }
 0x1d1   :  { %v3980_v47 = vld [vmem:[#allocation7 + $0x790] ss:$20 sps:$4 sm:$0xff]  }
 0x1d3   :  { %3343 = vmatpush3.bf16.msra.mxu0 %v3939_v48  ;;  %3361 = vmatpush3.bf16.msra.mxu1 %v3940_v49  ;;  %v2734_v48 = vld [vmem:[%s4585_s5 + $0x68] sm:$0xff]  ;;  %v2784_v49 = vld [vmem:[%s4585_s5 + $0x1f8] sm:$0xff] }
 0x1d4   :  { %3344 = vmatprep.subr.bf16.mxu0 %v3941_v51  ;;  %3362 = vmatprep.subr.bf16.mxu1 %v3942_v52  ;;  %v2733_v51 = vld [vmem:[%s4585_s5 + $0x60] sm:$0xff]  ;;  %v2748_v52 = vld [vmem:[%s4585_s5 + $0xd8] sm:$0xff] }
 0x1d7   :  { %3345 = vmatpush3.bf16.msra.mxu0 %v3943_v53  ;;  %3363 = vmatpush3.bf16.msra.mxu1 %v3944_v54  ;;  %v2732_v53 = vld [vmem:[%s4585_s5 + $0x58] sm:$0xff] }
 0x1d8   :  { %3346 = vmatprep.subr.bf16.mxu0 %v3945_v55  ;;  %3364 = vmatprep.subr.bf16.mxu1 %v3946_v63  ;;  %v2768_v54 = vld [vmem:[%s4585_s5 + $0x178] sm:$0xff]  ;;  %v2747_v55 = vld [vmem:[%s4585_s5 + $0xd0] sm:$0xff] }
 0x1d9   :  { %v2783_v63 = vld [vmem:[%s4585_s5 + $0x1f0] sm:$0xff] }
 0x1db   :  { %3347 = vmatpush3.bf16.msra.mxu0 %v3947_v56  ;;  %3365 = vmatpush3.bf16.msra.mxu1 %v3948_v57  ;;  %v2731_v57 = vld [vmem:[%s4585_s5 + $0x50] sm:$0xff] }
 0x1dc   :  { %3348 = vmatprep.subr.bf16.mxu0 %v3949_v58  ;;  %3366 = vmatprep.subr.bf16.mxu1 %v3950_v60  ;;  %v2767_v58 = vld [vmem:[%s4585_s5 + $0x170] sm:$0xff]  ;;  %v2746_v60 = vld [vmem:[%s4585_s5 + $0xc8] sm:$0xff] }
 0x1df   :  { %3349 = vmatpush3.bf16.msra.mxu0 %v3951_v61  ;;  %3367 = vmatpush3.bf16.msra.mxu1 %v3952_v62  ;;  %v2782_v61 = vld [vmem:[%s4585_s5 + $0x1e8] sm:$0xff] }
 0x1e0   :  { %3368 = vmatprep.subr.bf16.mxu1 %v3953_v1  ;;  %3378 = vmatprep.subr.bf16.mxu0 %v3954_v2  ;;  %v2730_v62 = vld [vmem:[%s4585_s5 + $0x48] sm:$0xff]  ;;  %v2745_v2 = vld [vmem:[%s4585_s5 + $0xc0] sm:$0xff] }
 0x1e1   :  { %v2766_v1 = vld [vmem:[%s4585_s5 + $0x168] sm:$0xff] }
 0x1e2   :  { %2589 = vmatmul.mubr.bf16.vlgmr.msra.gmra.mxu0 %v4228_v50  ;;  %v4270_v9 = vpop.f32.mrf.mxu0  ;;  %v3964_v50 = vld [vmem:[#allocation7 + $0x6f0] ss:$20 sps:$4 sm:$0xff]  }
 0x1e3   :  { %3369 = vmatpush3.bf16.msra.mxu1 %v3955_v3  ;;  %3379 = vmatpush3.bf16.msra.mxu0 %v3956_v5  ;;  %v2781_v3 = vld [vmem:[%s4585_s5 + $0x1e0] sm:$0xff] }
 0x1e4   :  { %2668 = vmatprep.mubr.bf16.mxu0 %v4243_v19  ;;  %v4273_v12 = vpop.f32.mrf.mxu0  ;;  %3370 = vmatprep.subr.bf16.mxu1 %v3957_v6  ;;  %v3965_v19 = vld [vmem:[#allocation7 + $0x5b0] ss:$20 sps:$4 sm:$0xff]   ;;  %v2729_v6 = vld [vmem:[%s4585_s5 + $0x40] sm:$0xff] }
 0x1e5   :  { %3380 = vmatprep.subr.bf16.mxu0 %v3958_v8  ;;  %v2765_v8 = vld [vmem:[%s4585_s5 + $0x160] sm:$0xff] }
 0x1e6   :  { %v2266_v14 = vpop.f32.mrf.mxu0 }
 0x1e7   :  { %3371 = vmatpush3.bf16.msra.mxu1 %v3959_v0  ;;  %3381 = vmatpush3.bf16.msra.mxu0 %v3960_v11  ;;  %v2744_v0 = vld [vmem:[%s4585_s5 + $0xb8] sm:$0xff] }
 0x1e8   :  { %v2267_v17 = vpop.f32.mrf.mxu0  ;;  %3382 = vmatprep.subr.bf16.mxu0 %v3961_v13  ;;  %3504 = vmatprep.subr.bf16.mxu1 %v4122_v33  ;;  %v2780_v11 = vld [vmem:[%s4585_s5 + $0x1d8] sm:$0xff] }
 0x1e9   :  { %v2728_v14 = vld [vmem:[%s4585_s5 + $0x38] sm:$0xff]  ;;  %v2779_v17 = vld [vmem:[%s4585_s5 + $0x1d0] sm:$0xff] }
 0x1ea   :  { %2629 = vmatmul.mubr.bf16.vlgmr.msra.gmra.mxu1 %v4236_v4  ;;  %v4277_v18 = vpop.f32.mrf.mxu1  ;;  %v3969_v4 = vld [vmem:[#allocation7 + $0x858] ss:$20 sps:$4 sm:$0xff]  }
 0x1eb   :  { %3383 = vmatpush3.bf16.msra.mxu0 %v3962_v15  ;;  %3505 = vmatpush3.bf16.msra.mxu1 %v3963_v16  ;;  %v2764_v15 = vld [vmem:[%s4585_s5 + $0x158] sm:$0xff]  ;;  %v2743_v16 = vld [vmem:[%s4585_s5 + $0xb0] sm:$0xff] }
 0x1ec   :  { %v4279_v21 = vpop.f32.mrf.mxu1  ;;  %3384 = vmatprep.subr.bf16.mxu0 %v3964_v50  ;;  %3506 = vmatprep.subr.bf16.mxu1 %v4122_v33  ;;  %v2727_v50 = vld [vmem:[%s4585_s5 + $0x30] sm:$0xff] }
 0x1ed   :  { %3520 = vmatprep.mubr.msk.bf16.mxu1 %vm4123_vm2, %v4122_v33 }
 0x1ee   :  { %v2307_v23 = vpop.f32.mrf.mxu1 }
 0x1ef   :  { %3385 = vmatpush3.bf16.msra.mxu0 %v3965_v19  ;;  %3507 = vmatpush3.bf16.msra.mxu1 %v3966_v20  ;;  %v2763_v19 = vld [vmem:[%s4585_s5 + $0x150] sm:$0xff]  ;;  %v2742_v20 = vld [vmem:[%s4585_s5 + $0xa8] sm:$0xff] }
 0x1f0   :  { %v2308_v25 = vpop.f32.mrf.mxu1  ;;  %3386 = vmatprep.subr.bf16.mxu0 %v3967_v22  ;;  %3508 = vmatprep.subr.bf16.mxu1 %v4122_v33  ;;  %v2778_v22 = vld [vmem:[%s4585_s5 + $0x1c8] sm:$0xff] }
 0x1f1   :  { %v2726_v23 = vld [vmem:[%s4585_s5 + $0x28] sm:$0xff]  ;;  %v2777_v25 = vld [vmem:[%s4585_s5 + $0x1c0] sm:$0xff] }
 0x1f3   :  { %3387 = vmatpush3.bf16.msra.mxu0 %v3968_v24  ;;  %3509 = vmatpush3.bf16.msra.mxu1 %v3969_v4  ;;  %v2762_v24 = vld [vmem:[%s4585_s5 + $0x148] sm:$0xff]  ;;  %v2741_v4 = vld [vmem:[%s4585_s5 + $0xa0] sm:$0xff] }
 0x1f4   :  { %3388 = vmatprep.subr.bf16.mxu0 %v3970_v26  ;;  %3510 = vmatprep.subr.bf16.mxu1 %v4122_v33  ;;  %v2725_v26 = vld [vmem:[%s4585_s5 + $0x20] sm:$0xff] }
 0x1f7   :  { %3389 = vmatpush3.bf16.msra.mxu0 %v3971_v31  ;;  %3511 = vmatpush3.bf16.msra.mxu1 %v3972_v27  ;;  %v2761_v31 = vld [vmem:[%s4585_s5 + $0x140] sm:$0xff]  ;;  %v2740_v27 = vld [vmem:[%s4585_s5 + $0x98] sm:$0xff] }
 0x1f8   :  { %3390 = vmatprep.subr.bf16.mxu0 %v3973_v28  ;;  %3512 = vmatprep.subr.bf16.mxu1 %v4122_v33  ;;  %v2776_v28 = vld [vmem:[%s4585_s5 + $0x1b8] sm:$0xff] }
 0x1fb   :  { %3391 = vmatpush3.bf16.msra.mxu0 %v3974_v34  ;;  %3513 = vmatpush3.bf16.msra.mxu1 %v3975_v7  ;;  %v4422_v34 = vld [vmem:[#allocation9] sm:$0x1f]  ;;  %v2724_v7 = vld [vmem:[%s4585_s5 + $0x18] sm:$0xff] }
 0x1fc   :  { %3392 = vmatprep.subr.bf16.mxu0 %v3976_v36  ;;  %3514 = vmatprep.subr.bf16.mxu1 %v4122_v33  ;;  %v2760_v36 = vld [vmem:[%s4585_s5 + $0x138] sm:$0xff] }
 0x1ff   :  { %3393 = vmatpush3.bf16.msra.mxu0 %v3977_v37  ;;  %3515 = vmatpush3.bf16.msra.mxu1 %v3978_v39  ;;  %v2739_v37 = vld [vmem:[%s4585_s5 + $0x90] sm:$0xff] }
 0x200   :  { %3516 = vmatprep.subr.bf16.mxu1 %v4122_v33  ;;  %3409 = vmatprep.subr.mxu0 %v2752_v40  ;;  %v2775_v39 = vld [vmem:[%s4585_s5 + $0x1b0] sm:$0xff] }
 0x201   :  { %v2723_v40 = vld [vmem:[%s4585_s5 + $0x10] sm:$0xff] }
 0x202   :  { %2669 = vmatmul.mubr.bf16.vlgmr.msra.gmra.mxu0 %v4257_v35  ;;  %v2749_v35 = vld [vmem:[%s4585_s5 + $0xe0] sm:$0xff] }
 0x203   :  { %3517 = vmatpush3.bf16.msra.mxu1 %v3979_v42  ;;  %3410 = vmatpush3.msra.mxu0 %v2736_v43  ;;  %v2759_v42 = vld [vmem:[%s4585_s5 + $0x130] sm:$0xff]  ;;  %v750_v43 = vrot.slane %v4422_v34, %v119_v30  ;;  %v2758_v30 = vld [vmem:[%s4585_s5 + $0x128] sm:$0xff] }
 0x204   :  { %3518 = vmatprep.subr.bf16.mxu1 %v4122_v33  ;;  %3411 = vmatprep.subr.mxu0 %v2751_v44  ;;  %v2738_v44 = vld [vmem:[%s4585_s5 + $0x88] sm:$0xff] }
 0x205   :  { %3412 = vmatpush3.msra.mxu0 %v2735_v45  ;;  %v2774_v45 = vld [vmem:[%s4585_s5 + $0x1a8] sm:$0xff] }
 0x206   :  { %3413 = vmatprep.subr.mxu0 %v2750_v46  ;;  %v754_v46 = vrot.slane %v4422_v34, %v123_v32  ;;  %v2757_v32 = vld [vmem:[%s4585_s5 + $0x120] sm:$0xff] }
 0x207   :  { %3519 = vmatpush3.bf16.msra.mxu1 %v3980_v47  ;;  %3414 = vmatpush3.msra.mxu0 %v2734_v48  ;;  %v2722_v47 = vld [vmem:[%s4585_s5 + $0x8] sm:$0xff]  ;;  %v2737_v48 = vld [vmem:[%s4585_s5 + $0x80] sm:$0xff] }
 0x208   :  { %3415 = vmatprep.subr.mxu0 %v2749_v35  ;;  %3444 = vmatprep.subr.mxu1 %v2784_v49  ;;  %v2773_v35 = vld [vmem:[%s4585_s5 + $0x1a0] sm:$0xff] }
 0x209   :  { %3416 = vmatpush3.msra.mxu0 %v2733_v51  ;;  %v2721_v49 = vld [vmem:[%s4585_s5] sm:$0xff]  ;;  %v2263_v51 = vadd.f32 %v4270_v9, %v750_v43  ;;  %v2771_v9 = vld [vmem:[%s4585_s5 + $0x190] sm:$0xff] }
 0x20a   :  { %v4333_v56 = vpop.f32.mrf.mxu1  ;;  %3521 = vmatmul.mubr.bf16.vlgmr.msra.gmra.mxu1 %v4248_v59  ;;  %3417 = vmatprep.subr.mxu0 %v2748_v52  ;;  %v2772_v52 = vld [vmem:[%s4585_s5 + $0x198] sm:$0xff] }
 0x20b   :  { %3418 = vmatpush3.msra.mxu0 %v2732_v53  ;;  %3445 = vmatpush3.msra.mxu1 %v2768_v54  ;;  %v2756_v53 = vld [vmem:[%s4585_s5 + $0x118] sm:$0xff]  ;;  %v2265_v54 = vadd.f32 %v4273_v12, %v754_v46  ;;  %v2770_v12 = vld [vmem:[%s4585_s5 + $0x188] sm:$0xff] }
 0x20c   :  { %v4348_v59 = vpop.f32.mrf.mxu1  ;;  %3419 = vmatprep.subr.mxu0 %v2747_v55  ;;  %3446 = vmatprep.subr.mxu1 %v2783_v63  ;;  %v2304_v55 = vadd.f32 %v4277_v18, %v2263_v51 }
 0x20d   :  { %3420 = vmatpush3.msra.mxu0 %v2731_v57  ;;  %3447 = vmatpush3.msra.mxu1 %v2767_v58  ;;  %v2755_v57 = vld [vmem:[%s4585_s5 + $0x110] sm:$0xff]  ;;  %v2306_v58 = vadd.f32 %v4279_v21, %v2265_v54 }
 0x20e   :  { %v2389_v5 = vpop.f32.mrf.mxu1  ;;  %3421 = vmatprep.subr.mxu0 %v2746_v60  ;;  %3448 = vmatprep.subr.mxu1 %v2782_v61  ;;  %v2754_v61 = vld [vmem:[%s4585_s5 + $0x108] sm:$0xff] }
 0x20f   :  { %3422 = vmatpush3.msra.mxu0 %v2730_v62  ;;  %3449 = vmatpush3.msra.mxu1 %v2766_v1  ;;  %v2769_v1 = vld [vmem:[%s4585_s5 + $0x180] sm:$0xff] }
 0x210   :  { %v2390_v13 = vpop.f32.mrf.mxu1  ;;  %3423 = vmatprep.subr.mxu0 %v2745_v2  ;;  %3450 = vmatprep.subr.mxu1 %v2781_v3  ;;  %v2753_v3 = vld [vmem:[%s4585_s5 + $0x100] sm:$0xff] }
 0x211   :  { %3424 = vmatpush3.msra.mxu0 %v2729_v6  ;;  %3451 = vmatpush3.msra.mxu1 %v2765_v8  ;;  %v2797_v13 = vld [vmem:[%s4585_s5 + $0x260] sm:$0xff] }
 0x212   :  { %3425 = vmatprep.subr.mxu0 %v2744_v0  ;;  %3452 = vmatprep.subr.mxu1 %v2780_v11  ;;  %v2799_v11 = vld [vmem:[%s4585_s5 + $0x270] sm:$0xff] }
 0x213   :  { %3426 = vmatpush3.msra.mxu0 %v2728_v14  ;;  %3453 = vmatpush3.msra.mxu1 %v2764_v15  ;;  %v2796_v14 = vld [vmem:[%s4585_s5 + $0x258] sm:$0xff]  ;;  %v2795_v15 = vld [vmem:[%s4585_s5 + $0x250] sm:$0xff] }
 0x214   :  { %3427 = vmatprep.subr.mxu0 %v2743_v16  ;;  %3454 = vmatprep.subr.mxu1 %v2779_v17  ;;  %v2794_v16 = vld [vmem:[%s4585_s5 + $0x248] sm:$0xff]  ;;  %v2793_v17 = vld [vmem:[%s4585_s5 + $0x240] sm:$0xff] }
 0x215   :  { %3428 = vmatpush3.msra.mxu0 %v2727_v50  ;;  %3455 = vmatpush3.msra.mxu1 %v2763_v19  ;;  %v2792_v50 = vld [vmem:[%s4585_s5 + $0x238] sm:$0xff]  ;;  %v2791_v19 = vld [vmem:[%s4585_s5 + $0x230] sm:$0xff] }
 0x216   :  { %3429 = vmatprep.subr.mxu0 %v2742_v20  ;;  %3456 = vmatprep.subr.mxu1 %v2778_v22  ;;  %v2790_v20 = vld [vmem:[%s4585_s5 + $0x228] sm:$0xff]  ;;  %v2789_v22 = vld [vmem:[%s4585_s5 + $0x220] sm:$0xff] }
 0x217   :  { %3430 = vmatpush3.msra.mxu0 %v2726_v23  ;;  %3457 = vmatpush3.msra.mxu1 %v2762_v24  ;;  %v2788_v23 = vld [vmem:[%s4585_s5 + $0x218] sm:$0xff] }
 0x218   :  { %3431 = vmatprep.subr.mxu0 %v2741_v4  ;;  %3458 = vmatprep.subr.mxu1 %v2777_v25  ;;  %v2787_v4 = vld [vmem:[%s4585_s5 + $0x210] sm:$0xff] }
 0x219   :  { %3432 = vmatpush3.msra.mxu0 %v2725_v26  ;;  %3459 = vmatpush3.msra.mxu1 %v2761_v31  ;;  %v2786_v26 = vld [vmem:[%s4585_s5 + $0x208] sm:$0xff] }
 0x21a   :  { %3433 = vmatprep.subr.mxu0 %v2740_v27  ;;  %3460 = vmatprep.subr.mxu1 %v2776_v28  ;;  %v2785_v27 = vld [vmem:[%s4585_s5 + $0x200] sm:$0xff] }
 0x21b   :  { %3434 = vmatpush3.msra.mxu0 %v2724_v7  ;;  %3461 = vmatpush3.msra.mxu1 %v2760_v36 }
 0x21c   :  { %3435 = vmatprep.subr.mxu0 %v2739_v37  ;;  %3462 = vmatprep.subr.mxu1 %v2775_v39 }
 0x21d   :  { %3436 = vmatpush3.msra.mxu0 %v2723_v40  ;;  %3463 = vmatpush3.msra.mxu1 %v2759_v42  ;;  %v758_v42 = vrot.slane %v4422_v34, %v127_v38 }
 0x21e   :  { %3437 = vmatprep.subr.mxu0 %v2738_v44  ;;  %3464 = vmatprep.subr.mxu1 %v2774_v45 }
 0x21f   :  { %3438 = vmatpush3.msra.mxu0 %v2722_v47  ;;  %3465 = vmatpush3.msra.mxu1 %v2758_v30 }
 0x220   :  { %3439 = vmatprep.subr.mxu0 %v2737_v48  ;;  %3466 = vmatprep.subr.mxu1 %v2773_v35 }
 0x221   :  { %3440 = vmatpush3.msra.mxu0 %v2721_v49  ;;  %3467 = vmatpush3.msra.mxu1 %v2757_v32 }
 0x222   :  { %v2344_v63 = vpop.f32.mrf.mxu0  ;;  %3468 = vmatprep.subr.mxu1 %v2772_v52  ;;  %3524 = vmatprep.subr.mxu0 %v4122_v33 }
 0x223   :  { %v2345_v60 = vadd.f32 %v2344_v63, %v2304_v55  ;;  %3469 = vmatpush3.msra.mxu1 %v2756_v53 }
 0x224   :  { %v2346_v18 = vpop.f32.mrf.mxu0  ;;  %3470 = vmatprep.subr.mxu1 %v2771_v9 }
 0x225   :  { %v2347_v62 = vadd.f32 %v2346_v18, %v2306_v58  ;;  %3471 = vmatpush3.msra.mxu1 %v2755_v57  ;;  %v2386_v21 = vadd.f32 %v4333_v56, %v2345_v60  ;;  %v2800_v56 = vld [vmem:[%s4585_s5 + $0x278] sm:$0xff] }
 0x226   :  { %v2348_v2 = vpop.f32.mrf.mxu0  ;;  %3472 = vmatprep.subr.mxu1 %v2770_v12 }
 0x227   :  { %v2388_v5 = vadd.f32 %v4348_v59, %v2347_v62  ;;  %3473 = vmatpush3.msra.mxu1 %v2754_v61  ;;  %v2716_v0 = vmax.f32 %v2386_v21, 0.0  ;;  %v2798_v59 = vld [vmem:[%s4585_s5 + $0x268] sm:$0xff]  ;;  %v766_v62 = vrot.slane %v4422_v34, %v135_v10 }
 0x228   :  { %v2349_v6 = vpop.f32.mrf.mxu0  ;;  %3474 = vmatprep.subr.mxu1 %v2769_v1 }
 0x229   :  { %v2717_v8 = vmax.f32 %v2388_v5, 0.0  ;;  %3475 = vmatpush3.msra.mxu1 %v2753_v3 }
 0x22b   :  { %2872 = vmatprep.mubr.f32.mxu0 %v2717_v8 }
 0x22c   :  { %2873 = vmatmul.mubr.f32.vlgmr.msra.gmra.mxu0 %v2716_v0 }
 0x22d   :  { %3556 = vmatprep.mubr.msk.f32.mxu0 %vm4123_vm2, %v4122_v33  ;;  %3525 = vmatpush3.msra.mxu0 %v2800_v56 }
 0x22e   :  { %3526 = vmatprep.subr.mxu0 %v4122_v33 }
 0x22f   :  { %3527 = vmatpush3.msra.mxu0 %v2799_v11 }
 0x230   :  { %3528 = vmatprep.subr.mxu0 %v4122_v33 }
 0x231   :  { %3529 = vmatpush3.msra.mxu0 %v2798_v59 }
 0x232   :  { %3530 = vmatprep.subr.mxu0 %v4122_v33 }
 0x233   :  { %3531 = vmatpush3.msra.mxu0 %v2797_v13 }
 0x234   :  { %3532 = vmatprep.subr.mxu0 %v4122_v33 }
 0x235   :  { %3533 = vmatpush3.msra.mxu0 %v2796_v14 }
 0x236   :  { %3534 = vmatprep.subr.mxu0 %v4122_v33 }
 0x237   :  { %3535 = vmatpush3.msra.mxu0 %v2795_v15 }
 0x238   :  { %3536 = vmatprep.subr.mxu0 %v4122_v33 }
 0x239   :  { %3537 = vmatpush3.msra.mxu0 %v2794_v16 }
 0x23a   :  { %3538 = vmatprep.subr.mxu0 %v4122_v33 }
 0x23b   :  { %3539 = vmatpush3.msra.mxu0 %v2793_v17 }
 0x23c   :  { %3540 = vmatprep.subr.mxu0 %v4122_v33 }
 0x23d   :  { %3541 = vmatpush3.msra.mxu0 %v2792_v50 }
 0x23e   :  { %3542 = vmatprep.subr.mxu0 %v4122_v33 }
 0x23f   :  { %3543 = vmatpush3.msra.mxu0 %v2791_v19 }
 0x240   :  { %3544 = vmatprep.subr.mxu0 %v4122_v33 }
 0x241   :  { %3545 = vmatpush3.msra.mxu0 %v2790_v20  ;;  %v3330_v20 = vld [vmem:[#allocation10] ss:$0 sm:$0xff] }
 0x242   :  { %3546 = vmatprep.subr.mxu0 %v4122_v33 }
 0x243   :  { %3547 = vmatpush3.msra.mxu0 %v2789_v22 }
 0x244   :  { %3548 = vmatprep.subr.mxu0 %v4122_v33 }
 0x245   :  { %3549 = vmatpush3.msra.mxu0 %v2788_v23 }
 0x246   :  { %3550 = vmatprep.subr.mxu0 %v4122_v33 }
 0x247   :  { %3551 = vmatpush3.msra.mxu0 %v2787_v4 }
 0x248   :  { %3552 = vmatprep.subr.mxu0 %v4122_v33 }
 0x249   :  { %3553 = vmatpush3.msra.mxu0 %v2786_v26 }
 0x24a   :  { %v2426_v24 = vpop.f32.mrf.mxu1  ;;  %3554 = vmatprep.subr.mxu0 %v4122_v33  ;;  %v762_v33 = vrot.slane %v4422_v34, %v131_v41 }
 0x24b   :  { %3555 = vmatpush3.msra.mxu0 %v2785_v27  ;;  %v2427_v45 = vadd.f32 %v2426_v24, %v758_v42 }
 0x24c   :  { %v2428_v25 = vpop.f32.mrf.mxu1 }
 0x24d   :  { %v2429_v30 = vadd.f32 %v2428_v25, %v762_v33 }
 0x24e   :  { %v2430_v31 = vpop.f32.mrf.mxu1 }
 0x250   :  { %v2431_v28 = vpop.f32.mrf.mxu1 }
 0x262   :  { %v2467_v7 = vpop.f32.mrf.mxu0 }
 0x263   :  { %v2468_v46 = vadd.f32 %v2467_v7, %v2427_v45 }
 0x264   :  { %v2469_v36 = vpop.f32.mrf.mxu0 }
 0x265   :  { %v2470_v35 = vadd.f32 %v2469_v36, %v2429_v30 }
 0x266   :  { %v2471_v37 = vpop.f32.mrf.mxu0 }
 0x268   :  { %v2472_v39 = vpop.f32.mrf.mxu0 }
 0x282   :  { %v2549_v40 = vpop.f32.mrf.mxu0 }
 0x284   :  { %v2551_v43 = vpop.f32.mrf.mxu0 }
 0x286   :  { %v2553_v44 = vpop.f32.mrf.mxu0 }
 0x288   :  { %v2554_v47 = vpop.f32.mrf.mxu0 }
 0x28a   :  { %v2508_v48 = vpop.f32.mrf.mxu1 }
 0x28b   :  { %v2509_v49 = vadd.f32 %v2508_v48, %v2468_v46 }
 0x28c   :  { %v2510_v32 = vpop.f32.mrf.mxu1 }
 0x28d   :  { %v2511_v51 = vadd.f32 %v2510_v32, %v2470_v35  ;;  %v2550_v52 = vadd.f32 %v2549_v40, %v2509_v49 }
 0x28e   :  { %v2512_v53 = vpop.f32.mrf.mxu1 }
 0x28f   :  { %v2552_v54 = vadd.f32 %v2551_v43, %v2511_v51  ;;  %v2718_v9 = vmax.f32 %v2550_v52, 0.0 }
 0x290   :  { %v2513_v55 = vpop.f32.mrf.mxu1 }
 0x291   :  { %v2719_v38 = vmax.f32 %v2552_v54, 0.0 }
 0x293   :  { %2942 = vmatprep.mubr.f32.mxu1 %v2719_v38 }
 0x294   :  { %2943 = vmatmul.mubr.f32.vlgmr.msra.gmra.mxu1 %v2718_v9 }
 0x2a2   :  { %v3350_v63 = vpop.f32.mrf.mxu0 }
 0x2a4   :  { %v3351_v41 = vpop.f32.mrf.mxu0 }
 0x2a5   :  { %v3352_v1 = vadd.f32 %v3351_v41, %v3350_v63 }
 0x2a6   :  { %v3353_v57 = vpop.f32.mrf.mxu0 }
 0x2a7   :  { %v2591_v5 = vadd.f32 %v3352_v1, %v766_v62 }
 0x2a8   :  { %v3354_v58 = vpop.f32.mrf.mxu0 }
 0x2aa   :  { %v3372_v60 = vpop.f32.mrf.mxu1 }
 0x2ac   :  { %v3373_v12 = vpop.f32.mrf.mxu1 }
 0x2ad   :  { %v3374_v2 = vadd.f32 %v3373_v12, %v3372_v60 }
 0x2ae   :  { %v3375_v18 = vpop.f32.mrf.mxu1 }
 0x2af   :  { %v2631_v0 = vadd.f32 %v3374_v2, %v2591_v5 }
 0x2b0   :  { %v3376_v61 = vpop.f32.mrf.mxu1 }
 0x2c2   :  { %v3394_v21 = vpop.f32.mrf.mxu0 }
 0x2c4   :  { %v3395_v3 = vpop.f32.mrf.mxu0 }
 0x2c5   :  { %v3396_v6 = vadd.f32 %v3395_v3, %v3394_v21 }
 0x2c6   :  { %v3397_v8 = vpop.f32.mrf.mxu0 }
 0x2c7   :  { %v2671_v11 = vadd.f32 %v3396_v6, %v2631_v0 }
 0x2c8   :  { %v3398_v56 = vpop.f32.mrf.mxu0 }
 0x2ca   :  { %v2710_v59 = vpop.f32.mrf.mxu1 }
 0x2cb   :  { %v2711_v13 = vadd.f32 %v2710_v59, %v2671_v11 }
 0x2cc   :  { %v3522_v14 = vpop.f32.mrf.mxu1 }
 0x2cd   :  { %v2720_v15 = vmax.f32 %v2711_v13, 0.0 }
 0x2ce   :  { %v2713_v16 = vpop.f32.mrf.mxu1 }
 0x2cf   :  { %3557 = vmatmul.mubr.f32.vlgmr.msra.gmra.mxu0 %v2720_v15 }
 0x2d0   :  { %v3523_v17 = vpop.f32.mrf.mxu1 }
 0x2ec   :  { %v3441_v29 = vpop.f32.mrf.mxu0 }
 0x2ee   :  { %v3442_v10 = vpop.f32.mrf.mxu0 }
 0x2ef   :  { %v3443_v19 = vadd.f32 %v3442_v10, %v3441_v29 }
 0x2f1   :  { %v2875_v23 = vadd.f32 %v3443_v19, %v3330_v20 }
 0x354   :  { %v3476_v50 = vpop.f32.mrf.mxu1 }
 0x356   :  { %v3477_v34 = vpop.f32.mrf.mxu1 }
 0x357   :  { %v3478_v22 = vadd.f32 %v3477_v34, %v3476_v50 }
 0x359   :  { %v2945_v24 = vadd.f32 %v3478_v22, %v2875_v23 }
 0x38f   :  { %v3014_v4 = vpop.f32.mrf.mxu0 }
 0x390   :  { %v3015_v25 = vadd.f32 %v3014_v4, %v2945_v24 }
 0x391   :  { %v3558_v26 = vpop.f32.mrf.mxu0 }
 0x392   :  { %3981 = vtanh.f32 %v3015_v25 }
 0x39f   :  { %v3982_v31 = vpop.eup %3981 }
 0x3a0   :  { %3020 = vst.msk [vmem:[%s4587_s7] sm:$0xff] %vm3019_vm3, %v3982_v31 }
 0x3a1   :  { %3025 = vsyncpa [#allocation3], 1 }
 0x3a2   :  { %3026 = vsyncpa [#allocation5], 1 }
 0x3a3   :  { %3027 = vsyncpa [#allocation8], 1 }
 0x3a4   :  { %3028 = vsyncpa [#allocation11], 1 }

// kernel: tpu_custom_call.1
= control target key start
LH: loop header
LB: loop body
LE: loop exit
PB: predicated region body
PF: predicated region fallthrough
CT: control target
= control target key end

     0   :  { %12 = vsyncpa [#allocation3], 0  ;;  %s4580_s0 = inlined_call_operand.hbm [shape: f32[8,24], index: 0, kind: input, shape index: {}]   ;;  %s4581_s1 = inlined_call_operand.hbm [shape: bf16[24,896], index: 1, kind: input, shape index: {}]   ;;  %s4582_s2 = inlined_call_operand.hbm [shape: f32[1,896], index: 2, kind: input, shape index: {}]   ;;  %s4583_s3 = inlined_call_operand.hbm [shape: bf16[896,640], index: 3, kind: input, shape index: {}]   ;;  %s4584_s4 = inlined_call_operand.hbm [shape: f32[1,640], index: 4, kind: input, shape index: {}]   ;;  %s4585_s5 = inlined_call_operand.vmem [shape: f32[640,2], index: 5, kind: input, shape index: {}]   ;;  %s4586_s6 = inlined_call_operand.hbm [shape: f32[1,2], index: 6, kind: input, shape index: {}]   ;;  %s4587_s7 = inlined_call_operand.vmem [shape: f32[8,2], index: 7, kind: output, shape index: {}]  }
   0x1   :  { %13 = vsyncpa [#allocation5], 0 }
   0x2   :  { %14 = vsyncpa [#allocation8], 0 }
   0x3   :  { %15 = vsyncpa [#allocation11], 0  ;;  %s4111_s24 = smov [#allocation4]  }
   0x4   :  { %s31_s25 = sshll.u32 %s4111_s24, 4  ;;  %s32_s25 = int_to_ptr.vmem [resolvable:$true] %s31_s25 }
   0x5   :  { %s3991_s26 = scalar_lea.vmem %s32_s25, 1344  ;;  %p3996_p1 = scmp.lt.s32.totalorder %s32_s25, %s32_s25 }
   0x6   :  { %p3992_p0 = scmp.ne.s32.totalorder %s32_s25, %s3991_s26  ;;  %p3997_p2 = scmp.lt.s32.totalorder %s3991_s26, %s3991_s26 }
   0x8   :  { %p3998_p3 = por %p3997_p2, %p3996_p1 }
   0xa   :  { %p3999_p4 = pnand %p3998_p3, %p3992_p0 }
   0xc   :  { %4002 = shalt.err (!%p3999_p4)
}
   0xd   :  { %s4112_s27 = smov 448   ;;  %s4113_s28 = smov 28  }
   0xe   :  { %37 = dma.hbm_to_vmem [thread:$0]  %s4581_s1, 1344, %s32_s25, [#allocation5], %s4112_s27, %s4112_s27, %s4113_s28  }
   0xf   :  { %s4114_s8 = smov [#allocation7]  }
  0x10   :  { %s53_s9 = sshll.u32 %s4114_s8, 4  ;;  %s54_s9 = int_to_ptr.vmem [resolvable:$true] %s53_s9 }
  0x11   :  { %s4011_s10 = scalar_lea.vmem %s54_s9, 35840  ;;  %p4016_p6 = scmp.lt.s32.totalorder %s54_s9, %s54_s9 }
  0x12   :  { %p4012_p5 = scmp.ne.s32.totalorder %s54_s9, %s4011_s10  ;;  %p4017_p7 = scmp.lt.s32.totalorder %s4011_s10, %s4011_s10 }
  0x14   :  { %p4018_p8 = por %p4017_p7, %p4016_p6 }
  0x16   :  { %p4019_p9 = pnand %p4018_p8, %p4012_p5 }
  0x18   :  { %4022 = shalt.err (!%p4019_p9)
}
  0x19   :  { %s4115_s11 = smov 320   ;;  %s4116_s12 = smov 20  }
  0x1a   :  { %59 = dma.hbm_to_vmem [thread:$0]  %s4583_s3, 35840, %s54_s9, [#allocation8], %s4115_s11, %s4115_s11, %s4116_s12  }
  0x1b   :  { %s4117_s15 = smov [#allocation2]   ;;  %s4118_s17 = smov [#allocation6]  }
  0x1c   :  { %s22_s16 = sshll.u32 %s4117_s15, 4  ;;  %s44_s1 = sshll.u32 %s4118_s17, 4  ;;  %s23_s16 = int_to_ptr.vmem [resolvable:$true] %s22_s16  ;;  %s45_s1 = int_to_ptr.vmem [resolvable:$true] %s44_s1 }
  0x1d   :  { %s4031_s18 = scalar_lea.vmem %s23_s16, 128  ;;  %p4036_p11 = scmp.lt.s32.totalorder %s23_s16, %s23_s16 }
  0x1e   :  { %p4032_p10 = scmp.ne.s32.totalorder %s23_s16, %s4031_s18  ;;  %p4037_p12 = scmp.lt.s32.totalorder %s4031_s18, %s4031_s18 }
  0x20   :  { %p4038_p13 = por %p4037_p12, %p4036_p11 }
  0x22   :  { %p4039_p0 = pnand %p4038_p13, %p4032_p10 }
  0x24   :  { %4042 = shalt.err (!%p4039_p0)
}
  0x25   :  { %25 = dma.hbm_to_vmem [thread:$0]  %s4580_s0, 128, %s23_s16, [#allocation3]  }
  0x26   :  { %s4051_s21 = scalar_lea.vmem %s45_s1, 112  ;;  %s4055_s3 = scalar_lea.vmem %s45_s1, 128 }
  0x27   :  { %p4052_p1 = scmp.ne.s32.totalorder %s45_s1, %s4051_s21  ;;  %p4056_p2 = scmp.lt.s32.totalorder %s45_s1, %s45_s1 }
  0x28   :  { %p4057_p3 = scmp.lt.s32.totalorder %s4055_s3, %s4051_s21 }
  0x2a   :  { %p4058_p4 = por %p4057_p3, %p4056_p2 }
  0x2c   :  { %p4059_p5 = pnand %p4058_p4, %p4052_p1 }
  0x2e   :  { %4062 = shalt.err (!%p4059_p5)
}
  0x2f   :  { %47 = dma.hbm_to_vmem [thread:$0]  %s4582_s2, 112, %s45_s1, [#allocation5]  }
  0x30   :  { %s4119_s24 = smov [#allocation9]   ;;  %s4120_s26 = smov [#allocation10]  }
  0x31   :  { %s66_s25 = sshll.u32 %s4119_s24, 4  ;;  %s78_s27 = sshll.u32 %s4120_s26, 4  ;;  %s67_s25 = int_to_ptr.vmem [resolvable:$true] %s66_s25  ;;  %s79_s27 = int_to_ptr.vmem [resolvable:$true] %s78_s27 }
  0x32   :  { %s4071_s28 = scalar_lea.vmem %s67_s25, 80  ;;  %s4075_s0 = scalar_lea.vmem %s67_s25, 96 }
  0x33   :  { %p4072_p6 = scmp.ne.s32.totalorder %s67_s25, %s4071_s28  ;;  %p4076_p7 = scmp.lt.s32.totalorder %s67_s25, %s67_s25 }
  0x34   :  { %p4077_p8 = scmp.lt.s32.totalorder %s4075_s0, %s4071_s28 }
  0x36   :  { %p4078_p9 = por %p4077_p8, %p4076_p7 }
  0x38   :  { %p4079_p10 = pnand %p4078_p9, %p4072_p6 }
  0x3a   :  { %4082 = shalt.err (!%p4079_p10)
}
  0x3b   :  { %69 = dma.hbm_to_vmem [thread:$0]  %s4584_s4, 80, %s67_s25, [#allocation8]  }
  0x3c   :  { %s4091_s8 = scalar_lea.vmem %s79_s27, 16  ;;  %s4095_s2 = scalar_lea.vmem %s79_s27, 32 }
  0x3d   :  { %p4092_p11 = scmp.ne.s32.totalorder %s79_s27, %s4091_s8  ;;  %p4096_p12 = scmp.lt.s32.totalorder %s79_s27, %s79_s27 }
  0x3e   :  { %p4097_p13 = scmp.lt.s32.totalorder %s4095_s2, %s4091_s8 }
  0x40   :  { %p4098_p0 = por %p4097_p13, %p4096_p12 }
  0x42   :  { %p4099_p1 = pnand %p4098_p0, %p4092_p11 }
  0x44   :  { %4102 = shalt.err (!%p4099_p1)
}
  0x45   :  { %81 = dma.hbm_to_vmem [thread:$0]  %s4586_s6, 16, %s79_s27, [#allocation11]  }
  0x46   :  { %4103 = dma.done.wait [#allocation3], 128  }
  0x47   :  { %4104 = vsyncadd [#allocation3], 4294967168 }
  0x48   :  { %4105 = dma.done.wait [#allocation5], 1456  }
  0x49   :  { %4106 = vsyncadd [#allocation5], 4294965840 }
  0x4a   :  { %4107 = dma.done.wait [#allocation8], 35920  }
  0x4b   :  { %4108 = vsyncadd [#allocation8], 4294931376 }
  0x4c   :  { %4109 = dma.done.wait [#allocation11], 16  }
  0x4d   :  { %4110 = vsyncadd [#allocation11], 4294967280  ;;  %v4121_v0 = vmov 0   ;;  %v111_v1 = vld [vmem:[#allocation4 + $0x38] sm:$0xff]  ;;  %vm210_vm0 = vcmask 1043456   ;;  %v112_v5 = vld [vmem:[#allocation4 + $0x40] sm:$0xff] }
  0x4e   :  { %264 = vmatprep.mubr.bf16.mxu1 %v4121_v0  ;;  %v3037_v2 = vcombine.high %v111_v1, %v111_v1  ;;  %v3036_v3 = vcombine.low %v111_v1, %v111_v1  ;;  %v3574_v4 = vld [vmem:[#allocation4 + $0x4] ss:$28 sps:$4 sm:$0xff]   ;;  %v101_v8 = vld [vmem:[#allocation2] sm:$0xff]  ;;  %v3039_v9 = vcombine.high %v112_v5, %v112_v5  ;;  %v3038_v10 = vcombine.low %v112_v5, %v112_v5  ;;  %v3581_v12 = vld [vmem:[#allocation4 + $0xc] ss:$28 sps:$4 sm:$0xff]  }
  0x4f   :  { %v3576_v7 = vld [vmem:[#allocation4] ss:$28 sps:$4 sm:$0xff]   ;;  %v4185_v11 = vpack.c.bf16 %v101_v8, %v101_v8  ;;  %v3589_v13 = vld [vmem:[#allocation7 + $0x11c] ss:$20 sps:$4 sm:$0xff]   ;;  %vm206_vm1 = vcmask 195584   ;;  %v4122_v33 = vmov 0.0  }
  0x50   :  { %3043 = vmatprep.subr.msk.bf16.mxu1 %vm210_vm0, %v3037_v2  ;;  %v212_v6 = vsel %vm210_vm0, %v3036_v3, 0  ;;  %v3591_v14 = vld [vmem:[#allocation7 + $0x118] ss:$20 sps:$4 sm:$0xff]   ;;  %v218_v15 = vsel %vm210_vm0, %v3038_v10, 0  ;;  %2228 = vmatprep.subr.bf16.mxu0 %v3589_v13  ;;  %v3592_v17 = vld [vmem:[#allocation7 + $0xf4] ss:$20 sps:$4 sm:$0xff]  }
  0x51   :  { %245 = vmatpush1.bf16.msra.mxu1 %v212_v6  ;;  %v113_v16 = vld [vmem:[#allocation4 + $0x48] sm:$0xff]  ;;  %2229 = vmatpush1.bf16.msra.mxu0 %v3591_v14  ;;  %v3600_v23 = vld [vmem:[#allocation7 + $0xc8] ss:$20 sps:$4 sm:$0xff]   ;;  %v3601_v24 = vld [vmem:[#allocation7 + $0xa4] ss:$20 sps:$4 sm:$0xff]   ;;  %vm4123_vm2 = vmmov 0  }
  0x52   :  { %246 = vmatprep.subr.bf16.mxu1 %v3574_v4  ;;  %v3594_v18 = vld [vmem:[#allocation7 + $0xf0] ss:$20 sps:$4 sm:$0xff]   ;;  %2230 = vmatprep.subr.bf16.mxu0 %v3592_v17  ;;  %v3595_v19 = vld [vmem:[#allocation7 + $0xcc] ss:$20 sps:$4 sm:$0xff]   ;;  %v3041_v21 = vcombine.high %v113_v16, %v113_v16  ;;  %v3040_v22 = vcombine.low %v113_v16, %v113_v16  ;;  %v3586_v26 = vld [vmem:[#allocation4 + $0x14] ss:$28 sps:$4 sm:$0xff]  }
  0x53   :  { %v3579_v20 = vld [vmem:[#allocation4 + $0x8] ss:$28 sps:$4 sm:$0xff]   ;;  %v3606_v27 = vld [vmem:[#allocation7 + $0xa0] ss:$20 sps:$4 sm:$0xff]   ;;  %v3607_v28 = vld [vmem:[#allocation7 + $0x7c] ss:$20 sps:$4 sm:$0xff]  }
  0x54   :  { %v224_v25 = vsel %vm210_vm0, %v3040_v22, 0  ;;  %v3584_v29 = vld [vmem:[#allocation4 + $0x10] ss:$28 sps:$4 sm:$0xff]   ;;  %v3612_v31 = vld [vmem:[#allocation7 + $0x78] ss:$20 sps:$4 sm:$0xff]   ;;  %vm3019_vm3 = vcmask 15360  }
  0x55   :  { %247 = vmatpush1.bf16.msra.mxu1 %v3576_v7  ;;  %2231 = vmatpush1.bf16.msra.mxu0 %v3594_v18  ;;  %v3587_v30 = vld [vmem:[#allocation4 + $0x50] ss:$0 sps:$4 sm:$0xff]   ;;  %v3618_v35 = vld [vmem:[#allocation7 + $0x50] ss:$20 sps:$4 sm:$0xff]   ;;  %v3619_v36 = vld [vmem:[#allocation7 + $0x2c] ss:$20 sps:$4 sm:$0xff]  }
  0x56   :  { %3045 = vmatprep.subr.msk.bf16.mxu1 %vm210_vm0, %v3039_v9  ;;  %2232 = vmatprep.subr.bf16.mxu0 %v3595_v19  ;;  %v3613_v32 = vld [vmem:[#allocation7 + $0x54] ss:$20 sps:$4 sm:$0xff]   ;;  %v230_v34 = vsel %vm210_vm0, %v3587_v30, 0  ;;  %v3588_v37 = vld [vmem:[#allocation4 + $0x18] ss:$28 sps:$4 sm:$0xff]  }
  0x57   :  { %v3599_v38 = vld [vmem:[#allocation7 + $0x39c] ss:$20 sps:$4 sm:$0xff]   ;;  %v3625_v40 = vld [vmem:[#allocation7 + $0x4] ss:$20 sps:$4 sm:$0xff]   ;;  %v3605_v42 = vld [vmem:[#allocation7 + $0x374] ss:$20 sps:$4 sm:$0xff]  }
  0x58   :  { %3044 = vmatmul.mubr.msk.bf16.vlgmr.msra.gmra.mxu1 %vm206_vm1, %v4185_v11  ;;  %v3624_v39 = vld [vmem:[#allocation7 + $0x28] ss:$20 sps:$4 sm:$0xff]   ;;  %v3597_v41 = vld [vmem:[#allocation7 + $0x398] ss:$20 sps:$4 sm:$0xff]   ;;  %v3630_v43 = vld [vmem:[#allocation7] ss:$20 sps:$4 sm:$0xff]  }
  0x59   :  { %286 = vmatpush1.bf16.msra.mxu1 %v218_v15  ;;  %305 = vmatprep.mubr.bf16.mxu1 %v4121_v0  ;;  %v3631_v44 = vld [vmem:[#allocation7 + $0x25c] ss:$20 sps:$4 sm:$0xff]   ;;  %v3611_v46 = vld [vmem:[#allocation7 + $0x34c] ss:$20 sps:$4 sm:$0xff]   ;;  %v3637_v48 = vld [vmem:[#allocation7 + $0x234] ss:$20 sps:$4 sm:$0xff]  }
  0x5a   :  { %287 = vmatprep.subr.bf16.mxu1 %v3581_v12  ;;  %2233 = vmatpush1.bf16.msra.mxu0 %v3600_v23  ;;  %v3603_v45 = vld [vmem:[#allocation7 + $0x370] ss:$20 sps:$4 sm:$0xff]   ;;  %v3636_v47 = vld [vmem:[#allocation7 + $0x258] ss:$20 sps:$4 sm:$0xff]   ;;  %v3609_v49 = vld [vmem:[#allocation7 + $0x348] ss:$20 sps:$4 sm:$0xff]  }
  0x5b   :  { %2234 = vmatprep.subr.bf16.mxu0 %v3601_v24  ;;  %v3617_v50 = vld [vmem:[#allocation7 + $0x324] ss:$20 sps:$4 sm:$0xff]   ;;  %v3643_v52 = vld [vmem:[#allocation7 + $0x20c] ss:$20 sps:$4 sm:$0xff]   ;;  %v3623_v54 = vld [vmem:[#allocation7 + $0x2fc] ss:$20 sps:$4 sm:$0xff]  }
  0x5c   :  { %v3642_v51 = vld [vmem:[#allocation7 + $0x230] ss:$20 sps:$4 sm:$0xff]   ;;  %v3615_v53 = vld [vmem:[#allocation7 + $0x320] ss:$20 sps:$4 sm:$0xff]   ;;  %v3648_v55 = vld [vmem:[#allocation7 + $0x208] ss:$20 sps:$4 sm:$0xff]  }
  0x5d   :  { %288 = vmatpush1.bf16.msra.mxu1 %v3579_v20  ;;  %v3649_v56 = vld [vmem:[#allocation7 + $0x1e4] ss:$20 sps:$4 sm:$0xff]   ;;  %v3629_v58 = vld [vmem:[#allocation7 + $0x2d4] ss:$20 sps:$4 sm:$0xff]   ;;  %v3655_v60 = vld [vmem:[#allocation7 + $0x1bc] ss:$20 sps:$4 sm:$0xff]  }
  0x5e   :  { %3047 = vmatprep.subr.msk.bf16.mxu1 %vm210_vm0, %v3041_v21  ;;  %2235 = vmatpush1.bf16.msra.mxu0 %v3606_v27  ;;  %v3621_v57 = vld [vmem:[#allocation7 + $0x2f8] ss:$20 sps:$4 sm:$0xff]   ;;  %v3654_v59 = vld [vmem:[#allocation7 + $0x1e0] ss:$20 sps:$4 sm:$0xff]   ;;  %v3627_v61 = vld [vmem:[#allocation7 + $0x2d0] ss:$20 sps:$4 sm:$0xff]  }
  0x5f   :  { %2236 = vmatprep.subr.bf16.mxu0 %v3607_v28  ;;  %v3635_v62 = vld [vmem:[#allocation7 + $0x2ac] ss:$20 sps:$4 sm:$0xff]   ;;  %v3661_v1 = vld [vmem:[#allocation7 + $0x194] ss:$20 sps:$4 sm:$0xff]   ;;  %v3641_v3 = vld [vmem:[#allocation7 + $0x284] ss:$20 sps:$4 sm:$0xff]   ;;  %v117_v28 = vlaneseq }
  0x60   :  { %3046 = vmatmul.mubr.msk.bf16.vlgmr.msra.gmra.mxu1 %vm206_vm1, %v4185_v11  ;;  %v3660_v63 = vld [vmem:[#allocation7 + $0x1b8] ss:$20 sps:$4 sm:$0xff]   ;;  %v3633_v2 = vld [vmem:[#allocation7 + $0x2a8] ss:$20 sps:$4 sm:$0xff]   ;;  %v3666_v4 = vld [vmem:[#allocation7 + $0x190] ss:$20 sps:$4 sm:$0xff]  }
  0x61   :  { %327 = vmatpush1.bf16.msra.mxu1 %v224_v25  ;;  %346 = vmatprep.mubr.bf16.mxu1 %v4121_v0  ;;  %v3639_v5 = vld [vmem:[#allocation7 + $0x280] ss:$20 sps:$4 sm:$0xff]   ;;  %v3647_v6 = vld [vmem:[#allocation7 + $0x4dc] ss:$20 sps:$4 sm:$0xff]   ;;  %v3645_v7 = vld [vmem:[#allocation7 + $0x4d8] ss:$20 sps:$4 sm:$0xff]  }
  0x62   :  { %328 = vmatprep.subr.bf16.mxu1 %v3586_v26  ;;  %2237 = vmatpush1.bf16.msra.mxu0 %v3612_v31  ;;  %v3653_v8 = vld [vmem:[#allocation7 + $0x4b4] ss:$20 sps:$4 sm:$0xff]   ;;  %v3651_v9 = vld [vmem:[#allocation7 + $0x4b0] ss:$20 sps:$4 sm:$0xff]   ;;  %v3659_v10 = vld [vmem:[#allocation7 + $0x48c] ss:$20 sps:$4 sm:$0xff]  }
  0x63   :  { %2238 = vmatprep.subr.bf16.mxu0 %v3613_v32  ;;  %v3665_v12 = vld [vmem:[#allocation7 + $0x464] ss:$20 sps:$4 sm:$0xff]   ;;  %v3663_v13 = vld [vmem:[#allocation7 + $0x460] ss:$20 sps:$4 sm:$0xff]   ;;  %v3671_v15 = vld [vmem:[#allocation7 + $0x43c] ss:$20 sps:$4 sm:$0xff]  }
  0x64   :  { %v3667_v14 = vld [vmem:[#allocation7 + $0x16c] ss:$20 sps:$4 sm:$0xff]   ;;  %v3672_v16 = vld [vmem:[#allocation7 + $0x168] ss:$20 sps:$4 sm:$0xff]   ;;  %v3673_v18 = vld [vmem:[#allocation7 + $0x144] ss:$20 sps:$4 sm:$0xff]  }
  0x65   :  { %329 = vmatpush1.bf16.msra.mxu1 %v3584_v29  ;;  %v3669_v17 = vld [vmem:[#allocation7 + $0x438] ss:$20 sps:$4 sm:$0xff]   ;;  %v3677_v19 = vld [vmem:[#allocation7 + $0x414] ss:$20 sps:$4 sm:$0xff]   ;;  %v3684_v21 = vld [vmem:[#allocation7 + $0x61c] ss:$20 sps:$4 sm:$0xff]  }
  0x66   :  { %3496 = vmatprep.subr.bf16.mxu1 %v4122_v33  ;;  %2239 = vmatpush1.bf16.msra.mxu0 %v3618_v35  ;;  %v3678_v20 = vld [vmem:[#allocation7 + $0x140] ss:$20 sps:$4 sm:$0xff]   ;;  %v3675_v22 = vld [vmem:[#allocation7 + $0x410] ss:$20 sps:$4 sm:$0xff]   ;;  %v3679_v24 = vld [vmem:[#allocation7 + $0x3e8] ss:$20 sps:$4 sm:$0xff]  }
  0x67   :  { %2240 = vmatprep.subr.bf16.mxu0 %v3619_v36  ;;  %v3681_v23 = vld [vmem:[#allocation7 + $0x3ec] ss:$20 sps:$4 sm:$0xff]   ;;  %v3687_v25 = vld [vmem:[#allocation7 + $0x3c4] ss:$20 sps:$4 sm:$0xff]   ;;  %v3696_v27 = vld [vmem:[#allocation7 + $0x89c] ss:$20 sps:$4 sm:$0xff]  }
  0x68   :  { %3048 = vmatmul.mubr.msk.bf16.vlgmr.msra.gmra.mxu1 %vm206_vm1, %v4185_v11  ;;  %v3685_v26 = vld [vmem:[#allocation7 + $0x3c0] ss:$20 sps:$4 sm:$0xff]   ;;  %v4206_v29 = vshrl.u32 %v117_v28, 7  ;;  %v4209_v31 = vld [vmem:[#allocation6] sm:$0xff] }
  0x69   :  { %3497 = vmatpush3.bf16.msra.mxu1 %v230_v34  ;;  %3500 = vmatprep.mubr.msk.bf16.mxu1 %vm4123_vm2, %v4122_v33 }
  0x6a   :  { %3498 = vmatprep.subr.bf16.mxu1 %v4122_v33  ;;  %2241 = vmatpush1.bf16.msra.mxu0 %v3624_v39  ;;  %v119_v30 = vsub.s32 0, %v4206_v29  ;;  %v123_v32 = vsub.s32 1, %v4206_v29 }
  0x6b   :  { %2242 = vmatprep.subr.bf16.mxu0 %v3625_v40 }
  0x6c   :  { %v120_v34 = vrot.slane %v4209_v31, %v119_v30  ;;  %v124_v35 = vrot.slane %v4209_v31, %v123_v32 }
  0x6d   :  { %3499 = vmatpush3.bf16.msra.mxu1 %v3588_v37 }
  0x6e   :  { %2269 = vmatprep.subr.bf16.mxu1 %v3599_v38  ;;  %2243 = vmatpush1.bf16.msra.mxu0 %v3630_v43  ;;  %v127_v38 = vsub.s32 2, %v4206_v29 }
  0x6f   :  { %2244 = vmatprep.subr.bf16.mxu0 %v3631_v44 }
  0x70   :  { %3501 = vmatmul.mubr.msk.bf16.vlgmr.msra.gmra.mxu1 %vm206_vm1, %v4185_v11  ;;  %v3657_v11 = vld [vmem:[#allocation7 + $0x488] ss:$20 sps:$4 sm:$0xff]  }
  0x71   :  { %2270 = vmatpush1.bf16.msra.mxu1 %v3597_v41  ;;  %v131_v41 = vsub.s32 3, %v4206_v29 }
  0x72   :  { %2271 = vmatprep.subr.bf16.mxu1 %v3605_v42  ;;  %2245 = vmatpush2.bf16.msra.mxu0 %v3636_v47 }
  0x73   :  { %2246 = vmatprep.subr.bf16.mxu0 %v3637_v48  ;;  %v3682_v48 = vld [vmem:[#allocation7 + $0x618] ss:$20 sps:$4 sm:$0xff]  }
  0x75   :  { %2272 = vmatpush1.bf16.msra.mxu1 %v3603_v45  ;;  %v128_v45 = vrot.slane %v4209_v31, %v127_v38 }
  0x76   :  { %2273 = vmatprep.subr.bf16.mxu1 %v3611_v46  ;;  %2247 = vmatpush2.bf16.msra.mxu0 %v3642_v51 }
  0x77   :  { %2248 = vmatprep.subr.bf16.mxu0 %v3643_v52  ;;  %v3690_v52 = vld [vmem:[#allocation7 + $0x5f4] ss:$20 sps:$4 sm:$0xff]  }
  0x79   :  { %2274 = vmatpush1.bf16.msra.mxu1 %v3609_v49  ;;  %v132_v49 = vrot.slane %v4209_v31, %v131_v41 }
  0x7a   :  { %2275 = vmatprep.subr.bf16.mxu1 %v3617_v50  ;;  %2249 = vmatpush2.bf16.msra.mxu0 %v3648_v55 }
  0x7b   :  { %2250 = vmatprep.subr.bf16.mxu0 %v3649_v56  ;;  %v3688_v56 = vld [vmem:[#allocation7 + $0x5f0] ss:$20 sps:$4 sm:$0xff]  }
  0x7d   :  { %2276 = vmatpush1.bf16.msra.mxu1 %v3615_v53 }
  0x7e   :  { %2277 = vmatprep.subr.bf16.mxu1 %v3623_v54  ;;  %2251 = vmatpush2.bf16.msra.mxu0 %v3654_v59 }
  0x7f   :  { %2252 = vmatprep.subr.bf16.mxu0 %v3655_v60  ;;  %v3693_v60 = vld [vmem:[#allocation7 + $0x5cc] ss:$20 sps:$4 sm:$0xff]  }
  0x81   :  { %2278 = vmatpush1.bf16.msra.mxu1 %v3621_v57  ;;  %v139_v57 = vsub.s32 5, %v4206_v29 }
  0x82   :  { %2279 = vmatprep.subr.bf16.mxu1 %v3629_v58  ;;  %2253 = vmatpush2.bf16.msra.mxu0 %v3660_v63 }
  0x83   :  { %2254 = vmatprep.subr.bf16.mxu0 %v3661_v1  ;;  %v3691_v1 = vld [vmem:[#allocation7 + $0x5c8] ss:$20 sps:$4 sm:$0xff]  }
  0x85   :  { %2280 = vmatpush1.bf16.msra.mxu1 %v3627_v61 }
  0x86   :  { %2281 = vmatprep.subr.bf16.mxu1 %v3635_v62  ;;  %2255 = vmatpush2.bf16.msra.mxu0 %v3666_v4 }
  0x87   :  { %2256 = vmatprep.subr.bf16.mxu0 %v3667_v14 }
  0x89   :  { %2282 = vmatpush1.bf16.msra.mxu1 %v3633_v2  ;;  %v3694_v2 = vld [vmem:[#allocation7 + $0x898] ss:$20 sps:$4 sm:$0xff]  }
  0x8a   :  { %2283 = vmatprep.subr.bf16.mxu1 %v3641_v3  ;;  %2257 = vmatpush2.bf16.msra.mxu0 %v3672_v16  ;;  %v140_v3 = vrot.slane %v4209_v31, %v139_v57  ;;  %v3741_v57 = vld [vmem:[#allocation7 + $0x70c] ss:$20 sps:$4 sm:$0xff]  }
  0x8b   :  { %2258 = vmatprep.subr.bf16.mxu0 %v3673_v18  ;;  %v3706_v18 = vld [vmem:[#allocation7 + $0x848] ss:$20 sps:$4 sm:$0xff]  }
  0x8d   :  { %2284 = vmatpush1.bf16.msra.mxu1 %v3639_v5  ;;  %v3699_v5 = vld [vmem:[#allocation7 + $0x5a4] ss:$20 sps:$4 sm:$0xff]  }
  0x8e   :  { %2285 = vmatprep.subr.bf16.mxu1 %v3647_v6  ;;  %2259 = vmatpush2.bf16.msra.mxu0 %v3678_v20  ;;  %v3702_v6 = vld [vmem:[#allocation7 + $0x874] ss:$20 sps:$4 sm:$0xff]  }
  0x8f   :  { %2310 = vmatprep.subr.bf16.mxu0 %v3684_v21  ;;  %v3711_v20 = vld [vmem:[#allocation7 + $0x554] ss:$20 sps:$4 sm:$0xff]   ;;  %v3714_v21 = vld [vmem:[#allocation7 + $0x824] ss:$20 sps:$4 sm:$0xff]  }
  0x91   :  { %2286 = vmatpush2.bf16.msra.mxu1 %v3645_v7 }
  0x92   :  { %2287 = vmatprep.subr.bf16.mxu1 %v3653_v8 }
  0x95   :  { %2288 = vmatpush2.bf16.msra.mxu1 %v3651_v9  ;;  %v3697_v9 = vld [vmem:[#allocation7 + $0x5a0] ss:$20 sps:$4 sm:$0xff]  }
  0x96   :  { %2289 = vmatprep.subr.bf16.mxu1 %v3659_v10  ;;  %v3700_v10 = vld [vmem:[#allocation7 + $0x870] ss:$20 sps:$4 sm:$0xff]  }
  0x99   :  { %2290 = vmatpush2.bf16.msra.mxu1 %v3657_v11 }
  0x9a   :  { %2291 = vmatprep.subr.bf16.mxu1 %v3665_v12  ;;  %v3705_v12 = vld [vmem:[#allocation7 + $0x57c] ss:$20 sps:$4 sm:$0xff]  }
  0x9d   :  { %2292 = vmatpush2.bf16.msra.mxu1 %v3663_v13  ;;  %v3708_v13 = vld [vmem:[#allocation7 + $0x84c] ss:$20 sps:$4 sm:$0xff]  }
  0x9e   :  { %2293 = vmatprep.subr.bf16.mxu1 %v3671_v15 }
  0xa1   :  { %2294 = vmatpush2.bf16.msra.mxu1 %v3669_v17  ;;  %v3703_v17 = vld [vmem:[#allocation7 + $0x578] ss:$20 sps:$4 sm:$0xff]  }
  0xa2   :  { %2295 = vmatprep.subr.bf16.mxu1 %v3677_v19 }
  0xa5   :  { %2296 = vmatpush2.bf16.msra.mxu1 %v3675_v22 }
  0xa6   :  { %2297 = vmatprep.subr.bf16.mxu1 %v3681_v23 }
  0xa9   :  { %2298 = vmatpush2.bf16.msra.mxu1 %v3679_v24  ;;  %v3709_v24 = vld [vmem:[#allocation7 + $0x550] ss:$20 sps:$4 sm:$0xff]  }
  0xaa   :  { %2299 = vmatprep.subr.bf16.mxu1 %v3687_v25  ;;  %v3712_v25 = vld [vmem:[#allocation7 + $0x820] ss:$20 sps:$4 sm:$0xff]  }
  0xad   :  { %2300 = vmatpush2.bf16.msra.mxu1 %v3685_v26  ;;  %v3717_v26 = vld [vmem:[#allocation7 + $0x52c] ss:$20 sps:$4 sm:$0xff]  }
  0xae   :  { %2351 = vmatprep.subr.bf16.mxu1 %v3696_v27  ;;  %v3720_v27 = vld [vmem:[#allocation7 + $0x7fc] ss:$20 sps:$4 sm:$0xff]  }
 0x118   :  { %v266_v36 = vpop.f32.mrf.mxu1 }
 0x119   :  { %v267_v37 = vadd.f32 %v266_v36, %v120_v34  ;;  %v143_v34 = vsub.s32 6, %v4206_v29  ;;  %v3715_v36 = vld [vmem:[#allocation7 + $0x528] ss:$20 sps:$4 sm:$0xff]  }
 0x11a   :  { %v268_v39 = vpop.f32.mrf.mxu1 }
 0x11b   :  { %v269_v40 = vadd.f32 %v268_v39, %v124_v35  ;;  %v395_v42 = vmax.f32 %v267_v37, 0.0  ;;  %v3718_v37 = vld [vmem:[#allocation7 + $0x7f8] ss:$20 sps:$4 sm:$0xff]  }
 0x11c   :  { %v270_v43 = vpop.f32.mrf.mxu1  ;;  %v3723_v39 = vld [vmem:[#allocation7 + $0x504] ss:$20 sps:$4 sm:$0xff]  }
 0x11d   :  { %v396_v44 = vmax.f32 %v269_v40, 0.0  ;;  %v4228_v50 = vpack.c.bf16 %v395_v42, %v395_v42  ;;  %v3726_v40 = vld [vmem:[#allocation7 + $0x7d4] ss:$20 sps:$4 sm:$0xff]   ;;  %v144_v42 = vrot.slane %v4209_v31, %v143_v34 }
 0x11e   :  { %v271_v46 = vpop.f32.mrf.mxu1  ;;  %v3721_v43 = vld [vmem:[#allocation7 + $0x500] ss:$20 sps:$4 sm:$0xff]  }
 0x11f   :  { %v4223_v47 = vpack.c.bf16 %v396_v44, %v396_v44  ;;  %v3724_v44 = vld [vmem:[#allocation7 + $0x7d0] ss:$20 sps:$4 sm:$0xff]   ;;  %v3732_v46 = vld [vmem:[#allocation7 + $0x7ac] ss:$20 sps:$4 sm:$0xff]  }
 0x120   :  { %v307_v51 = vpop.f32.mrf.mxu1  ;;  %v3778_v34 = vld [vmem:[#allocation7 + $0x3a0] ss:$20 sps:$4 sm:$0xff]  }
 0x121   :  { %v308_v53 = vadd.f32 %v307_v51, %v128_v45  ;;  %2260 = vmatprep.mubr.bf16.mxu0 %v4223_v47  ;;  %v3729_v45 = vld [vmem:[#allocation7 + $0x75c] ss:$20 sps:$4 sm:$0xff]  }
 0x122   :  { %v309_v54 = vpop.f32.mrf.mxu1  ;;  %2261 = vmatmul.mubr.bf16.vlgmr.msra.gmra.mxu0 %v4228_v50  ;;  %v3730_v51 = vld [vmem:[#allocation7 + $0x7a8] ss:$20 sps:$4 sm:$0xff]  }
 0x123   :  { %v310_v55 = vadd.f32 %v309_v54, %v132_v49  ;;  %2311 = vmatpush1.bf16.msra.mxu0 %v3682_v48  ;;  %v397_v58 = vmax.f32 %v308_v53, 0.0  ;;  %v3727_v49 = vld [vmem:[#allocation7 + $0x758] ss:$20 sps:$4 sm:$0xff]  }
 0x124   :  { %v311_v59 = vpop.f32.mrf.mxu1  ;;  %2312 = vmatprep.subr.bf16.mxu0 %v3690_v52  ;;  %v3735_v52 = vld [vmem:[#allocation7 + $0x734] ss:$20 sps:$4 sm:$0xff]   ;;  %v3738_v53 = vld [vmem:[#allocation7 + $0x784] ss:$20 sps:$4 sm:$0xff]  }
 0x125   :  { %v398_v61 = vmax.f32 %v310_v55, 0.0  ;;  %v4236_v4 = vpack.c.bf16 %v397_v58, %v397_v58  ;;  %v3733_v55 = vld [vmem:[#allocation7 + $0x730] ss:$20 sps:$4 sm:$0xff]  }
 0x126   :  { %v312_v62 = vpop.f32.mrf.mxu1  ;;  %v3744_v58 = vld [vmem:[#allocation7 + $0x124] ss:$20 sps:$4 sm:$0xff]  }
 0x127   :  { %v4233_v63 = vpack.c.bf16 %v398_v61, %v398_v61  ;;  %2313 = vmatpush1.bf16.msra.mxu0 %v3688_v56  ;;  %v3736_v56 = vld [vmem:[#allocation7 + $0x780] ss:$20 sps:$4 sm:$0xff]   ;;  %v3747_v62 = vld [vmem:[#allocation7 + $0x6e4] ss:$20 sps:$4 sm:$0xff]  }
 0x128   :  { %2314 = vmatprep.subr.bf16.mxu0 %v3693_v60  ;;  %v4238_v7 = vpop.f32.mrf.mxu1  ;;  %v3739_v60 = vld [vmem:[#allocation7 + $0x708] ss:$20 sps:$4 sm:$0xff]   ;;  %v3742_v61 = vld [vmem:[#allocation7 + $0x120] ss:$20 sps:$4 sm:$0xff]  }
 0x129   :  { %2301 = vmatprep.mubr.bf16.mxu1 %v4233_v63 }
 0x12a   :  { %2302 = vmatmul.mubr.bf16.vlgmr.msra.gmra.mxu1 %v4236_v4  ;;  %v350_v8 = vpop.f32.mrf.mxu1 }
 0x12b   :  { %2315 = vmatpush1.bf16.msra.mxu0 %v3691_v1  ;;  %2352 = vmatpush1.bf16.msra.mxu1 %v3694_v2  ;;  %v351_v11 = vadd.f32 %v350_v8, %v140_v3  ;;  %v3750_v1 = vld [vmem:[#allocation7 + $0xfc] ss:$20 sps:$4 sm:$0xff]   ;;  %v3745_v2 = vld [vmem:[#allocation7 + $0x6e0] ss:$20 sps:$4 sm:$0xff]   ;;  %v3748_v3 = vld [vmem:[#allocation7 + $0xf8] ss:$20 sps:$4 sm:$0xff]  }
 0x12c   :  { %2316 = vmatprep.subr.bf16.mxu0 %v3699_v5  ;;  %2353 = vmatprep.subr.bf16.mxu1 %v3702_v6  ;;  %v352_v14 = vpop.f32.mrf.mxu1  ;;  %v3753_v5 = vld [vmem:[#allocation7 + $0x6bc] ss:$20 sps:$4 sm:$0xff]   ;;  %v3756_v6 = vld [vmem:[#allocation7 + $0xd4] ss:$20 sps:$4 sm:$0xff]   ;;  %v3751_v8 = vld [vmem:[#allocation7 + $0x6b8] ss:$20 sps:$4 sm:$0xff]  }
 0x12d   :  { %v400_v15 = vmax.f32 %v351_v11, 0.0  ;;  %2383 = vmatprep.mubr.bf16.mxu1 %v4121_v0  ;;  %v3759_v11 = vld [vmem:[#allocation7 + $0x694] ss:$20 sps:$4 sm:$0xff]  }
 0x12e   :  { %v353_v16 = vpop.f32.mrf.mxu1  ;;  %v3760_v14 = vld [vmem:[#allocation7 + $0xa8] ss:$20 sps:$4 sm:$0xff]  }
 0x12f   :  { %2317 = vmatpush1.bf16.msra.mxu0 %v3697_v9  ;;  %2354 = vmatpush1.bf16.msra.mxu1 %v3700_v10  ;;  %v4243_v19 = vpack.c.bf16 %v400_v15, %v400_v15  ;;  %v3754_v9 = vld [vmem:[#allocation7 + $0xd0] ss:$20 sps:$4 sm:$0xff]   ;;  %v135_v10 = vsub.s32 4, %v4206_v29  ;;  %v3765_v16 = vld [vmem:[#allocation7 + $0x66c] ss:$20 sps:$4 sm:$0xff]  }
 0x130   :  { %2318 = vmatprep.subr.bf16.mxu0 %v3705_v12  ;;  %2355 = vmatprep.subr.bf16.mxu1 %v3708_v13  ;;  %v389_v22 = vpop.f32.mrf.mxu1  ;;  %v3762_v12 = vld [vmem:[#allocation7 + $0xac] ss:$20 sps:$4 sm:$0xff]   ;;  %v3757_v13 = vld [vmem:[#allocation7 + $0x690] ss:$20 sps:$4 sm:$0xff]  }
 0x131   :  { %2342 = vmatprep.mubr.bf16.mxu0 %v4243_v19  ;;  %v390_v48 = vadd.f32 %v389_v22, %v144_v42  ;;  %v136_v15 = vrot.slane %v4209_v31, %v135_v10  ;;  %v3771_v22 = vld [vmem:[#allocation7 + $0x644] ss:$20 sps:$4 sm:$0xff]   ;;  %v3777_v31 = vld [vmem:[#allocation7 + $0x34] ss:$20 sps:$4 sm:$0xff]  }
 0x132   :  { %v3502_v23 = vpop.f32.mrf.mxu1  ;;  %v3792_v42 = vld [vmem:[#allocation7 + $0x354] ss:$20 sps:$4 sm:$0xff]  }
 0x133   :  { %2319 = vmatpush1.bf16.msra.mxu0 %v3703_v17  ;;  %2356 = vmatpush1.bf16.msra.mxu1 %v3706_v18  ;;  %v401_v54 = vmax.f32 %v390_v48, 0.0  ;;  %v3768_v17 = vld [vmem:[#allocation7 + $0x84] ss:$20 sps:$4 sm:$0xff]   ;;  %v3763_v18 = vld [vmem:[#allocation7 + $0x668] ss:$20 sps:$4 sm:$0xff]  }
 0x134   :  { %2320 = vmatprep.subr.bf16.mxu0 %v3711_v20  ;;  %2357 = vmatprep.subr.bf16.mxu1 %v3714_v21  ;;  %v392_v28 = vpop.f32.mrf.mxu1  ;;  %v3766_v20 = vld [vmem:[#allocation7 + $0x80] ss:$20 sps:$4 sm:$0xff]   ;;  %v349_v21 = vadd.f32 %v4238_v7, %v136_v15  ;;  %v3774_v23 = vld [vmem:[#allocation7 + $0x5c] ss:$20 sps:$4 sm:$0xff]   ;;  %v3793_v48 = vld [vmem:[#allocation7 + $0x238] ss:$20 sps:$4 sm:$0xff]  }
 0x135   :  { %v4248_v59 = vpack.c.bf16 %v401_v54, %v401_v54  ;;  %v3775_v28 = vld [vmem:[#allocation7 + $0x30] ss:$20 sps:$4 sm:$0xff]   ;;  %v3783_v7 = vld [vmem:[#allocation7 + $0xc] ss:$20 sps:$4 sm:$0xff]   ;;  %v3829_v15 = vld [vmem:[#allocation7 + $0x148] ss:$20 sps:$4 sm:$0xff]  }
 0x136   :  { %v3503_v35 = vpop.f32.mrf.mxu1  ;;  %v3802_v54 = vld [vmem:[#allocation7 + $0x300] ss:$20 sps:$4 sm:$0xff]  }
 0x137   :  { %2321 = vmatpush1.bf16.msra.mxu0 %v3709_v24  ;;  %2358 = vmatpush1.bf16.msra.mxu1 %v3712_v25  ;;  %v3769_v24 = vld [vmem:[#allocation7 + $0x640] ss:$20 sps:$4 sm:$0xff]   ;;  %v3772_v25 = vld [vmem:[#allocation7 + $0x58] ss:$20 sps:$4 sm:$0xff]  }
 0x138   :  { %2322 = vmatprep.subr.bf16.mxu0 %v3717_v26  ;;  %2359 = vmatprep.subr.bf16.mxu1 %v3720_v27  ;;  %v399_v26 = vmax.f32 %v349_v21, 0.0  ;;  %v3780_v27 = vld [vmem:[#allocation7 + $0x3a4] ss:$20 sps:$4 sm:$0xff]   ;;  %v3838_v21 = vld [vmem:[#allocation7 + $0x620] ss:$20 sps:$4 sm:$0xff]  }
 0x13a   :  { %v4257_v35 = vpack.c.bf16 %v399_v26, %v399_v26  ;;  %v3849_v26 = vld [vmem:[#allocation7 + $0x444] ss:$20 sps:$4 sm:$0xff]  }
 0x13b   :  { %2323 = vmatpush1.bf16.msra.mxu0 %v3715_v36  ;;  %2360 = vmatpush1.bf16.msra.mxu1 %v3718_v37  ;;  %v3786_v36 = vld [vmem:[#allocation7 + $0x37c] ss:$20 sps:$4 sm:$0xff]  }
 0x13c   :  { %2324 = vmatprep.subr.bf16.mxu0 %v3723_v39  ;;  %2361 = vmatprep.subr.bf16.mxu1 %v3726_v40  ;;  %v3781_v37 = vld [vmem:[#allocation7 + $0x8] ss:$20 sps:$4 sm:$0xff]   ;;  %v3784_v39 = vld [vmem:[#allocation7 + $0x378] ss:$20 sps:$4 sm:$0xff]  }
 0x13d   :  { %v3789_v40 = vld [vmem:[#allocation7 + $0x264] ss:$20 sps:$4 sm:$0xff]  }
 0x13f   :  { %2325 = vmatpush1.bf16.msra.mxu0 %v3721_v43  ;;  %2362 = vmatpush1.bf16.msra.mxu1 %v3724_v44  ;;  %v3787_v43 = vld [vmem:[#allocation7 + $0x260] ss:$20 sps:$4 sm:$0xff]   ;;  %v3790_v44 = vld [vmem:[#allocation7 + $0x350] ss:$20 sps:$4 sm:$0xff]  }
 0x140   :  { %2326 = vmatprep.subr.bf16.mxu0 %v3729_v45  ;;  %2363 = vmatprep.subr.bf16.mxu1 %v3732_v46  ;;  %v3795_v45 = vld [vmem:[#allocation7 + $0x23c] ss:$20 sps:$4 sm:$0xff]   ;;  %v3798_v46 = vld [vmem:[#allocation7 + $0x32c] ss:$20 sps:$4 sm:$0xff]  }
 0x143   :  { %2327 = vmatpush2.bf16.msra.mxu0 %v3727_v49  ;;  %2364 = vmatpush1.bf16.msra.mxu1 %v3730_v51  ;;  %v3796_v49 = vld [vmem:[#allocation7 + $0x328] ss:$20 sps:$4 sm:$0xff]  }
 0x144   :  { %2328 = vmatprep.subr.bf16.mxu0 %v3735_v52  ;;  %2365 = vmatprep.subr.bf16.mxu1 %v3738_v53  ;;  %v3801_v51 = vld [vmem:[#allocation7 + $0x214] ss:$20 sps:$4 sm:$0xff]   ;;  %v3804_v52 = vld [vmem:[#allocation7 + $0x304] ss:$20 sps:$4 sm:$0xff]  }
 0x145   :  { %v3799_v53 = vld [vmem:[#allocation7 + $0x210] ss:$20 sps:$4 sm:$0xff]  }
 0x147   :  { %2329 = vmatpush2.bf16.msra.mxu0 %v3733_v55  ;;  %2366 = vmatpush1.bf16.msra.mxu1 %v3736_v56  ;;  %v3807_v55 = vld [vmem:[#allocation7 + $0x1ec] ss:$20 sps:$4 sm:$0xff]   ;;  %v3810_v56 = vld [vmem:[#allocation7 + $0x2dc] ss:$20 sps:$4 sm:$0xff]  }
 0x148   :  { %2330 = vmatprep.subr.bf16.mxu0 %v3741_v57  ;;  %2392 = vmatprep.subr.bf16.mxu1 %v3744_v58  ;;  %v3805_v57 = vld [vmem:[#allocation7 + $0x1e8] ss:$20 sps:$4 sm:$0xff]   ;;  %v3808_v58 = vld [vmem:[#allocation7 + $0x2d8] ss:$20 sps:$4 sm:$0xff]  }
 0x14a   :  { %2384 = vmatmul.mubr.bf16.vlgmr.msra.gmra.mxu1 %v4248_v59 }
 0x14b   :  { %2331 = vmatpush2.bf16.msra.mxu0 %v3739_v60  ;;  %2393 = vmatpush1.bf16.msra.mxu1 %v3742_v61  ;;  %v3813_v60 = vld [vmem:[#allocation7 + $0x1c4] ss:$20 sps:$4 sm:$0xff]   ;;  %v3816_v61 = vld [vmem:[#allocation7 + $0x2b4] ss:$20 sps:$4 sm:$0xff]  }
 0x14c   :  { %2424 = vmatprep.mubr.bf16.mxu1 %v4223_v47  ;;  %2332 = vmatprep.subr.bf16.mxu0 %v3747_v62  ;;  %v3811_v62 = vld [vmem:[#allocation7 + $0x1c0] ss:$20 sps:$4 sm:$0xff]  }
 0x14d   :  { %2394 = vmatprep.subr.bf16.mxu1 %v3750_v1  ;;  %v3814_v1 = vld [vmem:[#allocation7 + $0x2b0] ss:$20 sps:$4 sm:$0xff]  }
 0x14f   :  { %2333 = vmatpush2.bf16.msra.mxu0 %v3745_v2  ;;  %2395 = vmatpush1.bf16.msra.mxu1 %v3748_v3  ;;  %v3819_v2 = vld [vmem:[#allocation7 + $0x19c] ss:$20 sps:$4 sm:$0xff]   ;;  %v3822_v3 = vld [vmem:[#allocation7 + $0x28c] ss:$20 sps:$4 sm:$0xff]  }
 0x150   :  { %2334 = vmatprep.subr.bf16.mxu0 %v3753_v5  ;;  %2396 = vmatprep.subr.bf16.mxu1 %v3756_v6  ;;  %v3817_v5 = vld [vmem:[#allocation7 + $0x198] ss:$20 sps:$4 sm:$0xff]   ;;  %v3820_v6 = vld [vmem:[#allocation7 + $0x288] ss:$20 sps:$4 sm:$0xff]  }
 0x153   :  { %2335 = vmatpush2.bf16.msra.mxu0 %v3751_v8  ;;  %2397 = vmatpush1.bf16.msra.mxu1 %v3754_v9  ;;  %v3825_v8 = vld [vmem:[#allocation7 + $0x174] ss:$20 sps:$4 sm:$0xff]   ;;  %v3828_v9 = vld [vmem:[#allocation7 + $0x4e4] ss:$20 sps:$4 sm:$0xff]  }
 0x154   :  { %2336 = vmatprep.subr.bf16.mxu0 %v3759_v11  ;;  %2398 = vmatprep.subr.bf16.mxu1 %v3762_v12  ;;  %v3823_v11 = vld [vmem:[#allocation7 + $0x170] ss:$20 sps:$4 sm:$0xff]   ;;  %v3826_v12 = vld [vmem:[#allocation7 + $0x4e0] ss:$20 sps:$4 sm:$0xff]  }
 0x157   :  { %2337 = vmatpush2.bf16.msra.mxu0 %v3757_v13  ;;  %2399 = vmatpush1.bf16.msra.mxu1 %v3760_v14  ;;  %v3831_v13 = vld [vmem:[#allocation7 + $0x14c] ss:$20 sps:$4 sm:$0xff]   ;;  %v3834_v14 = vld [vmem:[#allocation7 + $0x4bc] ss:$20 sps:$4 sm:$0xff]  }
 0x158   :  { %2338 = vmatprep.subr.bf16.mxu0 %v3765_v16  ;;  %2400 = vmatprep.subr.bf16.mxu1 %v3768_v17  ;;  %v3832_v16 = vld [vmem:[#allocation7 + $0x4b8] ss:$20 sps:$4 sm:$0xff]   ;;  %v3837_v17 = vld [vmem:[#allocation7 + $0x494] ss:$20 sps:$4 sm:$0xff]  }
 0x15b   :  { %2339 = vmatpush2.bf16.msra.mxu0 %v3763_v18  ;;  %2401 = vmatpush1.bf16.msra.mxu1 %v3766_v20  ;;  %v3840_v18 = vld [vmem:[#allocation7 + $0x624] ss:$20 sps:$4 sm:$0xff]  }
 0x15c   :  { %2340 = vmatprep.subr.bf16.mxu0 %v3771_v22  ;;  %2402 = vmatprep.subr.bf16.mxu1 %v3774_v23  ;;  %v3835_v20 = vld [vmem:[#allocation7 + $0x490] ss:$20 sps:$4 sm:$0xff]   ;;  %v3843_v22 = vld [vmem:[#allocation7 + $0x46c] ss:$20 sps:$4 sm:$0xff]  }
 0x15d   :  { %v3846_v23 = vld [vmem:[#allocation7 + $0x5fc] ss:$20 sps:$4 sm:$0xff]  }
 0x15f   :  { %2341 = vmatpush2.bf16.msra.mxu0 %v3769_v24  ;;  %2403 = vmatpush1.bf16.msra.mxu1 %v3772_v25  ;;  %v3841_v24 = vld [vmem:[#allocation7 + $0x468] ss:$20 sps:$4 sm:$0xff]   ;;  %v3844_v25 = vld [vmem:[#allocation7 + $0x5f8] ss:$20 sps:$4 sm:$0xff]  }
 0x160   :  { %2404 = vmatprep.subr.bf16.mxu1 %v3777_v31  ;;  %2433 = vmatprep.subr.bf16.mxu0 %v3780_v27  ;;  %v3852_v31 = vld [vmem:[#allocation7 + $0x5d4] ss:$20 sps:$4 sm:$0xff]  }
 0x161   :  { %v3847_v27 = vld [vmem:[#allocation7 + $0x440] ss:$20 sps:$4 sm:$0xff]  }
 0x162   :  { %2343 = vmatmul.mubr.bf16.vlgmr.msra.gmra.mxu0 %v4257_v35 }
 0x163   :  { %2405 = vmatpush1.bf16.msra.mxu1 %v3775_v28  ;;  %2434 = vmatpush1.bf16.msra.mxu0 %v3778_v34  ;;  %v3850_v28 = vld [vmem:[#allocation7 + $0x5d0] ss:$20 sps:$4 sm:$0xff]  }
 0x164   :  { %2465 = vmatprep.mubr.bf16.mxu0 %v4233_v63  ;;  %2406 = vmatprep.subr.bf16.mxu1 %v3783_v7  ;;  %v3855_v34 = vld [vmem:[#allocation7 + $0x41c] ss:$20 sps:$4 sm:$0xff]   ;;  %v3858_v7 = vld [vmem:[#allocation7 + $0x5ac] ss:$20 sps:$4 sm:$0xff]  }
 0x165   :  { %2435 = vmatprep.subr.bf16.mxu0 %v3786_v36  ;;  %v3853_v36 = vld [vmem:[#allocation7 + $0x418] ss:$20 sps:$4 sm:$0xff]  }
 0x167   :  { %2407 = vmatpush1.bf16.msra.mxu1 %v3781_v37  ;;  %2436 = vmatpush1.bf16.msra.mxu0 %v3784_v39  ;;  %v3856_v37 = vld [vmem:[#allocation7 + $0x5a8] ss:$20 sps:$4 sm:$0xff]  }
 0x168   :  { %2408 = vmatprep.subr.bf16.mxu1 %v3789_v40  ;;  %2437 = vmatprep.subr.bf16.mxu0 %v3792_v42  ;;  %v3861_v39 = vld [vmem:[#allocation7 + $0x3f4] ss:$20 sps:$4 sm:$0xff]   ;;  %v3864_v40 = vld [vmem:[#allocation7 + $0x584] ss:$20 sps:$4 sm:$0xff]  }
 0x169   :  { %v3859_v42 = vld [vmem:[#allocation7 + $0x3f0] ss:$20 sps:$4 sm:$0xff]  }
 0x16b   :  { %2409 = vmatpush2.bf16.msra.mxu1 %v3787_v43  ;;  %2438 = vmatpush1.bf16.msra.mxu0 %v3790_v44  ;;  %v3862_v43 = vld [vmem:[#allocation7 + $0x580] ss:$20 sps:$4 sm:$0xff]  }
 0x16c   :  { %2410 = vmatprep.subr.bf16.mxu1 %v3795_v45  ;;  %2439 = vmatprep.subr.bf16.mxu0 %v3798_v46  ;;  %v3867_v44 = vld [vmem:[#allocation7 + $0x3cc] ss:$20 sps:$4 sm:$0xff]   ;;  %v3870_v45 = vld [vmem:[#allocation7 + $0x55c] ss:$20 sps:$4 sm:$0xff]  }
 0x16d   :  { %v3865_v46 = vld [vmem:[#allocation7 + $0x3c8] ss:$20 sps:$4 sm:$0xff]  }
 0x16f   :  { %2411 = vmatpush2.bf16.msra.mxu1 %v3793_v48  ;;  %2440 = vmatpush1.bf16.msra.mxu0 %v3796_v49  ;;  %v3868_v48 = vld [vmem:[#allocation7 + $0x558] ss:$20 sps:$4 sm:$0xff]   ;;  %v3873_v49 = vld [vmem:[#allocation7 + $0x534] ss:$20 sps:$4 sm:$0xff]  }
 0x170   :  { %2412 = vmatprep.subr.bf16.mxu1 %v3801_v51  ;;  %2441 = vmatprep.subr.bf16.mxu0 %v3804_v52  ;;  %v3876_v51 = vld [vmem:[#allocation7 + $0x8a4] ss:$20 sps:$4 sm:$0xff]  }
 0x171   :  { %v3871_v52 = vld [vmem:[#allocation7 + $0x530] ss:$20 sps:$4 sm:$0xff]  }
 0x173   :  { %2413 = vmatpush2.bf16.msra.mxu1 %v3799_v53  ;;  %2442 = vmatpush1.bf16.msra.mxu0 %v3802_v54  ;;  %v3874_v53 = vld [vmem:[#allocation7 + $0x8a0] ss:$20 sps:$4 sm:$0xff]  }
 0x174   :  { %2414 = vmatprep.subr.bf16.mxu1 %v3807_v55  ;;  %2443 = vmatprep.subr.bf16.mxu0 %v3810_v56  ;;  %v3879_v54 = vld [vmem:[#allocation7 + $0x50c] ss:$20 sps:$4 sm:$0xff]   ;;  %v3882_v55 = vld [vmem:[#allocation7 + $0x87c] ss:$20 sps:$4 sm:$0xff]  }
 0x175   :  { %v3877_v56 = vld [vmem:[#allocation7 + $0x508] ss:$20 sps:$4 sm:$0xff]  }
 0x177   :  { %2415 = vmatpush2.bf16.msra.mxu1 %v3805_v57  ;;  %2444 = vmatpush1.bf16.msra.mxu0 %v3808_v58  ;;  %v3880_v57 = vld [vmem:[#allocation7 + $0x878] ss:$20 sps:$4 sm:$0xff]  }
 0x178   :  { %2416 = vmatprep.subr.bf16.mxu1 %v3813_v60  ;;  %2445 = vmatprep.subr.bf16.mxu0 %v3816_v61  ;;  %v3885_v58 = vld [vmem:[#allocation7 + $0x764] ss:$20 sps:$4 sm:$0xff]   ;;  %v3888_v60 = vld [vmem:[#allocation7 + $0x854] ss:$20 sps:$4 sm:$0xff]  }
 0x179   :  { %v3883_v61 = vld [vmem:[#allocation7 + $0x760] ss:$20 sps:$4 sm:$0xff]  }
 0x17b   :  { %2417 = vmatpush2.bf16.msra.mxu1 %v3811_v62  ;;  %2446 = vmatpush1.bf16.msra.mxu0 %v3814_v1  ;;  %v3886_v62 = vld [vmem:[#allocation7 + $0x850] ss:$20 sps:$4 sm:$0xff]  }
 0x17c   :  { %2418 = vmatprep.subr.bf16.mxu1 %v3819_v2  ;;  %2447 = vmatprep.subr.bf16.mxu0 %v3822_v3  ;;  %v3891_v1 = vld [vmem:[#allocation7 + $0x73c] ss:$20 sps:$4 sm:$0xff]   ;;  %v3894_v2 = vld [vmem:[#allocation7 + $0x82c] ss:$20 sps:$4 sm:$0xff]  }
 0x17d   :  { %v3889_v3 = vld [vmem:[#allocation7 + $0x738] ss:$20 sps:$4 sm:$0xff]  }
 0x17f   :  { %2419 = vmatpush2.bf16.msra.mxu1 %v3817_v5  ;;  %2448 = vmatpush1.bf16.msra.mxu0 %v3820_v6  ;;  %v3892_v5 = vld [vmem:[#allocation7 + $0x828] ss:$20 sps:$4 sm:$0xff]  }
 0x180   :  { %2420 = vmatprep.subr.bf16.mxu1 %v3825_v8  ;;  %2449 = vmatprep.subr.bf16.mxu0 %v3828_v9  ;;  %v3897_v6 = vld [vmem:[#allocation7 + $0x714] ss:$20 sps:$4 sm:$0xff]   ;;  %v3900_v8 = vld [vmem:[#allocation7 + $0x804] ss:$20 sps:$4 sm:$0xff]  }
 0x181   :  { %v3895_v9 = vld [vmem:[#allocation7 + $0x710] ss:$20 sps:$4 sm:$0xff]  }
 0x183   :  { %2421 = vmatpush2.bf16.msra.mxu1 %v3823_v11  ;;  %2450 = vmatpush2.bf16.msra.mxu0 %v3826_v12  ;;  %v3903_v11 = vld [vmem:[#allocation7 + $0x6ec] ss:$20 sps:$4 sm:$0xff]   ;;  %v3906_v12 = vld [vmem:[#allocation7 + $0x7dc] ss:$20 sps:$4 sm:$0xff]  }
 0x184   :  { %2422 = vmatprep.subr.bf16.mxu1 %v3831_v13  ;;  %2451 = vmatprep.subr.bf16.mxu0 %v3834_v14  ;;  %v3901_v13 = vld [vmem:[#allocation7 + $0x6e8] ss:$20 sps:$4 sm:$0xff]   ;;  %v3904_v14 = vld [vmem:[#allocation7 + $0x7d8] ss:$20 sps:$4 sm:$0xff]  }
 0x187   :  { %2423 = vmatpush2.bf16.msra.mxu1 %v3829_v15  ;;  %2452 = vmatpush2.bf16.msra.mxu0 %v3832_v16  ;;  %v3909_v15 = vld [vmem:[#allocation7 + $0x6c4] ss:$20 sps:$4 sm:$0xff]   ;;  %v3912_v16 = vld [vmem:[#allocation7 + $0x7b4] ss:$20 sps:$4 sm:$0xff]  }
 0x188   :  { %2453 = vmatprep.subr.bf16.mxu0 %v3837_v17  ;;  %2474 = vmatprep.subr.bf16.mxu1 %v3840_v18  ;;  %v3907_v17 = vld [vmem:[#allocation7 + $0x6c0] ss:$20 sps:$4 sm:$0xff]   ;;  %v3910_v18 = vld [vmem:[#allocation7 + $0x7b0] ss:$20 sps:$4 sm:$0xff]  }
 0x18a   :  { %2425 = vmatmul.mubr.bf16.vlgmr.msra.gmra.mxu1 %v4228_v50 }
 0x18b   :  { %2454 = vmatpush2.bf16.msra.mxu0 %v3835_v20  ;;  %2475 = vmatpush1.bf16.msra.mxu1 %v3838_v21  ;;  %v3915_v20 = vld [vmem:[#allocation7 + $0x69c] ss:$20 sps:$4 sm:$0xff]   ;;  %v3918_v21 = vld [vmem:[#allocation7 + $0x78c] ss:$20 sps:$4 sm:$0xff]  }
 0x18c   :  { %2506 = vmatprep.mubr.bf16.mxu1 %v4243_v19  ;;  %2455 = vmatprep.subr.bf16.mxu0 %v3843_v22  ;;  %v3913_v22 = vld [vmem:[#allocation7 + $0x698] ss:$20 sps:$4 sm:$0xff]  }
 0x18d   :  { %2476 = vmatprep.subr.bf16.mxu1 %v3846_v23  ;;  %v3916_v23 = vld [vmem:[#allocation7 + $0x788] ss:$20 sps:$4 sm:$0xff]  }
 0x18f   :  { %2456 = vmatpush2.bf16.msra.mxu0 %v3841_v24  ;;  %2477 = vmatpush1.bf16.msra.mxu1 %v3844_v25  ;;  %v3921_v24 = vld [vmem:[#allocation7 + $0x674] ss:$20 sps:$4 sm:$0xff]  }
 0x190   :  { %2457 = vmatprep.subr.bf16.mxu0 %v3849_v26  ;;  %2478 = vmatprep.subr.bf16.mxu1 %v3852_v31  ;;  %v3922_v25 = vld [vmem:[#allocation7 + $0x268] ss:$20 sps:$4 sm:$0xff]   ;;  %v3919_v26 = vld [vmem:[#allocation7 + $0x670] ss:$20 sps:$4 sm:$0xff]  }
 0x191   :  { %v3923_v31 = vld [vmem:[#allocation7 + $0x128] ss:$20 sps:$4 sm:$0xff]  }
 0x193   :  { %2458 = vmatpush2.bf16.msra.mxu0 %v3847_v27  ;;  %2479 = vmatpush1.bf16.msra.mxu1 %v3850_v28  ;;  %v3926_v27 = vld [vmem:[#allocation7 + $0x64c] ss:$20 sps:$4 sm:$0xff]  }
 0x194   :  { %2459 = vmatprep.subr.bf16.mxu0 %v3855_v34  ;;  %2480 = vmatprep.subr.bf16.mxu1 %v3858_v7  ;;  %v3927_v28 = vld [vmem:[#allocation7 + $0x240] ss:$20 sps:$4 sm:$0xff]   ;;  %v3924_v34 = vld [vmem:[#allocation7 + $0x648] ss:$20 sps:$4 sm:$0xff]  }
 0x195   :  { %v3928_v7 = vld [vmem:[#allocation7 + $0x100] ss:$20 sps:$4 sm:$0xff]  }
 0x197   :  { %2460 = vmatpush2.bf16.msra.mxu0 %v3853_v36  ;;  %2481 = vmatpush1.bf16.msra.mxu1 %v3856_v37  ;;  %v3929_v36 = vld [vmem:[#allocation7 + $0x218] ss:$20 sps:$4 sm:$0xff]   ;;  %v3930_v37 = vld [vmem:[#allocation7 + $0x4e8] ss:$20 sps:$4 sm:$0xff]  }
 0x198   :  { %2461 = vmatprep.subr.bf16.mxu0 %v3861_v39  ;;  %2482 = vmatprep.subr.bf16.mxu1 %v3864_v40  ;;  %v3931_v39 = vld [vmem:[#allocation7 + $0xd8] ss:$20 sps:$4 sm:$0xff]   ;;  %v3932_v40 = vld [vmem:[#allocation7 + $0x3a8] ss:$20 sps:$4 sm:$0xff]  }
 0x19b   :  { %2462 = vmatpush2.bf16.msra.mxu0 %v3859_v42  ;;  %2483 = vmatpush1.bf16.msra.mxu1 %v3862_v43  ;;  %v3933_v42 = vld [vmem:[#allocation7 + $0x1f0] ss:$20 sps:$4 sm:$0xff]   ;;  %v3934_v43 = vld [vmem:[#allocation7 + $0x4c0] ss:$20 sps:$4 sm:$0xff]  }
 0x19c   :  { %2463 = vmatprep.subr.bf16.mxu0 %v3867_v44  ;;  %2484 = vmatprep.subr.bf16.mxu1 %v3870_v45  ;;  %v3935_v44 = vld [vmem:[#allocation7 + $0xb0] ss:$20 sps:$4 sm:$0xff]   ;;  %v3936_v45 = vld [vmem:[#allocation7 + $0x380] ss:$20 sps:$4 sm:$0xff]  }
 0x19f   :  { %2464 = vmatpush2.bf16.msra.mxu0 %v3865_v46  ;;  %2485 = vmatpush1.bf16.msra.mxu1 %v3868_v48  ;;  %v3938_v46 = vld [vmem:[#allocation7 + $0x498] ss:$20 sps:$4 sm:$0xff]   ;;  %v3939_v48 = vld [vmem:[#allocation7 + $0x88] ss:$20 sps:$4 sm:$0xff]  }
 0x1a0   :  { %2486 = vmatprep.subr.bf16.mxu1 %v3873_v49  ;;  %2515 = vmatprep.subr.bf16.mxu0 %v3876_v51  ;;  %v3940_v49 = vld [vmem:[#allocation7 + $0x358] ss:$20 sps:$4 sm:$0xff]   ;;  %v3941_v51 = vld [vmem:[#allocation7 + $0x1a0] ss:$20 sps:$4 sm:$0xff]  }
 0x1a2   :  { %2466 = vmatmul.mubr.bf16.vlgmr.msra.gmra.mxu0 %v4236_v4 }
 0x1a3   :  { %2487 = vmatpush1.bf16.msra.mxu1 %v3871_v52  ;;  %2516 = vmatpush1.bf16.msra.mxu0 %v3874_v53  ;;  %v3942_v52 = vld [vmem:[#allocation7 + $0x470] ss:$20 sps:$4 sm:$0xff]   ;;  %v3943_v53 = vld [vmem:[#allocation7 + $0x60] ss:$20 sps:$4 sm:$0xff]  }
 0x1a4   :  { %2488 = vmatprep.subr.bf16.mxu1 %v3879_v54  ;;  %2517 = vmatprep.subr.bf16.mxu0 %v3882_v55  ;;  %v3944_v54 = vld [vmem:[#allocation7 + $0x330] ss:$20 sps:$4 sm:$0xff]   ;;  %v3945_v55 = vld [vmem:[#allocation7 + $0x178] ss:$20 sps:$4 sm:$0xff]  }
 0x1a5   :  { %2547 = vmatprep.mubr.bf16.mxu0 %v4121_v0  ;;  %v3898_v0 = vld [vmem:[#allocation7 + $0x800] ss:$20 sps:$4 sm:$0xff]  }
 0x1a7   :  { %2489 = vmatpush1.bf16.msra.mxu1 %v3877_v56  ;;  %2518 = vmatpush1.bf16.msra.mxu0 %v3880_v57  ;;  %v3947_v56 = vld [vmem:[#allocation7 + $0x38] ss:$20 sps:$4 sm:$0xff]   ;;  %v3948_v57 = vld [vmem:[#allocation7 + $0x308] ss:$20 sps:$4 sm:$0xff]  }
 0x1a8   :  { %2490 = vmatprep.subr.bf16.mxu1 %v3885_v58  ;;  %2519 = vmatprep.subr.bf16.mxu0 %v3888_v60  ;;  %v3949_v58 = vld [vmem:[#allocation7 + $0x150] ss:$20 sps:$4 sm:$0xff]   ;;  %v3950_v60 = vld [vmem:[#allocation7 + $0x420] ss:$20 sps:$4 sm:$0xff]  }
 0x1ab   :  { %2491 = vmatpush2.bf16.msra.mxu1 %v3883_v61  ;;  %2520 = vmatpush1.bf16.msra.mxu0 %v3886_v62  ;;  %v3951_v61 = vld [vmem:[#allocation7 + $0x10] ss:$20 sps:$4 sm:$0xff]   ;;  %v3952_v62 = vld [vmem:[#allocation7 + $0x2e0] ss:$20 sps:$4 sm:$0xff]  }
 0x1ac   :  { %2492 = vmatprep.subr.bf16.mxu1 %v3891_v1  ;;  %2521 = vmatprep.subr.bf16.mxu0 %v3894_v2  ;;  %v3953_v1 = vld [vmem:[#allocation7 + $0x3f8] ss:$20 sps:$4 sm:$0xff]   ;;  %v3954_v2 = vld [vmem:[#allocation7 + $0x768] ss:$20 sps:$4 sm:$0xff]  }
 0x1af   :  { %2493 = vmatpush2.bf16.msra.mxu1 %v3889_v3  ;;  %2522 = vmatpush1.bf16.msra.mxu0 %v3892_v5  ;;  %v3955_v3 = vld [vmem:[#allocation7 + $0x2b8] ss:$20 sps:$4 sm:$0xff]   ;;  %v3956_v5 = vld [vmem:[#allocation7 + $0x628] ss:$20 sps:$4 sm:$0xff]  }
 0x1b0   :  { %2494 = vmatprep.subr.bf16.mxu1 %v3897_v6  ;;  %2523 = vmatprep.subr.bf16.mxu0 %v3900_v8  ;;  %v3957_v6 = vld [vmem:[#allocation7 + $0x3d0] ss:$20 sps:$4 sm:$0xff]   ;;  %v3958_v8 = vld [vmem:[#allocation7 + $0x740] ss:$20 sps:$4 sm:$0xff]  }
 0x1b3   :  { %2495 = vmatpush2.bf16.msra.mxu1 %v3895_v9  ;;  %2524 = vmatpush1.bf16.msra.mxu0 %v3898_v0  ;;  %v3959_v0 = vld [vmem:[#allocation7 + $0x290] ss:$20 sps:$4 sm:$0xff]  }
 0x1b4   :  { %2496 = vmatprep.subr.bf16.mxu1 %v3903_v11  ;;  %2525 = vmatprep.subr.bf16.mxu0 %v3906_v12  ;;  %v3960_v11 = vld [vmem:[#allocation7 + $0x600] ss:$20 sps:$4 sm:$0xff]  }
 0x1b7   :  { %2497 = vmatpush2.bf16.msra.mxu1 %v3901_v13  ;;  %2526 = vmatpush1.bf16.msra.mxu0 %v3904_v14  ;;  %v3961_v13 = vld [vmem:[#allocation7 + $0x718] ss:$20 sps:$4 sm:$0xff]  }
 0x1b8   :  { %2498 = vmatprep.subr.bf16.mxu1 %v3909_v15  ;;  %2527 = vmatprep.subr.bf16.mxu0 %v3912_v16  ;;  %v3962_v15 = vld [vmem:[#allocation7 + $0x5d8] ss:$20 sps:$4 sm:$0xff]   ;;  %v3963_v16 = vld [vmem:[#allocation7 + $0x8a8] ss:$20 sps:$4 sm:$0xff]  }
 0x1bb   :  { %2499 = vmatpush2.bf16.msra.mxu1 %v3907_v17  ;;  %2528 = vmatpush1.bf16.msra.mxu0 %v3910_v18 }
 0x1bc   :  { %2500 = vmatprep.subr.bf16.mxu1 %v3915_v20  ;;  %2529 = vmatprep.subr.bf16.mxu0 %v3918_v21  ;;  %v3966_v20 = vld [vmem:[#allocation7 + $0x880] ss:$20 sps:$4 sm:$0xff]  }
 0x1bf   :  { %2501 = vmatpush2.bf16.msra.mxu1 %v3913_v22  ;;  %2530 = vmatpush1.bf16.msra.mxu0 %v3916_v23  ;;  %v3967_v22 = vld [vmem:[#allocation7 + $0x6c8] ss:$20 sps:$4 sm:$0xff]  }
 0x1c0   :  { %2502 = vmatprep.subr.bf16.mxu1 %v3921_v24  ;;  %3334 = vmatprep.subr.bf16.mxu0 %v3922_v25  ;;  %v3968_v24 = vld [vmem:[#allocation7 + $0x588] ss:$20 sps:$4 sm:$0xff]  }
 0x1c2   :  { %2548 = vmatmul.mubr.bf16.vlgmr.msra.gmra.mxu0 %v4248_v59 }
 0x1c3   :  { %2503 = vmatpush2.bf16.msra.mxu1 %v3919_v26  ;;  %3335 = vmatpush3.bf16.msra.mxu0 %v3923_v31  ;;  %v3970_v26 = vld [vmem:[#allocation7 + $0x6a0] ss:$20 sps:$4 sm:$0xff]  }
 0x1c4   :  { %2588 = vmatprep.mubr.bf16.mxu0 %v4223_v47  ;;  %2504 = vmatprep.subr.bf16.mxu1 %v3926_v27  ;;  %v3937_v47 = vld [vmem:[#allocation7 + $0x1c8] ss:$20 sps:$4 sm:$0xff]   ;;  %v3971_v31 = vld [vmem:[#allocation7 + $0x560] ss:$20 sps:$4 sm:$0xff]   ;;  %v3972_v27 = vld [vmem:[#allocation7 + $0x830] ss:$20 sps:$4 sm:$0xff]  }
 0x1c5   :  { %3336 = vmatprep.subr.bf16.mxu0 %v3927_v28  ;;  %v3973_v28 = vld [vmem:[#allocation7 + $0x678] ss:$20 sps:$4 sm:$0xff]  }
 0x1c7   :  { %2505 = vmatpush2.bf16.msra.mxu1 %v3924_v34  ;;  %3337 = vmatpush3.bf16.msra.mxu0 %v3928_v7  ;;  %v3974_v34 = vld [vmem:[#allocation7 + $0x538] ss:$20 sps:$4 sm:$0xff]   ;;  %v3975_v7 = vld [vmem:[#allocation7 + $0x808] ss:$20 sps:$4 sm:$0xff]  }
 0x1c8   :  { %3338 = vmatprep.subr.bf16.mxu0 %v3929_v36  ;;  %3356 = vmatprep.subr.bf16.mxu1 %v3930_v37  ;;  %v3976_v36 = vld [vmem:[#allocation7 + $0x650] ss:$20 sps:$4 sm:$0xff]  }
 0x1c9   :  { %v3977_v37 = vld [vmem:[#allocation7 + $0x510] ss:$20 sps:$4 sm:$0xff]  }
 0x1ca   :  { %2507 = vmatmul.mubr.bf16.vlgmr.msra.gmra.mxu1 %v4257_v35 }
 0x1cb   :  { %3339 = vmatpush3.bf16.msra.mxu0 %v3931_v39  ;;  %3357 = vmatpush3.bf16.msra.mxu1 %v3932_v40  ;;  %v3978_v39 = vld [vmem:[#allocation7 + $0x7e0] ss:$20 sps:$4 sm:$0xff]  }
 0x1cc   :  { %2628 = vmatprep.mubr.bf16.mxu1 %v4233_v63  ;;  %3340 = vmatprep.subr.bf16.mxu0 %v3933_v42  ;;  %v3946_v63 = vld [vmem:[#allocation7 + $0x448] ss:$20 sps:$4 sm:$0xff]   ;;  %v2752_v40 = vld [vmem:[%s4585_s5 + $0xf8] sm:$0xff] }
 0x1cd   :  { %3358 = vmatprep.subr.bf16.mxu1 %v3934_v43  ;;  %v3979_v42 = vld [vmem:[#allocation7 + $0x7b8] ss:$20 sps:$4 sm:$0xff]  }
 0x1ce   :  { %v2736_v43 = vld [vmem:[%s4585_s5 + $0x78] sm:$0xff] }
 0x1cf   :  { %3341 = vmatpush3.bf16.msra.mxu0 %v3935_v44  ;;  %3359 = vmatpush3.bf16.msra.mxu1 %v3936_v45  ;;  %v2751_v44 = vld [vmem:[%s4585_s5 + $0xf0] sm:$0xff] }
 0x1d0   :  { %3342 = vmatprep.subr.bf16.mxu0 %v3937_v47  ;;  %3360 = vmatprep.subr.bf16.mxu1 %v3938_v46  ;;  %v2735_v45 = vld [vmem:[%s4585_s5 + $0x70] sm:$0xff]  ;;  %v2750_v46 = vld [vmem:[%s4585_s5 + $0xe8] sm:$0xff] }
 0x1d1   :  { %v3980_v47 = vld [vmem:[#allocation7 + $0x790] ss:$20 sps:$4 sm:$0xff]  }
 0x1d3   :  { %3343 = vmatpush3.bf16.msra.mxu0 %v3939_v48  ;;  %3361 = vmatpush3.bf16.msra.mxu1 %v3940_v49  ;;  %v2734_v48 = vld [vmem:[%s4585_s5 + $0x68] sm:$0xff]  ;;  %v2784_v49 = vld [vmem:[%s4585_s5 + $0x1f8] sm:$0xff] }
 0x1d4   :  { %3344 = vmatprep.subr.bf16.mxu0 %v3941_v51  ;;  %3362 = vmatprep.subr.bf16.mxu1 %v3942_v52  ;;  %v2733_v51 = vld [vmem:[%s4585_s5 + $0x60] sm:$0xff]  ;;  %v2748_v52 = vld [vmem:[%s4585_s5 + $0xd8] sm:$0xff] }
 0x1d7   :  { %3345 = vmatpush3.bf16.msra.mxu0 %v3943_v53  ;;  %3363 = vmatpush3.bf16.msra.mxu1 %v3944_v54  ;;  %v2732_v53 = vld [vmem:[%s4585_s5 + $0x58] sm:$0xff] }
 0x1d8   :  { %3346 = vmatprep.subr.bf16.mxu0 %v3945_v55  ;;  %3364 = vmatprep.subr.bf16.mxu1 %v3946_v63  ;;  %v2768_v54 = vld [vmem:[%s4585_s5 + $0x178] sm:$0xff]  ;;  %v2747_v55 = vld [vmem:[%s4585_s5 + $0xd0] sm:$0xff] }
 0x1d9   :  { %v2783_v63 = vld [vmem:[%s4585_s5 + $0x1f0] sm:$0xff] }
 0x1db   :  { %3347 = vmatpush3.bf16.msra.mxu0 %v3947_v56  ;;  %3365 = vmatpush3.bf16.msra.mxu1 %v3948_v57  ;;  %v2731_v57 = vld [vmem:[%s4585_s5 + $0x50] sm:$0xff] }
 0x1dc   :  { %3348 = vmatprep.subr.bf16.mxu0 %v3949_v58  ;;  %3366 = vmatprep.subr.bf16.mxu1 %v3950_v60  ;;  %v2767_v58 = vld [vmem:[%s4585_s5 + $0x170] sm:$0xff]  ;;  %v2746_v60 = vld [vmem:[%s4585_s5 + $0xc8] sm:$0xff] }
 0x1df   :  { %3349 = vmatpush3.bf16.msra.mxu0 %v3951_v61  ;;  %3367 = vmatpush3.bf16.msra.mxu1 %v3952_v62  ;;  %v2782_v61 = vld [vmem:[%s4585_s5 + $0x1e8] sm:$0xff] }
 0x1e0   :  { %3368 = vmatprep.subr.bf16.mxu1 %v3953_v1  ;;  %3378 = vmatprep.subr.bf16.mxu0 %v3954_v2  ;;  %v2730_v62 = vld [vmem:[%s4585_s5 + $0x48] sm:$0xff]  ;;  %v2745_v2 = vld [vmem:[%s4585_s5 + $0xc0] sm:$0xff] }
 0x1e1   :  { %v2766_v1 = vld [vmem:[%s4585_s5 + $0x168] sm:$0xff] }
 0x1e2   :  { %2589 = vmatmul.mubr.bf16.vlgmr.msra.gmra.mxu0 %v4228_v50  ;;  %v4270_v9 = vpop.f32.mrf.mxu0  ;;  %v3964_v50 = vld [vmem:[#allocation7 + $0x6f0] ss:$20 sps:$4 sm:$0xff]  }
 0x1e3   :  { %3369 = vmatpush3.bf16.msra.mxu1 %v3955_v3  ;;  %3379 = vmatpush3.bf16.msra.mxu0 %v3956_v5  ;;  %v2781_v3 = vld [vmem:[%s4585_s5 + $0x1e0] sm:$0xff] }
 0x1e4   :  { %2668 = vmatprep.mubr.bf16.mxu0 %v4243_v19  ;;  %v4273_v12 = vpop.f32.mrf.mxu0  ;;  %3370 = vmatprep.subr.bf16.mxu1 %v3957_v6  ;;  %v3965_v19 = vld [vmem:[#allocation7 + $0x5b0] ss:$20 sps:$4 sm:$0xff]   ;;  %v2729_v6 = vld [vmem:[%s4585_s5 + $0x40] sm:$0xff] }
 0x1e5   :  { %3380 = vmatprep.subr.bf16.mxu0 %v3958_v8  ;;  %v2765_v8 = vld [vmem:[%s4585_s5 + $0x160] sm:$0xff] }
 0x1e6   :  { %v2266_v14 = vpop.f32.mrf.mxu0 }
 0x1e7   :  { %3371 = vmatpush3.bf16.msra.mxu1 %v3959_v0  ;;  %3381 = vmatpush3.bf16.msra.mxu0 %v3960_v11  ;;  %v2744_v0 = vld [vmem:[%s4585_s5 + $0xb8] sm:$0xff] }
 0x1e8   :  { %v2267_v17 = vpop.f32.mrf.mxu0  ;;  %3382 = vmatprep.subr.bf16.mxu0 %v3961_v13  ;;  %3504 = vmatprep.subr.bf16.mxu1 %v4122_v33  ;;  %v2780_v11 = vld [vmem:[%s4585_s5 + $0x1d8] sm:$0xff] }
 0x1e9   :  { %v2728_v14 = vld [vmem:[%s4585_s5 + $0x38] sm:$0xff]  ;;  %v2779_v17 = vld [vmem:[%s4585_s5 + $0x1d0] sm:$0xff] }
 0x1ea   :  { %2629 = vmatmul.mubr.bf16.vlgmr.msra.gmra.mxu1 %v4236_v4  ;;  %v4277_v18 = vpop.f32.mrf.mxu1  ;;  %v3969_v4 = vld [vmem:[#allocation7 + $0x858] ss:$20 sps:$4 sm:$0xff]  }
 0x1eb   :  { %3383 = vmatpush3.bf16.msra.mxu0 %v3962_v15  ;;  %3505 = vmatpush3.bf16.msra.mxu1 %v3963_v16  ;;  %v2764_v15 = vld [vmem:[%s4585_s5 + $0x158] sm:$0xff]  ;;  %v2743_v16 = vld [vmem:[%s4585_s5 + $0xb0] sm:$0xff] }
 0x1ec   :  { %v4279_v21 = vpop.f32.mrf.mxu1  ;;  %3384 = vmatprep.subr.bf16.mxu0 %v3964_v50  ;;  %3506 = vmatprep.subr.bf16.mxu1 %v4122_v33  ;;  %v2727_v50 = vld [vmem:[%s4585_s5 + $0x30] sm:$0xff] }
 0x1ed   :  { %3520 = vmatprep.mubr.msk.bf16.mxu1 %vm4123_vm2, %v4122_v33 }
 0x1ee   :  { %v2307_v23 = vpop.f32.mrf.mxu1 }
 0x1ef   :  { %3385 = vmatpush3.bf16.msra.mxu0 %v3965_v19  ;;  %3507 = vmatpush3.bf16.msra.mxu1 %v3966_v20  ;;  %v2763_v19 = vld [vmem:[%s4585_s5 + $0x150] sm:$0xff]  ;;  %v2742_v20 = vld [vmem:[%s4585_s5 + $0xa8] sm:$0xff] }
 0x1f0   :  { %v2308_v25 = vpop.f32.mrf.mxu1  ;;  %3386 = vmatprep.subr.bf16.mxu0 %v3967_v22  ;;  %3508 = vmatprep.subr.bf16.mxu1 %v4122_v33  ;;  %v2778_v22 = vld [vmem:[%s4585_s5 + $0x1c8] sm:$0xff] }
 0x1f1   :  { %v2726_v23 = vld [vmem:[%s4585_s5 + $0x28] sm:$0xff]  ;;  %v2777_v25 = vld [vmem:[%s4585_s5 + $0x1c0] sm:$0xff] }
 0x1f3   :  { %3387 = vmatpush3.bf16.msra.mxu0 %v3968_v24  ;;  %3509 = vmatpush3.bf16.msra.mxu1 %v3969_v4  ;;  %v2762_v24 = vld [vmem:[%s4585_s5 + $0x148] sm:$0xff]  ;;  %v2741_v4 = vld [vmem:[%s4585_s5 + $0xa0] sm:$0xff] }
 0x1f4   :  { %3388 = vmatprep.subr.bf16.mxu0 %v3970_v26  ;;  %3510 = vmatprep.subr.bf16.mxu1 %v4122_v33  ;;  %v2725_v26 = vld [vmem:[%s4585_s5 + $0x20] sm:$0xff] }
 0x1f7   :  { %3389 = vmatpush3.bf16.msra.mxu0 %v3971_v31  ;;  %3511 = vmatpush3.bf16.msra.mxu1 %v3972_v27  ;;  %v2761_v31 = vld [vmem:[%s4585_s5 + $0x140] sm:$0xff]  ;;  %v2740_v27 = vld [vmem:[%s4585_s5 + $0x98] sm:$0xff] }
 0x1f8   :  { %3390 = vmatprep.subr.bf16.mxu0 %v3973_v28  ;;  %3512 = vmatprep.subr.bf16.mxu1 %v4122_v33  ;;  %v2776_v28 = vld [vmem:[%s4585_s5 + $0x1b8] sm:$0xff] }
 0x1fb   :  { %3391 = vmatpush3.bf16.msra.mxu0 %v3974_v34  ;;  %3513 = vmatpush3.bf16.msra.mxu1 %v3975_v7  ;;  %v4422_v34 = vld [vmem:[#allocation9] sm:$0x1f]  ;;  %v2724_v7 = vld [vmem:[%s4585_s5 + $0x18] sm:$0xff] }
 0x1fc   :  { %3392 = vmatprep.subr.bf16.mxu0 %v3976_v36  ;;  %3514 = vmatprep.subr.bf16.mxu1 %v4122_v33  ;;  %v2760_v36 = vld [vmem:[%s4585_s5 + $0x138] sm:$0xff] }
 0x1ff   :  { %3393 = vmatpush3.bf16.msra.mxu0 %v3977_v37  ;;  %3515 = vmatpush3.bf16.msra.mxu1 %v3978_v39  ;;  %v2739_v37 = vld [vmem:[%s4585_s5 + $0x90] sm:$0xff] }
 0x200   :  { %3516 = vmatprep.subr.bf16.mxu1 %v4122_v33  ;;  %3409 = vmatprep.subr.mxu0 %v2752_v40  ;;  %v2775_v39 = vld [vmem:[%s4585_s5 + $0x1b0] sm:$0xff] }
 0x201   :  { %v2723_v40 = vld [vmem:[%s4585_s5 + $0x10] sm:$0xff] }
 0x202   :  { %2669 = vmatmul.mubr.bf16.vlgmr.msra.gmra.mxu0 %v4257_v35  ;;  %v2749_v35 = vld [vmem:[%s4585_s5 + $0xe0] sm:$0xff] }
 0x203   :  { %3517 = vmatpush3.bf16.msra.mxu1 %v3979_v42  ;;  %3410 = vmatpush3.msra.mxu0 %v2736_v43  ;;  %v2759_v42 = vld [vmem:[%s4585_s5 + $0x130] sm:$0xff]  ;;  %v750_v43 = vrot.slane %v4422_v34, %v119_v30  ;;  %v2758_v30 = vld [vmem:[%s4585_s5 + $0x128] sm:$0xff] }
 0x204   :  { %3518 = vmatprep.subr.bf16.mxu1 %v4122_v33  ;;  %3411 = vmatprep.subr.mxu0 %v2751_v44  ;;  %v2738_v44 = vld [vmem:[%s4585_s5 + $0x88] sm:$0xff] }
 0x205   :  { %3412 = vmatpush3.msra.mxu0 %v2735_v45  ;;  %v2774_v45 = vld [vmem:[%s4585_s5 + $0x1a8] sm:$0xff] }
 0x206   :  { %3413 = vmatprep.subr.mxu0 %v2750_v46  ;;  %v754_v46 = vrot.slane %v4422_v34, %v123_v32  ;;  %v2757_v32 = vld [vmem:[%s4585_s5 + $0x120] sm:$0xff] }
 0x207   :  { %3519 = vmatpush3.bf16.msra.mxu1 %v3980_v47  ;;  %3414 = vmatpush3.msra.mxu0 %v2734_v48  ;;  %v2722_v47 = vld [vmem:[%s4585_s5 + $0x8] sm:$0xff]  ;;  %v2737_v48 = vld [vmem:[%s4585_s5 + $0x80] sm:$0xff] }
 0x208   :  { %3415 = vmatprep.subr.mxu0 %v2749_v35  ;;  %3444 = vmatprep.subr.mxu1 %v2784_v49  ;;  %v2773_v35 = vld [vmem:[%s4585_s5 + $0x1a0] sm:$0xff] }
 0x209   :  { %3416 = vmatpush3.msra.mxu0 %v2733_v51  ;;  %v2721_v49 = vld [vmem:[%s4585_s5] sm:$0xff]  ;;  %v2263_v51 = vadd.f32 %v4270_v9, %v750_v43  ;;  %v2771_v9 = vld [vmem:[%s4585_s5 + $0x190] sm:$0xff] }
 0x20a   :  { %v4333_v56 = vpop.f32.mrf.mxu1  ;;  %3521 = vmatmul.mubr.bf16.vlgmr.msra.gmra.mxu1 %v4248_v59  ;;  %3417 = vmatprep.subr.mxu0 %v2748_v52  ;;  %v2772_v52 = vld [vmem:[%s4585_s5 + $0x198] sm:$0xff] }
 0x20b   :  { %3418 = vmatpush3.msra.mxu0 %v2732_v53  ;;  %3445 = vmatpush3.msra.mxu1 %v2768_v54  ;;  %v2756_v53 = vld [vmem:[%s4585_s5 + $0x118] sm:$0xff]  ;;  %v2265_v54 = vadd.f32 %v4273_v12, %v754_v46  ;;  %v2770_v12 = vld [vmem:[%s4585_s5 + $0x188] sm:$0xff] }
 0x20c   :  { %v4348_v59 = vpop.f32.mrf.mxu1  ;;  %3419 = vmatprep.subr.mxu0 %v2747_v55  ;;  %3446 = vmatprep.subr.mxu1 %v2783_v63  ;;  %v2304_v55 = vadd.f32 %v4277_v18, %v2263_v51 }
 0x20d   :  { %3420 = vmatpush3.msra.mxu0 %v2731_v57  ;;  %3447 = vmatpush3.msra.mxu1 %v2767_v58  ;;  %v2755_v57 = vld [vmem:[%s4585_s5 + $0x110] sm:$0xff]  ;;  %v2306_v58 = vadd.f32 %v4279_v21, %v2265_v54 }
 0x20e   :  { %v2389_v5 = vpop.f32.mrf.mxu1  ;;  %3421 = vmatprep.subr.mxu0 %v2746_v60  ;;  %3448 = vmatprep.subr.mxu1 %v2782_v61  ;;  %v2754_v61 = vld [vmem:[%s4585_s5 + $0x108] sm:$0xff] }
 0x20f   :  { %3422 = vmatpush3.msra.mxu0 %v2730_v62  ;;  %3449 = vmatpush3.msra.mxu1 %v2766_v1  ;;  %v2769_v1 = vld [vmem:[%s4585_s5 + $0x180] sm:$0xff] }
 0x210   :  { %v2390_v13 = vpop.f32.mrf.mxu1  ;;  %3423 = vmatprep.subr.mxu0 %v2745_v2  ;;  %3450 = vmatprep.subr.mxu1 %v2781_v3  ;;  %v2753_v3 = vld [vmem:[%s4585_s5 + $0x100] sm:$0xff] }
 0x211   :  { %3424 = vmatpush3.msra.mxu0 %v2729_v6  ;;  %3451 = vmatpush3.msra.mxu1 %v2765_v8  ;;  %v2797_v13 = vld [vmem:[%s4585_s5 + $0x260] sm:$0xff] }
 0x212   :  { %3425 = vmatprep.subr.mxu0 %v2744_v0  ;;  %3452 = vmatprep.subr.mxu1 %v2780_v11  ;;  %v2799_v11 = vld [vmem:[%s4585_s5 + $0x270] sm:$0xff] }
 0x213   :  { %3426 = vmatpush3.msra.mxu0 %v2728_v14  ;;  %3453 = vmatpush3.msra.mxu1 %v2764_v15  ;;  %v2796_v14 = vld [vmem:[%s4585_s5 + $0x258] sm:$0xff]  ;;  %v2795_v15 = vld [vmem:[%s4585_s5 + $0x250] sm:$0xff] }
 0x214   :  { %3427 = vmatprep.subr.mxu0 %v2743_v16  ;;  %3454 = vmatprep.subr.mxu1 %v2779_v17  ;;  %v2794_v16 = vld [vmem:[%s4585_s5 + $0x248] sm:$0xff]  ;;  %v2793_v17 = vld [vmem:[%s4585_s5 + $0x240] sm:$0xff] }
 0x215   :  { %3428 = vmatpush3.msra.mxu0 %v2727_v50  ;;  %3455 = vmatpush3.msra.mxu1 %v2763_v19  ;;  %v2792_v50 = vld [vmem:[%s4585_s5 + $0x238] sm:$0xff]  ;;  %v2791_v19 = vld [vmem:[%s4585_s5 + $0x230] sm:$0xff] }
 0x216   :  { %3429 = vmatprep.subr.mxu0 %v2742_v20  ;;  %3456 = vmatprep.subr.mxu1 %v2778_v22  ;;  %v2790_v20 = vld [vmem:[%s4585_s5 + $0x228] sm:$0xff]  ;;  %v2789_v22 = vld [vmem:[%s4585_s5 + $0x220] sm:$0xff] }
 0x217   :  { %3430 = vmatpush3.msra.mxu0 %v2726_v23  ;;  %3457 = vmatpush3.msra.mxu1 %v2762_v24  ;;  %v2788_v23 = vld [vmem:[%s4585_s5 + $0x218] sm:$0xff] }
 0x218   :  { %3431 = vmatprep.subr.mxu0 %v2741_v4  ;;  %3458 = vmatprep.subr.mxu1 %v2777_v25  ;;  %v2787_v4 = vld [vmem:[%s4585_s5 + $0x210] sm:$0xff] }
 0x219   :  { %3432 = vmatpush3.msra.mxu0 %v2725_v26  ;;  %3459 = vmatpush3.msra.mxu1 %v2761_v31  ;;  %v2786_v26 = vld [vmem:[%s4585_s5 + $0x208] sm:$0xff] }
 0x21a   :  { %3433 = vmatprep.subr.mxu0 %v2740_v27  ;;  %3460 = vmatprep.subr.mxu1 %v2776_v28  ;;  %v2785_v27 = vld [vmem:[%s4585_s5 + $0x200] sm:$0xff] }
 0x21b   :  { %3434 = vmatpush3.msra.mxu0 %v2724_v7  ;;  %3461 = vmatpush3.msra.mxu1 %v2760_v36 }
 0x21c   :  { %3435 = vmatprep.subr.mxu0 %v2739_v37  ;;  %3462 = vmatprep.subr.mxu1 %v2775_v39 }
 0x21d   :  { %3436 = vmatpush3.msra.mxu0 %v2723_v40  ;;  %3463 = vmatpush3.msra.mxu1 %v2759_v42  ;;  %v758_v42 = vrot.slane %v4422_v34, %v127_v38 }
 0x21e   :  { %3437 = vmatprep.subr.mxu0 %v2738_v44  ;;  %3464 = vmatprep.subr.mxu1 %v2774_v45 }
 0x21f   :  { %3438 = vmatpush3.msra.mxu0 %v2722_v47  ;;  %3465 = vmatpush3.msra.mxu1 %v2758_v30 }
 0x220   :  { %3439 = vmatprep.subr.mxu0 %v2737_v48  ;;  %3466 = vmatprep.subr.mxu1 %v2773_v35 }
 0x221   :  { %3440 = vmatpush3.msra.mxu0 %v2721_v49  ;;  %3467 = vmatpush3.msra.mxu1 %v2757_v32 }
 0x222   :  { %v2344_v63 = vpop.f32.mrf.mxu0  ;;  %3468 = vmatprep.subr.mxu1 %v2772_v52  ;;  %3524 = vmatprep.subr.mxu0 %v4122_v33 }
 0x223   :  { %v2345_v60 = vadd.f32 %v2344_v63, %v2304_v55  ;;  %3469 = vmatpush3.msra.mxu1 %v2756_v53 }
 0x224   :  { %v2346_v18 = vpop.f32.mrf.mxu0  ;;  %3470 = vmatprep.subr.mxu1 %v2771_v9 }
 0x225   :  { %v2347_v62 = vadd.f32 %v2346_v18, %v2306_v58  ;;  %3471 = vmatpush3.msra.mxu1 %v2755_v57  ;;  %v2386_v21 = vadd.f32 %v4333_v56, %v2345_v60  ;;  %v2800_v56 = vld [vmem:[%s4585_s5 + $0x278] sm:$0xff] }
 0x226   :  { %v2348_v2 = vpop.f32.mrf.mxu0  ;;  %3472 = vmatprep.subr.mxu1 %v2770_v12 }
 0x227   :  { %v2388_v5 = vadd.f32 %v4348_v59, %v2347_v62  ;;  %3473 = vmatpush3.msra.mxu1 %v2754_v61  ;;  %v2716_v0 = vmax.f32 %v2386_v21, 0.0  ;;  %v2798_v59 = vld [vmem:[%s4585_s5 + $0x268] sm:$0xff]  ;;  %v766_v62 = vrot.slane %v4422_v34, %v135_v10 }
 0x228   :  { %v2349_v6 = vpop.f32.mrf.mxu0  ;;  %3474 = vmatprep.subr.mxu1 %v2769_v1 }
 0x229   :  { %v2717_v8 = vmax.f32 %v2388_v5, 0.0  ;;  %3475 = vmatpush3.msra.mxu1 %v2753_v3 }
 0x22b   :  { %2872 = vmatprep.mubr.f32.mxu0 %v2717_v8 }
 0x22c   :  { %2873 = vmatmul.mubr.f32.vlgmr.msra.gmra.mxu0 %v2716_v0 }
 0x22d   :  { %3556 = vmatprep.mubr.msk.f32.mxu0 %vm4123_vm2, %v4122_v33  ;;  %3525 = vmatpush3.msra.mxu0 %v2800_v56 }
 0x22e   :  { %3526 = vmatprep.subr.mxu0 %v4122_v33 }
 0x22f   :  { %3527 = vmatpush3.msra.mxu0 %v2799_v11 }
 0x230   :  { %3528 = vmatprep.subr.mxu0 %v4122_v33 }
 0x231   :  { %3529 = vmatpush3.msra.mxu0 %v2798_v59 }
 0x232   :  { %3530 = vmatprep.subr.mxu0 %v4122_v33 }
 0x233   :  { %3531 = vmatpush3.msra.mxu0 %v2797_v13 }
 0x234   :  { %3532 = vmatprep.subr.mxu0 %v4122_v33 }
 0x235   :  { %3533 = vmatpush3.msra.mxu0 %v2796_v14 }
 0x236   :  { %3534 = vmatprep.subr.mxu0 %v4122_v33 }
 0x237   :  { %3535 = vmatpush3.msra.mxu0 %v2795_v15 }
 0x238   :  { %3536 = vmatprep.subr.mxu0 %v4122_v33 }
 0x239   :  { %3537 = vmatpush3.msra.mxu0 %v2794_v16 }
 0x23a   :  { %3538 = vmatprep.subr.mxu0 %v4122_v33 }
 0x23b   :  { %3539 = vmatpush3.msra.mxu0 %v2793_v17 }
 0x23c   :  { %3540 = vmatprep.subr.mxu0 %v4122_v33 }
 0x23d   :  { %3541 = vmatpush3.msra.mxu0 %v2792_v50 }
 0x23e   :  { %3542 = vmatprep.subr.mxu0 %v4122_v33 }
 0x23f   :  { %3543 = vmatpush3.msra.mxu0 %v2791_v19 }
 0x240   :  { %3544 = vmatprep.subr.mxu0 %v4122_v33 }
 0x241   :  { %3545 = vmatpush3.msra.mxu0 %v2790_v20  ;;  %v3330_v20 = vld [vmem:[#allocation10] ss:$0 sm:$0xff] }
 0x242   :  { %3546 = vmatprep.subr.mxu0 %v4122_v33 }
 0x243   :  { %3547 = vmatpush3.msra.mxu0 %v2789_v22 }
 0x244   :  { %3548 = vmatprep.subr.mxu0 %v4122_v33 }
 0x245   :  { %3549 = vmatpush3.msra.mxu0 %v2788_v23 }
 0x246   :  { %3550 = vmatprep.subr.mxu0 %v4122_v33 }
 0x247   :  { %3551 = vmatpush3.msra.mxu0 %v2787_v4 }
 0x248   :  { %3552 = vmatprep.subr.mxu0 %v4122_v33 }
 0x249   :  { %3553 = vmatpush3.msra.mxu0 %v2786_v26 }
 0x24a   :  { %v2426_v24 = vpop.f32.mrf.mxu1  ;;  %3554 = vmatprep.subr.mxu0 %v4122_v33  ;;  %v762_v33 = vrot.slane %v4422_v34, %v131_v41 }
 0x24b   :  { %3555 = vmatpush3.msra.mxu0 %v2785_v27  ;;  %v2427_v45 = vadd.f32 %v2426_v24, %v758_v42 }
 0x24c   :  { %v2428_v25 = vpop.f32.mrf.mxu1 }
 0x24d   :  { %v2429_v30 = vadd.f32 %v2428_v25, %v762_v33 }
 0x24e   :  { %v2430_v31 = vpop.f32.mrf.mxu1 }
 0x250   :  { %v2431_v28 = vpop.f32.mrf.mxu1 }
 0x262   :  { %v2467_v7 = vpop.f32.mrf.mxu0 }
 0x263   :  { %v2468_v46 = vadd.f32 %v2467_v7, %v2427_v45 }
 0x264   :  { %v2469_v36 = vpop.f32.mrf.mxu0 }
 0x265   :  { %v2470_v35 = vadd.f32 %v2469_v36, %v2429_v30 }
 0x266   :  { %v2471_v37 = vpop.f32.mrf.mxu0 }
 0x268   :  { %v2472_v39 = vpop.f32.mrf.mxu0 }
 0x282   :  { %v2549_v40 = vpop.f32.mrf.mxu0 }
 0x284   :  { %v2551_v43 = vpop.f32.mrf.mxu0 }
 0x286   :  { %v2553_v44 = vpop.f32.mrf.mxu0 }
 0x288   :  { %v2554_v47 = vpop.f32.mrf.mxu0 }
 0x28a   :  { %v2508_v48 = vpop.f32.mrf.mxu1 }
 0x28b   :  { %v2509_v49 = vadd.f32 %v2508_v48, %v2468_v46 }
 0x28c   :  { %v2510_v32 = vpop.f32.mrf.mxu1 }
 0x28d   :  { %v2511_v51 = vadd.f32 %v2510_v32, %v2470_v35  ;;  %v2550_v52 = vadd.f32 %v2549_v40, %v2509_v49 }
 0x28e   :  { %v2512_v53 = vpop.f32.mrf.mxu1 }
 0x28f   :  { %v2552_v54 = vadd.f32 %v2551_v43, %v2511_v51  ;;  %v2718_v9 = vmax.f32 %v2550_v52, 0.0 }
 0x290   :  { %v2513_v55 = vpop.f32.mrf.mxu1 }
 0x291   :  { %v2719_v38 = vmax.f32 %v2552_v54, 0.0 }
 0x293   :  { %2942 = vmatprep.mubr.f32.mxu1 %v2719_v38 }
 0x294   :  { %2943 = vmatmul.mubr.f32.vlgmr.msra.gmra.mxu1 %v2718_v9 }
 0x2a2   :  { %v3350_v63 = vpop.f32.mrf.mxu0 }
 0x2a4   :  { %v3351_v41 = vpop.f32.mrf.mxu0 }
 0x2a5   :  { %v3352_v1 = vadd.f32 %v3351_v41, %v3350_v63 }
 0x2a6   :  { %v3353_v57 = vpop.f32.mrf.mxu0 }
 0x2a7   :  { %v2591_v5 = vadd.f32 %v3352_v1, %v766_v62 }
 0x2a8   :  { %v3354_v58 = vpop.f32.mrf.mxu0 }
 0x2aa   :  { %v3372_v60 = vpop.f32.mrf.mxu1 }
 0x2ac   :  { %v3373_v12 = vpop.f32.mrf.mxu1 }
 0x2ad   :  { %v3374_v2 = vadd.f32 %v3373_v12, %v3372_v60 }
 0x2ae   :  { %v3375_v18 = vpop.f32.mrf.mxu1 }
 0x2af   :  { %v2631_v0 = vadd.f32 %v3374_v2, %v2591_v5 }
 0x2b0   :  { %v3376_v61 = vpop.f32.mrf.mxu1 }
 0x2c2   :  { %v3394_v21 = vpop.f32.mrf.mxu0 }
 0x2c4   :  { %v3395_v3 = vpop.f32.mrf.mxu0 }
 0x2c5   :  { %v3396_v6 = vadd.f32 %v3395_v3, %v3394_v21 }
 0x2c6   :  { %v3397_v8 = vpop.f32.mrf.mxu0 }
 0x2c7   :  { %v2671_v11 = vadd.f32 %v3396_v6, %v2631_v0 }
 0x2c8   :  { %v3398_v56 = vpop.f32.mrf.mxu0 }
 0x2ca   :  { %v2710_v59 = vpop.f32.mrf.mxu1 }
 0x2cb   :  { %v2711_v13 = vadd.f32 %v2710_v59, %v2671_v11 }
 0x2cc   :  { %v3522_v14 = vpop.f32.mrf.mxu1 }
 0x2cd   :  { %v2720_v15 = vmax.f32 %v2711_v13, 0.0 }
 0x2ce   :  { %v2713_v16 = vpop.f32.mrf.mxu1 }
 0x2cf   :  { %3557 = vmatmul.mubr.f32.vlgmr.msra.gmra.mxu0 %v2720_v15 }
 0x2d0   :  { %v3523_v17 = vpop.f32.mrf.mxu1 }
 0x2ec   :  { %v3441_v29 = vpop.f32.mrf.mxu0 }
 0x2ee   :  { %v3442_v10 = vpop.f32.mrf.mxu0 }
 0x2ef   :  { %v3443_v19 = vadd.f32 %v3442_v10, %v3441_v29 }
 0x2f1   :  { %v2875_v23 = vadd.f32 %v3443_v19, %v3330_v20 }
 0x354   :  { %v3476_v50 = vpop.f32.mrf.mxu1 }
 0x356   :  { %v3477_v34 = vpop.f32.mrf.mxu1 }
 0x357   :  { %v3478_v22 = vadd.f32 %v3477_v34, %v3476_v50 }
 0x359   :  { %v2945_v24 = vadd.f32 %v3478_v22, %v2875_v23 }
 0x38f   :  { %v3014_v4 = vpop.f32.mrf.mxu0 }
 0x390   :  { %v3015_v25 = vadd.f32 %v3014_v4, %v2945_v24 }
 0x391   :  { %v3558_v26 = vpop.f32.mrf.mxu0 }
 0x392   :  { %3981 = vtanh.f32 %v3015_v25 }
 0x39f   :  { %v3982_v31 = vpop.eup %3981 }
 0x3a0   :  { %3020 = vst.msk [vmem:[%s4587_s7] sm:$0xff] %vm3019_vm3, %v3982_v31 }
 0x3a1   :  { %3025 = vsyncpa [#allocation3], 1 }
 0x3a2   :  { %3026 = vsyncpa [#allocation5], 1 }
 0x3a3   :  { %3027 = vsyncpa [#allocation8], 1 }
 0x3a4   :  { %3028 = vsyncpa [#allocation11], 1 }

</bundles_post_ra>
